<compile_context>
chip_gen: v7x
topology: tpu7x:2x2x1
jax: 0.10.0
libtpu: 0.0.40
codegen_flags: <defaults>
</compile_context>

<pallas_src>
import functools
import math

import jax
import jax.numpy as jnp
from jax.experimental import pallas as pl
from jax.experimental.pallas import tpu as pltpu

# ------------------------- model hyper-parameters (small) -------------------------
NUM_LAYERS = 2
HIDDEN = 32
HEADS = 4
HEAD_DIM = HIDDEN // HEADS
EXPANSION = 4
FF = HIDDEN * EXPANSION
LN_EPS = 1e-5


# ------------------------------ in-kernel helpers ---------------------------------
def _layer_norm(v, g, b):
    # v: (N, D), g/b: (1, D)
    mu = jnp.mean(v, axis=-1, keepdims=True)
    var = jnp.mean(jnp.square(v - mu), axis=-1, keepdims=True)
    return (v - mu) * jax.lax.rsqrt(var + LN_EPS) * g + b


def _split_heads(t, batch, seq):
    # t: (batch*seq, D) -> (HEADS*batch, seq, HEAD_DIM), head-major along axis 0.
    # Lane slice + leading-dim reshape + major-dim concat only (no minor-dim reshape).
    parts = [
        t[:, h * HEAD_DIM:(h + 1) * HEAD_DIM].reshape(batch, seq, HEAD_DIM)
        for h in range(HEADS)
    ]
    return jnp.concatenate(parts, axis=0)


def _merge_heads(t, batch, seq):
    # t: (HEADS*batch, seq, HEAD_DIM) -> (batch*seq, D) with head-major lanes.
    parts = [
        t[h * batch:(h + 1) * batch].reshape(batch * seq, HEAD_DIM)
        for h in range(HEADS)
    ]
    return jnp.concatenate(parts, axis=-1)


def _attention(q, k, v, batch, s_q, s_k, wo, bo):
    """q: (batch*s_q, D) [already scaled via Wq], k/v: (batch*s_k, D)."""
    qh = _split_heads(q, batch, s_q)          # (H*B, s_q, Hd)
    kh = _split_heads(k, batch, s_k)          # (H*B, s_k, Hd)
    vh = _split_heads(v, batch, s_k)          # (H*B, s_k, Hd)

    s = jnp.einsum("bqd,bkd->bqk", qh, kh, preferred_element_type=jnp.float32)
    s = s - jnp.max(s, axis=-1, keepdims=True)
    p = jnp.exp(s)
    p = p / jnp.sum(p, axis=-1, keepdims=True)        # exact divide (correctness)
    ctx = jnp.einsum("bqk,bkd->bqd", p, vh, preferred_element_type=jnp.float32)

    ctx = _merge_heads(ctx, batch, s_q)                # (batch*s_q, D)
    return jnp.dot(ctx, wo, preferred_element_type=jnp.float32) + bo


# --------------------------------- fused Pallas kernel -----------------------------
def transformer_kernel(
    x_ref, y_ref,              # (B*S, D), (B*Se, D)
    ln_g_ref, ln_b_ref,        # (L, 3, 1, D): [self_attn, enc_attn, ff] layer norms
    wqkv_ref, bqkv_ref,        # (L, 2, D, 3D) / (L, 2, 1, 3D): [self, enc] x [Wq|Wk|Wv]
    wo_ref, bo_ref,            # (L, 2, D, D) / (L, 2, 1, D)
    ff_w1_ref, ff_b1_ref,      # (L, D, FF) / (L, 1, FF)
    ff_w2_ref, ff_b2_ref,      # (L, FF, D) / (L, 1, D)
    head_g_ref, head_b_ref,    # (1, D)
    out_ref,                   # (B*S, D)
    cache_ref,                 # (L, B*S, 4D) lanes = [self_k | self_v | enc_k | enc_v]
    *, batch,
):
    D = x_ref.shape[1]
    B = batch
    S = x_ref.shape[0] // B
    Se = y_ref.shape[0] // B

    x = x_ref[...]
    y = y_ref[...]

    for l in range(NUM_LAYERS):            # static unroll; weights stay VMEM resident
        # ---- self attention (pre-LN); one fused 96-wide QKV projection ----
        z = _layer_norm(x, ln_g_ref[l, 0], ln_b_ref[l, 0])
        qkv = jnp.dot(z, wqkv_ref[l, 0], preferred_element_type=jnp.float32) + bqkv_ref[l, 0]
        q = qkv[:, 0:D]
        sk = qkv[:, D:2 * D]
        sv = qkv[:, 2 * D:3 * D]
        x = x + _attention(q, sk, sv, B, S, S, wo_ref[l, 0], bo_ref[l, 0])

        # ---- encoder-decoder attention ----
        z = _layer_norm(x, ln_g_ref[l, 1], ln_b_ref[l, 1])
        q = (jnp.dot(z, wqkv_ref[l, 1], preferred_element_type=jnp.float32)
             + bqkv_ref[l, 1])[:, 0:D]
        kv = jnp.dot(y, wqkv_ref[l, 1], preferred_element_type=jnp.float32) + bqkv_ref[l, 1]
        ek = kv[:, D:2 * D]
        ev = kv[:, 2 * D:3 * D]
        x = x + _attention(q, ek, ev, B, S, Se, wo_ref[l, 1], bo_ref[l, 1])

        # ---- position-wise feed-forward ----
        z = _layer_norm(x, ln_g_ref[l, 2], ln_b_ref[l, 2])
        h = jnp.dot(z, ff_w1_ref[l], preferred_element_type=jnp.float32) + ff_b1_ref[l]
        h = jax.nn.gelu(h, approximate=True)
        z = jnp.dot(h, ff_w2_ref[l], preferred_element_type=jnp.float32) + ff_b2_ref[l]
        x = x + z

        # ---- lane-dense packed K/V cache write (one full 128-lane slab) ----
        cache_ref[l] = jnp.concatenate([sk, sv, ek, ev], axis=-1)

    # ---- ln_head ----
    out_ref[...] = _layer_norm(x, head_g_ref[...], head_b_ref[...])


# --------------------------------- wrapper ------------------------------------------
def transformer_forward(x, y, params):
    """Full Transformer forward as one pallas_call (bidirectional=True, no masks)."""
    B, S, D = x.shape
    Se = y.shape[1]
    L = NUM_LAYERS
    assert S == Se, "packed cache layout assumes equal decoder/encoder lengths"
    # TODO(synk): for S != Se, emit two packed slabs (self / enc) instead of one.

    vmem = pl.BlockSpec(memory_space=pltpu.MemorySpace.VMEM)  # fully VMEM resident
    out, cache = pl.pallas_call(
        functools.partial(transformer_kernel, batch=B),
        out_shape=(
            jax.ShapeDtypeStruct((B * S, D), jnp.float32),        # final hidden states
            jax.ShapeDtypeStruct((L, B * S, 4 * D), jnp.float32),  # packed K/V caches
        ),
        in_specs=[vmem] * 14,
        out_specs=(vmem, vmem),
    )(
        x.reshape(B * S, D), y.reshape(B * Se, D),
        params["ln_g"], params["ln_b"],
        params["attn_wqkv"], params["attn_bqkv"],
        params["attn_wo"], params["attn_bo"],
        params["ff_w1"], params["ff_b1"],
        params["ff_w2"], params["ff_b2"],
        params["head_g"], params["head_b"],
    )

    out = out.reshape(B, S, D)
    cache = cache.reshape(L, B, S, 4 * D)     # free metadata reshape + cheap XLA slices
    self_caches = [(cache[l, ..., 0:D], cache[l, ..., D:2 * D]) for l in range(L)]
    enc_caches = [(cache[l, ..., 2 * D:3 * D], cache[l, ..., 3 * D:4 * D]) for l in range(L)]
    return out, self_caches, enc_caches


# ------------------------------- parameter init -------------------------------------
def init_params(key, num_layers):
    k_qkv, k_o, k1, k2 = jax.random.split(key, 4)

    def nrm(k, shape):
        return (0.02 * jax.random.normal(k, shape)).astype(jnp.float32)

    # Packed QKV weights: [..., 0:D] = Wq, [..., D:2D] = Wk, [..., 2D:3D] = Wv.
    wqkv = nrm(k_qkv, (num_layers, 2, HIDDEN, 3 * HIDDEN))
    bqkv = jnp.zeros((num_layers, 2, 1, 3 * HIDDEN), jnp.float32)
    # Fold the 1/sqrt(HEAD_DIM) attention scale into Wq / bq host-side (K/V unaffected).
    scale = 1.0 / math.sqrt(HEAD_DIM)
    wqkv = wqkv.at[..., :HIDDEN].multiply(scale)
    bqkv = bqkv.at[..., :HIDDEN].multiply(scale)

    return dict(
        ln_g=jnp.ones((num_layers, 3, 1, HIDDEN), jnp.float32),
        ln_b=jnp.zeros((num_layers, 3, 1, HIDDEN), jnp.float32),
        attn_wqkv=wqkv,                                   # [self, enc] x [Wq|Wk|Wv]
        attn_bqkv=bqkv,
        attn_wo=nrm(k_o, (num_layers, 2, HIDDEN, HIDDEN)),
        attn_bo=jnp.zeros((num_layers, 2, 1, HIDDEN), jnp.float32),
        ff_w1=nrm(k1, (num_layers, HIDDEN, FF)),
        ff_b1=jnp.zeros((num_layers, 1, FF), jnp.float32),
        ff_w2=nrm(k2, (num_layers, FF, HIDDEN)),
        ff_b2=jnp.zeros((num_layers, 1, HIDDEN), jnp.float32),
        head_g=jnp.ones((1, HIDDEN), jnp.float32),
        head_b=jnp.zeros((1, HIDDEN), jnp.float32),
    )


# ------------------------------------- main ------------------------------------------
if __name__ == "__main__":
    key = jax.random.PRNGKey(0)
    kx, ky, kp = jax.random.split(key, 3)

    B, S, SE = 2, 8, 8
    x = jax.random.normal(kx, (B, S, HIDDEN), jnp.float32)    # decoder hidden states
    y = jax.random.normal(ky, (B, SE, HIDDEN), jnp.float32)   # encoder outputs

    params = init_params(kp, NUM_LAYERS)

    fwd = jax.jit(transformer_forward)
    out, self_caches, enc_caches = fwd(x, y, params)
    out = jax.block_until_ready(out)
    jax.block_until_ready(self_caches)
    jax.block_until_ready(enc_caches)

    assert out.shape == (B, S, HIDDEN)
    assert len(self_caches) == NUM_LAYERS and len(enc_caches) == NUM_LAYERS
    assert self_caches[0][0].shape == (B, S, HIDDEN)
    assert enc_caches[0][1].shape == (B, SE, HIDDEN)
    assert bool(jnp.all(jnp.isfinite(out)))
    print("KERNEL_OK")
</pallas_src>

<mosaic_0001>
module attributes {stable_mosaic.version = 11 : i64} {
  func.func @transformer_kernel(%arg0: memref<16x32xf32, #tpu.memory_space<vmem>>, %arg1: memref<16x32xf32, #tpu.memory_space<vmem>>, %arg2: memref<2x3x1x32xf32, #tpu.memory_space<vmem>>, %arg3: memref<2x3x1x32xf32, #tpu.memory_space<vmem>>, %arg4: memref<2x2x32x96xf32, #tpu.memory_space<vmem>>, %arg5: memref<2x2x1x96xf32, #tpu.memory_space<vmem>>, %arg6: memref<2x2x32x32xf32, #tpu.memory_space<vmem>>, %arg7: memref<2x2x1x32xf32, #tpu.memory_space<vmem>>, %arg8: memref<2x32x128xf32, #tpu.memory_space<vmem>>, %arg9: memref<2x1x128xf32, #tpu.memory_space<vmem>>, %arg10: memref<2x128x32xf32, #tpu.memory_space<vmem>>, %arg11: memref<2x1x32xf32, #tpu.memory_space<vmem>>, %arg12: memref<1x32xf32, #tpu.memory_space<vmem>>, %arg13: memref<1x32xf32, #tpu.memory_space<vmem>>, %arg14: memref<16x32xf32, #tpu.memory_space<vmem>>, %arg15: memref<2x16x128xf32, #tpu.memory_space<vmem>>) attributes {dimension_semantics = [], scalar_prefetch = 0 : i64, scratch_operands = 0 : i64, tpu.core_type = #tpu.core_type<tc>} {
    %c0 = arith.constant 0 : index
    %c0_0 = arith.constant 0 : index
    %0 = vector.load %arg0[%c0, %c0_0] : memref<16x32xf32, #tpu.memory_space<vmem>>, vector<16x32xf32>
    %c0_1 = arith.constant 0 : index
    %c0_2 = arith.constant 0 : index
    %1 = vector.load %arg1[%c0_1, %c0_2] : memref<16x32xf32, #tpu.memory_space<vmem>>, vector<16x32xf32>
    %c0_3 = arith.constant 0 : index
    %c0_4 = arith.constant 0 : index
    %c0_5 = arith.constant 0 : index
    %c0_6 = arith.constant 0 : index
    %2 = vector.load %arg2[%c0_3, %c0_4, %c0_5, %c0_6] : memref<2x3x1x32xf32, #tpu.memory_space<vmem>>, vector<1x1x1x32xf32>
    %3 = vector.shape_cast %2 : vector<1x1x1x32xf32> to vector<1x32xf32>
    %c0_7 = arith.constant 0 : index
    %c0_8 = arith.constant 0 : index
    %c0_9 = arith.constant 0 : index
    %c0_10 = arith.constant 0 : index
    %4 = vector.load %arg3[%c0_7, %c0_8, %c0_9, %c0_10] : memref<2x3x1x32xf32, #tpu.memory_space<vmem>>, vector<1x1x1x32xf32>
    %5 = vector.shape_cast %4 : vector<1x1x1x32xf32> to vector<1x32xf32>
    %cst = arith.constant dense<0.000000e+00> : vector<16xf32>
    %6 = vector.multi_reduction <add>, %0, %cst [1] : vector<16x32xf32> to vector<16xf32>
    %7 = vector.shape_cast %6 : vector<16xf32> to vector<16x1xf32>
    %cst_11 = arith.constant 3.200000e+01 : f32
    %8 = vector.broadcast %cst_11 : f32 to vector<16x1xf32>
    %9 = arith.divf %7, %8 : vector<16x1xf32>
    %10 = vector.broadcast %9 : vector<16x1xf32> to vector<16x32xf32>
    %11 = arith.subf %0, %10 : vector<16x32xf32>
    %12 = arith.mulf %11, %11 : vector<16x32xf32>
    %cst_12 = arith.constant dense<0.000000e+00> : vector<16xf32>
    %13 = vector.multi_reduction <add>, %12, %cst_12 [1] : vector<16x32xf32> to vector<16xf32>
    %14 = vector.shape_cast %13 : vector<16xf32> to vector<16x1xf32>
    %cst_13 = arith.constant 3.200000e+01 : f32
    %15 = vector.broadcast %cst_13 : f32 to vector<16x1xf32>
    %16 = arith.divf %14, %15 : vector<16x1xf32>
    %17 = vector.broadcast %9 : vector<16x1xf32> to vector<16x32xf32>
    %18 = arith.subf %0, %17 : vector<16x32xf32>
    %cst_14 = arith.constant 9.99999974E-6 : f32
    %19 = vector.broadcast %cst_14 : f32 to vector<16x1xf32>
    %20 = arith.addf %16, %19 : vector<16x1xf32>
    %21 = math.rsqrt %20 : vector<16x1xf32>
    %22 = vector.broadcast %21 : vector<16x1xf32> to vector<16x32xf32>
    %23 = arith.mulf %18, %22 : vector<16x32xf32>
    %24 = vector.broadcast %3 : vector<1x32xf32> to vector<16x32xf32>
    %25 = arith.mulf %23, %24 : vector<16x32xf32>
    %26 = vector.broadcast %5 : vector<1x32xf32> to vector<16x32xf32>
    %27 = arith.addf %25, %26 : vector<16x32xf32>
    %c0_15 = arith.constant 0 : index
    %c0_16 = arith.constant 0 : index
    %c0_17 = arith.constant 0 : index
    %c0_18 = arith.constant 0 : index
    %28 = vector.load %arg4[%c0_15, %c0_16, %c0_17, %c0_18] : memref<2x2x32x96xf32, #tpu.memory_space<vmem>>, vector<1x1x32x96xf32>
    %29 = vector.shape_cast %28 : vector<1x1x32x96xf32> to vector<32x96xf32>
    %cst_19 = arith.constant dense<0.000000e+00> : vector<16x96xf32>
    %30 = tpu.matmul %27, %29, %cst_19 {dimension_numbers = #tpu.dot_dimension_numbers<[1], [0], [0], [1], [0, 0, 1, 1], [], []>} : vector<16x32xf32>, vector<32x96xf32>, vector<16x96xf32> -> vector<16x96xf32>
    %c0_20 = arith.constant 0 : index
    %c0_21 = arith.constant 0 : index
    %c0_22 = arith.constant 0 : index
    %c0_23 = arith.constant 0 : index
    %31 = vector.load %arg5[%c0_20, %c0_21, %c0_22, %c0_23] : memref<2x2x1x96xf32, #tpu.memory_space<vmem>>, vector<1x1x1x96xf32>
    %32 = vector.shape_cast %31 : vector<1x1x1x96xf32> to vector<1x96xf32>
    %33 = vector.broadcast %32 : vector<1x96xf32> to vector<16x96xf32>
    %34 = arith.addf %30, %33 : vector<16x96xf32>
    %35 = vector.extract_strided_slice %34 {offsets = [0, 0], sizes = [16, 32], strides = [1, 1]} : vector<16x96xf32> to vector<16x32xf32>
    %36 = vector.extract_strided_slice %34 {offsets = [0, 32], sizes = [16, 32], strides = [1, 1]} : vector<16x96xf32> to vector<16x32xf32>
    %37 = vector.extract_strided_slice %34 {offsets = [0, 64], sizes = [16, 32], strides = [1, 1]} : vector<16x96xf32> to vector<16x32xf32>
    %c0_24 = arith.constant 0 : index
    %c0_25 = arith.constant 0 : index
    %c0_26 = arith.constant 0 : index
    %c0_27 = arith.constant 0 : index
    %38 = vector.load %arg6[%c0_24, %c0_25, %c0_26, %c0_27] : memref<2x2x32x32xf32, #tpu.memory_space<vmem>>, vector<1x1x32x32xf32>
    %39 = vector.shape_cast %38 : vector<1x1x32x32xf32> to vector<32x32xf32>
    %c0_28 = arith.constant 0 : index
    %c0_29 = arith.constant 0 : index
    %c0_30 = arith.constant 0 : index
    %c0_31 = arith.constant 0 : index
    %40 = vector.load %arg7[%c0_28, %c0_29, %c0_30, %c0_31] : memref<2x2x1x32xf32, #tpu.memory_space<vmem>>, vector<1x1x1x32xf32>
    %41 = vector.shape_cast %40 : vector<1x1x1x32xf32> to vector<1x32xf32>
    %42 = vector.extract_strided_slice %35 {offsets = [0, 0], sizes = [16, 8], strides = [1, 1]} : vector<16x32xf32> to vector<16x8xf32>
    %43 = vector.shape_cast %42 : vector<16x8xf32> to vector<2x8x8xf32>
    %44 = vector.extract_strided_slice %35 {offsets = [0, 8], sizes = [16, 8], strides = [1, 1]} : vector<16x32xf32> to vector<16x8xf32>
    %45 = vector.shape_cast %44 : vector<16x8xf32> to vector<2x8x8xf32>
    %46 = vector.extract_strided_slice %35 {offsets = [0, 16], sizes = [16, 8], strides = [1, 1]} : vector<16x32xf32> to vector<16x8xf32>
    %47 = vector.shape_cast %46 : vector<16x8xf32> to vector<2x8x8xf32>
    %48 = vector.extract_strided_slice %35 {offsets = [0, 24], sizes = [16, 8], strides = [1, 1]} : vector<16x32xf32> to vector<16x8xf32>
    %49 = vector.shape_cast %48 : vector<16x8xf32> to vector<2x8x8xf32>
    %50 = tpu.concatenate %43, %45, %47, %49 in 0 : vector<2x8x8xf32>, vector<2x8x8xf32>, vector<2x8x8xf32>, vector<2x8x8xf32> -> vector<8x8x8xf32>
    %51 = vector.extract_strided_slice %36 {offsets = [0, 0], sizes = [16, 8], strides = [1, 1]} : vector<16x32xf32> to vector<16x8xf32>
    %52 = vector.shape_cast %51 : vector<16x8xf32> to vector<2x8x8xf32>
    %53 = vector.extract_strided_slice %36 {offsets = [0, 8], sizes = [16, 8], strides = [1, 1]} : vector<16x32xf32> to vector<16x8xf32>
    %54 = vector.shape_cast %53 : vector<16x8xf32> to vector<2x8x8xf32>
    %55 = vector.extract_strided_slice %36 {offsets = [0, 16], sizes = [16, 8], strides = [1, 1]} : vector<16x32xf32> to vector<16x8xf32>
    %56 = vector.shape_cast %55 : vector<16x8xf32> to vector<2x8x8xf32>
    %57 = vector.extract_strided_slice %36 {offsets = [0, 24], sizes = [16, 8], strides = [1, 1]} : vector<16x32xf32> to vector<16x8xf32>
    %58 = vector.shape_cast %57 : vector<16x8xf32> to vector<2x8x8xf32>
    %59 = tpu.concatenate %52, %54, %56, %58 in 0 : vector<2x8x8xf32>, vector<2x8x8xf32>, vector<2x8x8xf32>, vector<2x8x8xf32> -> vector<8x8x8xf32>
    %60 = vector.extract_strided_slice %37 {offsets = [0, 0], sizes = [16, 8], strides = [1, 1]} : vector<16x32xf32> to vector<16x8xf32>
    %61 = vector.shape_cast %60 : vector<16x8xf32> to vector<2x8x8xf32>
    %62 = vector.extract_strided_slice %37 {offsets = [0, 8], sizes = [16, 8], strides = [1, 1]} : vector<16x32xf32> to vector<16x8xf32>
    %63 = vector.shape_cast %62 : vector<16x8xf32> to vector<2x8x8xf32>
    %64 = vector.extract_strided_slice %37 {offsets = [0, 16], sizes = [16, 8], strides = [1, 1]} : vector<16x32xf32> to vector<16x8xf32>
    %65 = vector.shape_cast %64 : vector<16x8xf32> to vector<2x8x8xf32>
    %66 = vector.extract_strided_slice %37 {offsets = [0, 24], sizes = [16, 8], strides = [1, 1]} : vector<16x32xf32> to vector<16x8xf32>
    %67 = vector.shape_cast %66 : vector<16x8xf32> to vector<2x8x8xf32>
    %68 = tpu.concatenate %61, %63, %65, %67 in 0 : vector<2x8x8xf32>, vector<2x8x8xf32>, vector<2x8x8xf32>, vector<2x8x8xf32> -> vector<8x8x8xf32>
    "tpu.trace_start"() <{level = 10 : i32, message = "bqd,bkd->bqk"}> : () -> ()
    %cst_32 = arith.constant dense<0.000000e+00> : vector<8x8x8xf32>
    %69 = tpu.matmul %50, %59, %cst_32 {dimension_numbers = #tpu.dot_dimension_numbers<[2], [2], [1], [1], [0, 0, 0, 1, 1, 1], [0], [0]>} : vector<8x8x8xf32>, vector<8x8x8xf32>, vector<8x8x8xf32> -> vector<8x8x8xf32>
    "tpu.trace_stop"() : () -> ()
    %cst_33 = arith.constant dense<0xFF800000> : vector<8x8xf32>
    %70 = vector.multi_reduction <maximumf>, %69, %cst_33 [2] : vector<8x8x8xf32> to vector<8x8xf32>
    %71 = vector.shape_cast %70 : vector<8x8xf32> to vector<8x8x1xf32>
    %72 = vector.broadcast %71 : vector<8x8x1xf32> to vector<8x8x8xf32>
    %73 = arith.subf %69, %72 : vector<8x8x8xf32>
    %74 = math.exp %73 : vector<8x8x8xf32>
    %cst_34 = arith.constant dense<0.000000e+00> : vector<8x8xf32>
    %75 = vector.multi_reduction <add>, %74, %cst_34 [2] : vector<8x8x8xf32> to vector<8x8xf32>
    %76 = vector.shape_cast %75 : vector<8x8xf32> to vector<8x8x1xf32>
    %77 = vector.broadcast %76 : vector<8x8x1xf32> to vector<8x8x8xf32>
    %78 = arith.divf %74, %77 : vector<8x8x8xf32>
    "tpu.trace_start"() <{level = 10 : i32, message = "bqk,bkd->bqd"}> : () -> ()
    %cst_35 = arith.constant dense<0.000000e+00> : vector<8x8x8xf32>
    %79 = tpu.matmul %78, %68, %cst_35 {dimension_numbers = #tpu.dot_dimension_numbers<[2], [1], [1], [2], [0, 0, 0, 1, 1, 2], [0], [0]>} : vector<8x8x8xf32>, vector<8x8x8xf32>, vector<8x8x8xf32> -> vector<8x8x8xf32>
    "tpu.trace_stop"() : () -> ()
    %80 = vector.extract_strided_slice %79 {offsets = [0, 0, 0], sizes = [2, 8, 8], strides = [1, 1, 1]} : vector<8x8x8xf32> to vector<2x8x8xf32>
    %81 = vector.shape_cast %80 : vector<2x8x8xf32> to vector<16x8xf32>
    %82 = vector.extract_strided_slice %79 {offsets = [2, 0, 0], sizes = [2, 8, 8], strides = [1, 1, 1]} : vector<8x8x8xf32> to vector<2x8x8xf32>
    %83 = vector.shape_cast %82 : vector<2x8x8xf32> to vector<16x8xf32>
    %84 = vector.extract_strided_slice %79 {offsets = [4, 0, 0], sizes = [2, 8, 8], strides = [1, 1, 1]} : vector<8x8x8xf32> to vector<2x8x8xf32>
    %85 = vector.shape_cast %84 : vector<2x8x8xf32> to vector<16x8xf32>
    %86 = vector.extract_strided_slice %79 {offsets = [6, 0, 0], sizes = [2, 8, 8], strides = [1, 1, 1]} : vector<8x8x8xf32> to vector<2x8x8xf32>
    %87 = vector.shape_cast %86 : vector<2x8x8xf32> to vector<16x8xf32>
    %88 = tpu.concatenate %81, %83, %85, %87 in 1 : vector<16x8xf32>, vector<16x8xf32>, vector<16x8xf32>, vector<16x8xf32> -> vector<16x32xf32>
    %cst_36 = arith.constant dense<0.000000e+00> : vector<16x32xf32>
    %89 = tpu.matmul %88, %39, %cst_36 {dimension_numbers = #tpu.dot_dimension_numbers<[1], [0], [0], [1], [0, 0, 1, 1], [], []>} : vector<16x32xf32>, vector<32x32xf32>, vector<16x32xf32> -> vector<16x32xf32>
    %90 = vector.broadcast %41 : vector<1x32xf32> to vector<16x32xf32>
    %91 = arith.addf %89, %90 : vector<16x32xf32>
    %92 = arith.addf %0, %91 : vector<16x32xf32>
    %c0_37 = arith.constant 0 : index
    %c1 = arith.constant 1 : index
    %c0_38 = arith.constant 0 : index
    %c0_39 = arith.constant 0 : index
    %93 = vector.load %arg2[%c0_37, %c1, %c0_38, %c0_39] : memref<2x3x1x32xf32, #tpu.memory_space<vmem>>, vector<1x1x1x32xf32>
    %94 = vector.shape_cast %93 : vector<1x1x1x32xf32> to vector<1x32xf32>
    %c0_40 = arith.constant 0 : index
    %c1_41 = arith.constant 1 : index
    %c0_42 = arith.constant 0 : index
    %c0_43 = arith.constant 0 : index
    %95 = vector.load %arg3[%c0_40, %c1_41, %c0_42, %c0_43] : memref<2x3x1x32xf32, #tpu.memory_space<vmem>>, vector<1x1x1x32xf32>
    %96 = vector.shape_cast %95 : vector<1x1x1x32xf32> to vector<1x32xf32>
    %cst_44 = arith.constant dense<0.000000e+00> : vector<16xf32>
    %97 = vector.multi_reduction <add>, %92, %cst_44 [1] : vector<16x32xf32> to vector<16xf32>
    %98 = vector.shape_cast %97 : vector<16xf32> to vector<16x1xf32>
    %cst_45 = arith.constant 3.200000e+01 : f32
    %99 = vector.broadcast %cst_45 : f32 to vector<16x1xf32>
    %100 = arith.divf %98, %99 : vector<16x1xf32>
    %101 = vector.broadcast %100 : vector<16x1xf32> to vector<16x32xf32>
    %102 = arith.subf %92, %101 : vector<16x32xf32>
    %103 = arith.mulf %102, %102 : vector<16x32xf32>
    %cst_46 = arith.constant dense<0.000000e+00> : vector<16xf32>
    %104 = vector.multi_reduction <add>, %103, %cst_46 [1] : vector<16x32xf32> to vector<16xf32>
    %105 = vector.shape_cast %104 : vector<16xf32> to vector<16x1xf32>
    %cst_47 = arith.constant 3.200000e+01 : f32
    %106 = vector.broadcast %cst_47 : f32 to vector<16x1xf32>
    %107 = arith.divf %105, %106 : vector<16x1xf32>
    %108 = vector.broadcast %100 : vector<16x1xf32> to vector<16x32xf32>
    %109 = arith.subf %92, %108 : vector<16x32xf32>
    %cst_48 = arith.constant 9.99999974E-6 : f32
    %110 = vector.broadcast %cst_48 : f32 to vector<16x1xf32>
    %111 = arith.addf %107, %110 : vector<16x1xf32>
    %112 = math.rsqrt %111 : vector<16x1xf32>
    %113 = vector.broadcast %112 : vector<16x1xf32> to vector<16x32xf32>
    %114 = arith.mulf %109, %113 : vector<16x32xf32>
    %115 = vector.broadcast %94 : vector<1x32xf32> to vector<16x32xf32>
    %116 = arith.mulf %114, %115 : vector<16x32xf32>
    %117 = vector.broadcast %96 : vector<1x32xf32> to vector<16x32xf32>
    %118 = arith.addf %116, %117 : vector<16x32xf32>
    %c0_49 = arith.constant 0 : index
    %c1_50 = arith.constant 1 : index
    %c0_51 = arith.constant 0 : index
    %c0_52 = arith.constant 0 : index
    %119 = vector.load %arg4[%c0_49, %c1_50, %c0_51, %c0_52] : memref<2x2x32x96xf32, #tpu.memory_space<vmem>>, vector<1x1x32x96xf32>
    %120 = vector.shape_cast %119 : vector<1x1x32x96xf32> to vector<32x96xf32>
    %cst_53 = arith.constant dense<0.000000e+00> : vector<16x96xf32>
    %121 = tpu.matmul %118, %120, %cst_53 {dimension_numbers = #tpu.dot_dimension_numbers<[1], [0], [0], [1], [0, 0, 1, 1], [], []>} : vector<16x32xf32>, vector<32x96xf32>, vector<16x96xf32> -> vector<16x96xf32>
    %c0_54 = arith.constant 0 : index
    %c1_55 = arith.constant 1 : index
    %c0_56 = arith.constant 0 : index
    %c0_57 = arith.constant 0 : index
    %122 = vector.load %arg5[%c0_54, %c1_55, %c0_56, %c0_57] : memref<2x2x1x96xf32, #tpu.memory_space<vmem>>, vector<1x1x1x96xf32>
    %123 = vector.shape_cast %122 : vector<1x1x1x96xf32> to vector<1x96xf32>
    %124 = vector.broadcast %123 : vector<1x96xf32> to vector<16x96xf32>
    %125 = arith.addf %121, %124 : vector<16x96xf32>
    %126 = vector.extract_strided_slice %125 {offsets = [0, 0], sizes = [16, 32], strides = [1, 1]} : vector<16x96xf32> to vector<16x32xf32>
    %c0_58 = arith.constant 0 : index
    %c1_59 = arith.constant 1 : index
    %c0_60 = arith.constant 0 : index
    %c0_61 = arith.constant 0 : index
    %127 = vector.load %arg4[%c0_58, %c1_59, %c0_60, %c0_61] : memref<2x2x32x96xf32, #tpu.memory_space<vmem>>, vector<1x1x32x96xf32>
    %128 = vector.shape_cast %127 : vector<1x1x32x96xf32> to vector<32x96xf32>
    %cst_62 = arith.constant dense<0.000000e+00> : vector<16x96xf32>
    %129 = tpu.matmul %1, %128, %cst_62 {dimension_numbers = #tpu.dot_dimension_numbers<[1], [0], [0], [1], [0, 0, 1, 1], [], []>} : vector<16x32xf32>, vector<32x96xf32>, vector<16x96xf32> -> vector<16x96xf32>
    %c0_63 = arith.constant 0 : index
    %c1_64 = arith.constant 1 : index
    %c0_65 = arith.constant 0 : index
    %c0_66 = arith.constant 0 : index
    %130 = vector.load %arg5[%c0_63, %c1_64, %c0_65, %c0_66] : memref<2x2x1x96xf32, #tpu.memory_space<vmem>>, vector<1x1x1x96xf32>
    %131 = vector.shape_cast %130 : vector<1x1x1x96xf32> to vector<1x96xf32>
    %132 = vector.broadcast %131 : vector<1x96xf32> to vector<16x96xf32>
    %133 = arith.addf %129, %132 : vector<16x96xf32>
    %134 = vector.extract_strided_slice %133 {offsets = [0, 32], sizes = [16, 32], strides = [1, 1]} : vector<16x96xf32> to vector<16x32xf32>
    %135 = vector.extract_strided_slice %133 {offsets = [0, 64], sizes = [16, 32], strides = [1, 1]} : vector<16x96xf32> to vector<16x32xf32>
    %c0_67 = arith.constant 0 : index
    %c1_68 = arith.constant 1 : index
    %c0_69 = arith.constant 0 : index
    %c0_70 = arith.constant 0 : index
    %136 = vector.load %arg6[%c0_67, %c1_68, %c0_69, %c0_70] : memref<2x2x32x32xf32, #tpu.memory_space<vmem>>, vector<1x1x32x32xf32>
    %137 = vector.shape_cast %136 : vector<1x1x32x32xf32> to vector<32x32xf32>
    %c0_71 = arith.constant 0 : index
    %c1_72 = arith.constant 1 : index
    %c0_73 = arith.constant 0 : index
    %c0_74 = arith.constant 0 : index
    %138 = vector.load %arg7[%c0_71, %c1_72, %c0_73, %c0_74] : memref<2x2x1x32xf32, #tpu.memory_space<vmem>>, vector<1x1x1x32xf32>
    %139 = vector.shape_cast %138 : vector<1x1x1x32xf32> to vector<1x32xf32>
    %140 = vector.extract_strided_slice %126 {offsets = [0, 0], sizes = [16, 8], strides = [1, 1]} : vector<16x32xf32> to vector<16x8xf32>
    %141 = vector.shape_cast %140 : vector<16x8xf32> to vector<2x8x8xf32>
    %142 = vector.extract_strided_slice %126 {offsets = [0, 8], sizes = [16, 8], strides = [1, 1]} : vector<16x32xf32> to vector<16x8xf32>
    %143 = vector.shape_cast %142 : vector<16x8xf32> to vector<2x8x8xf32>
    %144 = vector.extract_strided_slice %126 {offsets = [0, 16], sizes = [16, 8], strides = [1, 1]} : vector<16x32xf32> to vector<16x8xf32>
    %145 = vector.shape_cast %144 : vector<16x8xf32> to vector<2x8x8xf32>
    %146 = vector.extract_strided_slice %126 {offsets = [0, 24], sizes = [16, 8], strides = [1, 1]} : vector<16x32xf32> to vector<16x8xf32>
    %147 = vector.shape_cast %146 : vector<16x8xf32> to vector<2x8x8xf32>
    %148 = tpu.concatenate %141, %143, %145, %147 in 0 : vector<2x8x8xf32>, vector<2x8x8xf32>, vector<2x8x8xf32>, vector<2x8x8xf32> -> vector<8x8x8xf32>
    %149 = vector.extract_strided_slice %134 {offsets = [0, 0], sizes = [16, 8], strides = [1, 1]} : vector<16x32xf32> to vector<16x8xf32>
    %150 = vector.shape_cast %149 : vector<16x8xf32> to vector<2x8x8xf32>
    %151 = vector.extract_strided_slice %134 {offsets = [0, 8], sizes = [16, 8], strides = [1, 1]} : vector<16x32xf32> to vector<16x8xf32>
    %152 = vector.shape_cast %151 : vector<16x8xf32> to vector<2x8x8xf32>
    %153 = vector.extract_strided_slice %134 {offsets = [0, 16], sizes = [16, 8], strides = [1, 1]} : vector<16x32xf32> to vector<16x8xf32>
    %154 = vector.shape_cast %153 : vector<16x8xf32> to vector<2x8x8xf32>
    %155 = vector.extract_strided_slice %134 {offsets = [0, 24], sizes = [16, 8], strides = [1, 1]} : vector<16x32xf32> to vector<16x8xf32>
    %156 = vector.shape_cast %155 : vector<16x8xf32> to vector<2x8x8xf32>
    %157 = tpu.concatenate %150, %152, %154, %156 in 0 : vector<2x8x8xf32>, vector<2x8x8xf32>, vector<2x8x8xf32>, vector<2x8x8xf32> -> vector<8x8x8xf32>
    %158 = vector.extract_strided_slice %135 {offsets = [0, 0], sizes = [16, 8], strides = [1, 1]} : vector<16x32xf32> to vector<16x8xf32>
    %159 = vector.shape_cast %158 : vector<16x8xf32> to vector<2x8x8xf32>
    %160 = vector.extract_strided_slice %135 {offsets = [0, 8], sizes = [16, 8], strides = [1, 1]} : vector<16x32xf32> to vector<16x8xf32>
    %161 = vector.shape_cast %160 : vector<16x8xf32> to vector<2x8x8xf32>
    %162 = vector.extract_strided_slice %135 {offsets = [0, 16], sizes = [16, 8], strides = [1, 1]} : vector<16x32xf32> to vector<16x8xf32>
    %163 = vector.shape_cast %162 : vector<16x8xf32> to vector<2x8x8xf32>
    %164 = vector.extract_strided_slice %135 {offsets = [0, 24], sizes = [16, 8], strides = [1, 1]} : vector<16x32xf32> to vector<16x8xf32>
    %165 = vector.shape_cast %164 : vector<16x8xf32> to vector<2x8x8xf32>
    %166 = tpu.concatenate %159, %161, %163, %165 in 0 : vector<2x8x8xf32>, vector<2x8x8xf32>, vector<2x8x8xf32>, vector<2x8x8xf32> -> vector<8x8x8xf32>
    "tpu.trace_start"() <{level = 10 : i32, message = "bqd,bkd->bqk"}> : () -> ()
    %cst_75 = arith.constant dense<0.000000e+00> : vector<8x8x8xf32>
    %167 = tpu.matmul %148, %157, %cst_75 {dimension_numbers = #tpu.dot_dimension_numbers<[2], [2], [1], [1], [0, 0, 0, 1, 1, 1], [0], [0]>} : vector<8x8x8xf32>, vector<8x8x8xf32>, vector<8x8x8xf32> -> vector<8x8x8xf32>
    "tpu.trace_stop"() : () -> ()
    %cst_76 = arith.constant dense<0xFF800000> : vector<8x8xf32>
    %168 = vector.multi_reduction <maximumf>, %167, %cst_76 [2] : vector<8x8x8xf32> to vector<8x8xf32>
    %169 = vector.shape_cast %168 : vector<8x8xf32> to vector<8x8x1xf32>
    %170 = vector.broadcast %169 : vector<8x8x1xf32> to vector<8x8x8xf32>
    %171 = arith.subf %167, %170 : vector<8x8x8xf32>
    %172 = math.exp %171 : vector<8x8x8xf32>
    %cst_77 = arith.constant dense<0.000000e+00> : vector<8x8xf32>
    %173 = vector.multi_reduction <add>, %172, %cst_77 [2] : vector<8x8x8xf32> to vector<8x8xf32>
    %174 = vector.shape_cast %173 : vector<8x8xf32> to vector<8x8x1xf32>
    %175 = vector.broadcast %174 : vector<8x8x1xf32> to vector<8x8x8xf32>
    %176 = arith.divf %172, %175 : vector<8x8x8xf32>
    "tpu.trace_start"() <{level = 10 : i32, message = "bqk,bkd->bqd"}> : () -> ()
    %cst_78 = arith.constant dense<0.000000e+00> : vector<8x8x8xf32>
    %177 = tpu.matmul %176, %166, %cst_78 {dimension_numbers = #tpu.dot_dimension_numbers<[2], [1], [1], [2], [0, 0, 0, 1, 1, 2], [0], [0]>} : vector<8x8x8xf32>, vector<8x8x8xf32>, vector<8x8x8xf32> -> vector<8x8x8xf32>
    "tpu.trace_stop"() : () -> ()
    %178 = vector.extract_strided_slice %177 {offsets = [0, 0, 0], sizes = [2, 8, 8], strides = [1, 1, 1]} : vector<8x8x8xf32> to vector<2x8x8xf32>
    %179 = vector.shape_cast %178 : vector<2x8x8xf32> to vector<16x8xf32>
    %180 = vector.extract_strided_slice %177 {offsets = [2, 0, 0], sizes = [2, 8, 8], strides = [1, 1, 1]} : vector<8x8x8xf32> to vector<2x8x8xf32>
    %181 = vector.shape_cast %180 : vector<2x8x8xf32> to vector<16x8xf32>
    %182 = vector.extract_strided_slice %177 {offsets = [4, 0, 0], sizes = [2, 8, 8], strides = [1, 1, 1]} : vector<8x8x8xf32> to vector<2x8x8xf32>
    %183 = vector.shape_cast %182 : vector<2x8x8xf32> to vector<16x8xf32>
    %184 = vector.extract_strided_slice %177 {offsets = [6, 0, 0], sizes = [2, 8, 8], strides = [1, 1, 1]} : vector<8x8x8xf32> to vector<2x8x8xf32>
    %185 = vector.shape_cast %184 : vector<2x8x8xf32> to vector<16x8xf32>
    %186 = tpu.concatenate %179, %181, %183, %185 in 1 : vector<16x8xf32>, vector<16x8xf32>, vector<16x8xf32>, vector<16x8xf32> -> vector<16x32xf32>
    %cst_79 = arith.constant dense<0.000000e+00> : vector<16x32xf32>
    %187 = tpu.matmul %186, %137, %cst_79 {dimension_numbers = #tpu.dot_dimension_numbers<[1], [0], [0], [1], [0, 0, 1, 1], [], []>} : vector<16x32xf32>, vector<32x32xf32>, vector<16x32xf32> -> vector<16x32xf32>
    %188 = vector.broadcast %139 : vector<1x32xf32> to vector<16x32xf32>
    %189 = arith.addf %187, %188 : vector<16x32xf32>
    %190 = arith.addf %92, %189 : vector<16x32xf32>
    %c0_80 = arith.constant 0 : index
    %c2 = arith.constant 2 : index
    %c0_81 = arith.constant 0 : index
    %c0_82 = arith.constant 0 : index
    %191 = vector.load %arg2[%c0_80, %c2, %c0_81, %c0_82] : memref<2x3x1x32xf32, #tpu.memory_space<vmem>>, vector<1x1x1x32xf32>
    %192 = vector.shape_cast %191 : vector<1x1x1x32xf32> to vector<1x32xf32>
    %c0_83 = arith.constant 0 : index
    %c2_84 = arith.constant 2 : index
    %c0_85 = arith.constant 0 : index
    %c0_86 = arith.constant 0 : index
    %193 = vector.load %arg3[%c0_83, %c2_84, %c0_85, %c0_86] : memref<2x3x1x32xf32, #tpu.memory_space<vmem>>, vector<1x1x1x32xf32>
    %194 = vector.shape_cast %193 : vector<1x1x1x32xf32> to vector<1x32xf32>
    %cst_87 = arith.constant dense<0.000000e+00> : vector<16xf32>
    %195 = vector.multi_reduction <add>, %190, %cst_87 [1] : vector<16x32xf32> to vector<16xf32>
    %196 = vector.shape_cast %195 : vector<16xf32> to vector<16x1xf32>
    %cst_88 = arith.constant 3.200000e+01 : f32
    %197 = vector.broadcast %cst_88 : f32 to vector<16x1xf32>
    %198 = arith.divf %196, %197 : vector<16x1xf32>
    %199 = vector.broadcast %198 : vector<16x1xf32> to vector<16x32xf32>
    %200 = arith.subf %190, %199 : vector<16x32xf32>
    %201 = arith.mulf %200, %200 : vector<16x32xf32>
    %cst_89 = arith.constant dense<0.000000e+00> : vector<16xf32>
    %202 = vector.multi_reduction <add>, %201, %cst_89 [1] : vector<16x32xf32> to vector<16xf32>
    %203 = vector.shape_cast %202 : vector<16xf32> to vector<16x1xf32>
    %cst_90 = arith.constant 3.200000e+01 : f32
    %204 = vector.broadcast %cst_90 : f32 to vector<16x1xf32>
    %205 = arith.divf %203, %204 : vector<16x1xf32>
    %206 = vector.broadcast %198 : vector<16x1xf32> to vector<16x32xf32>
    %207 = arith.subf %190, %206 : vector<16x32xf32>
    %cst_91 = arith.constant 9.99999974E-6 : f32
    %208 = vector.broadcast %cst_91 : f32 to vector<16x1xf32>
    %209 = arith.addf %205, %208 : vector<16x1xf32>
    %210 = math.rsqrt %209 : vector<16x1xf32>
    %211 = vector.broadcast %210 : vector<16x1xf32> to vector<16x32xf32>
    %212 = arith.mulf %207, %211 : vector<16x32xf32>
    %213 = vector.broadcast %192 : vector<1x32xf32> to vector<16x32xf32>
    %214 = arith.mulf %212, %213 : vector<16x32xf32>
    %215 = vector.broadcast %194 : vector<1x32xf32> to vector<16x32xf32>
    %216 = arith.addf %214, %215 : vector<16x32xf32>
    %c0_92 = arith.constant 0 : index
    %c0_93 = arith.constant 0 : index
    %c0_94 = arith.constant 0 : index
    %217 = vector.load %arg8[%c0_92, %c0_93, %c0_94] : memref<2x32x128xf32, #tpu.memory_space<vmem>>, vector<1x32x128xf32>
    %218 = vector.shape_cast %217 : vector<1x32x128xf32> to vector<32x128xf32>
    %cst_95 = arith.constant dense<0.000000e+00> : vector<16x128xf32>
    %219 = tpu.matmul %216, %218, %cst_95 {dimension_numbers = #tpu.dot_dimension_numbers<[1], [0], [0], [1], [0, 0, 1, 1], [], []>} : vector<16x32xf32>, vector<32x128xf32>, vector<16x128xf32> -> vector<16x128xf32>
    %c0_96 = arith.constant 0 : index
    %c0_97 = arith.constant 0 : index
    %c0_98 = arith.constant 0 : index
    %220 = vector.load %arg9[%c0_96, %c0_97, %c0_98] : memref<2x1x128xf32, #tpu.memory_space<vmem>>, vector<1x1x128xf32>
    %221 = vector.shape_cast %220 : vector<1x1x128xf32> to vector<1x128xf32>
    %222 = vector.broadcast %221 : vector<1x128xf32> to vector<16x128xf32>
    %223 = arith.addf %219, %222 : vector<16x128xf32>
    %224 = arith.mulf %223, %223 : vector<16x128xf32>
    %225 = arith.mulf %223, %224 : vector<16x128xf32>
    %cst_99 = arith.constant 4.471500e-02 : f32
    %226 = vector.broadcast %cst_99 : f32 to vector<16x128xf32>
    %227 = arith.mulf %226, %225 : vector<16x128xf32>
    %228 = arith.addf %223, %227 : vector<16x128xf32>
    %cst_100 = arith.constant 0.797884583 : f32
    %229 = vector.broadcast %cst_100 : f32 to vector<16x128xf32>
    %230 = arith.mulf %229, %228 : vector<16x128xf32>
    %231 = math.tanh %230 : vector<16x128xf32>
    %cst_101 = arith.constant 1.000000e+00 : f32
    %232 = vector.broadcast %cst_101 : f32 to vector<16x128xf32>
    %233 = arith.addf %232, %231 : vector<16x128xf32>
    %cst_102 = arith.constant 5.000000e-01 : f32
    %234 = vector.broadcast %cst_102 : f32 to vector<16x128xf32>
    %235 = arith.mulf %234, %233 : vector<16x128xf32>
    %236 = arith.mulf %223, %235 : vector<16x128xf32>
    %c0_103 = arith.constant 0 : index
    %c0_104 = arith.constant 0 : index
    %c0_105 = arith.constant 0 : index
    %237 = vector.load %arg10[%c0_103, %c0_104, %c0_105] : memref<2x128x32xf32, #tpu.memory_space<vmem>>, vector<1x128x32xf32>
    %238 = vector.shape_cast %237 : vector<1x128x32xf32> to vector<128x32xf32>
    %cst_106 = arith.constant dense<0.000000e+00> : vector<16x32xf32>
    %239 = tpu.matmul %236, %238, %cst_106 {dimension_numbers = #tpu.dot_dimension_numbers<[1], [0], [0], [1], [0, 0, 1, 1], [], []>} : vector<16x128xf32>, vector<128x32xf32>, vector<16x32xf32> -> vector<16x32xf32>
    %c0_107 = arith.constant 0 : index
    %c0_108 = arith.constant 0 : index
    %c0_109 = arith.constant 0 : index
    %240 = vector.load %arg11[%c0_107, %c0_108, %c0_109] : memref<2x1x32xf32, #tpu.memory_space<vmem>>, vector<1x1x32xf32>
    %241 = vector.shape_cast %240 : vector<1x1x32xf32> to vector<1x32xf32>
    %242 = vector.broadcast %241 : vector<1x32xf32> to vector<16x32xf32>
    %243 = arith.addf %239, %242 : vector<16x32xf32>
    %244 = arith.addf %190, %243 : vector<16x32xf32>
    %245 = tpu.concatenate %36, %37, %134, %135 in 1 : vector<16x32xf32>, vector<16x32xf32>, vector<16x32xf32>, vector<16x32xf32> -> vector<16x128xf32>
    %c0_110 = arith.constant 0 : index
    %c0_111 = arith.constant 0 : index
    %c0_112 = arith.constant 0 : index
    %246 = vector.load %arg15[%c0_110, %c0_111, %c0_112] : memref<2x16x128xf32, #tpu.memory_space<vmem>>, vector<1x16x128xf32>
    %247 = vector.shape_cast %246 : vector<1x16x128xf32> to vector<16x128xf32>
    %248 = vector.shape_cast %245 : vector<16x128xf32> to vector<1x16x128xf32>
    tpu.vector_store %arg15[%c0_110, %c0_111, %c0_112], %248 {strides = array<i32>} : memref<2x16x128xf32, #tpu.memory_space<vmem>>, vector<1x16x128xf32>,
    %c1_113 = arith.constant 1 : index
    %c0_114 = arith.constant 0 : index
    %c0_115 = arith.constant 0 : index
    %c0_116 = arith.constant 0 : index
    %249 = vector.load %arg2[%c1_113, %c0_114, %c0_115, %c0_116] : memref<2x3x1x32xf32, #tpu.memory_space<vmem>>, vector<1x1x1x32xf32>
    %250 = vector.shape_cast %249 : vector<1x1x1x32xf32> to vector<1x32xf32>
    %c1_117 = arith.constant 1 : index
    %c0_118 = arith.constant 0 : index
    %c0_119 = arith.constant 0 : index
    %c0_120 = arith.constant 0 : index
    %251 = vector.load %arg3[%c1_117, %c0_118, %c0_119, %c0_120] : memref<2x3x1x32xf32, #tpu.memory_space<vmem>>, vector<1x1x1x32xf32>
    %252 = vector.shape_cast %251 : vector<1x1x1x32xf32> to vector<1x32xf32>
    %cst_121 = arith.constant dense<0.000000e+00> : vector<16xf32>
    %253 = vector.multi_reduction <add>, %244, %cst_121 [1] : vector<16x32xf32> to vector<16xf32>
    %254 = vector.shape_cast %253 : vector<16xf32> to vector<16x1xf32>
    %cst_122 = arith.constant 3.200000e+01 : f32
    %255 = vector.broadcast %cst_122 : f32 to vector<16x1xf32>
    %256 = arith.divf %254, %255 : vector<16x1xf32>
    %257 = vector.broadcast %256 : vector<16x1xf32> to vector<16x32xf32>
    %258 = arith.subf %244, %257 : vector<16x32xf32>
    %259 = arith.mulf %258, %258 : vector<16x32xf32>
    %cst_123 = arith.constant dense<0.000000e+00> : vector<16xf32>
    %260 = vector.multi_reduction <add>, %259, %cst_123 [1] : vector<16x32xf32> to vector<16xf32>
    %261 = vector.shape_cast %260 : vector<16xf32> to vector<16x1xf32>
    %cst_124 = arith.constant 3.200000e+01 : f32
    %262 = vector.broadcast %cst_124 : f32 to vector<16x1xf32>
    %263 = arith.divf %261, %262 : vector<16x1xf32>
    %264 = vector.broadcast %256 : vector<16x1xf32> to vector<16x32xf32>
    %265 = arith.subf %244, %264 : vector<16x32xf32>
    %cst_125 = arith.constant 9.99999974E-6 : f32
    %266 = vector.broadcast %cst_125 : f32 to vector<16x1xf32>
    %267 = arith.addf %263, %266 : vector<16x1xf32>
    %268 = math.rsqrt %267 : vector<16x1xf32>
    %269 = vector.broadcast %268 : vector<16x1xf32> to vector<16x32xf32>
    %270 = arith.mulf %265, %269 : vector<16x32xf32>
    %271 = vector.broadcast %250 : vector<1x32xf32> to vector<16x32xf32>
    %272 = arith.mulf %270, %271 : vector<16x32xf32>
    %273 = vector.broadcast %252 : vector<1x32xf32> to vector<16x32xf32>
    %274 = arith.addf %272, %273 : vector<16x32xf32>
    %c1_126 = arith.constant 1 : index
    %c0_127 = arith.constant 0 : index
    %c0_128 = arith.constant 0 : index
    %c0_129 = arith.constant 0 : index
    %275 = vector.load %arg4[%c1_126, %c0_127, %c0_128, %c0_129] : memref<2x2x32x96xf32, #tpu.memory_space<vmem>>, vector<1x1x32x96xf32>
    %276 = vector.shape_cast %275 : vector<1x1x32x96xf32> to vector<32x96xf32>
    %cst_130 = arith.constant dense<0.000000e+00> : vector<16x96xf32>
    %277 = tpu.matmul %274, %276, %cst_130 {dimension_numbers = #tpu.dot_dimension_numbers<[1], [0], [0], [1], [0, 0, 1, 1], [], []>} : vector<16x32xf32>, vector<32x96xf32>, vector<16x96xf32> -> vector<16x96xf32>
    %c1_131 = arith.constant 1 : index
    %c0_132 = arith.constant 0 : index
    %c0_133 = arith.constant 0 : index
    %c0_134 = arith.constant 0 : index
    %278 = vector.load %arg5[%c1_131, %c0_132, %c0_133, %c0_134] : memref<2x2x1x96xf32, #tpu.memory_space<vmem>>, vector<1x1x1x96xf32>
    %279 = vector.shape_cast %278 : vector<1x1x1x96xf32> to vector<1x96xf32>
    %280 = vector.broadcast %279 : vector<1x96xf32> to vector<16x96xf32>
    %281 = arith.addf %277, %280 : vector<16x96xf32>
    %282 = vector.extract_strided_slice %281 {offsets = [0, 0], sizes = [16, 32], strides = [1, 1]} : vector<16x96xf32> to vector<16x32xf32>
    %283 = vector.extract_strided_slice %281 {offsets = [0, 32], sizes = [16, 32], strides = [1, 1]} : vector<16x96xf32> to vector<16x32xf32>
    %284 = vector.extract_strided_slice %281 {offsets = [0, 64], sizes = [16, 32], strides = [1, 1]} : vector<16x96xf32> to vector<16x32xf32>
    %c1_135 = arith.constant 1 : index
    %c0_136 = arith.constant 0 : index
    %c0_137 = arith.constant 0 : index
    %c0_138 = arith.constant 0 : index
    %285 = vector.load %arg6[%c1_135, %c0_136, %c0_137, %c0_138] : memref<2x2x32x32xf32, #tpu.memory_space<vmem>>, vector<1x1x32x32xf32>
    %286 = vector.shape_cast %285 : vector<1x1x32x32xf32> to vector<32x32xf32>
    %c1_139 = arith.constant 1 : index
    %c0_140 = arith.constant 0 : index
    %c0_141 = arith.constant 0 : index
    %c0_142 = arith.constant 0 : index
    %287 = vector.load %arg7[%c1_139, %c0_140, %c0_141, %c0_142] : memref<2x2x1x32xf32, #tpu.memory_space<vmem>>, vector<1x1x1x32xf32>
    %288 = vector.shape_cast %287 : vector<1x1x1x32xf32> to vector<1x32xf32>
    %289 = vector.extract_strided_slice %282 {offsets = [0, 0], sizes = [16, 8], strides = [1, 1]} : vector<16x32xf32> to vector<16x8xf32>
    %290 = vector.shape_cast %289 : vector<16x8xf32> to vector<2x8x8xf32>
    %291 = vector.extract_strided_slice %282 {offsets = [0, 8], sizes = [16, 8], strides = [1, 1]} : vector<16x32xf32> to vector<16x8xf32>
    %292 = vector.shape_cast %291 : vector<16x8xf32> to vector<2x8x8xf32>
    %293 = vector.extract_strided_slice %282 {offsets = [0, 16], sizes = [16, 8], strides = [1, 1]} : vector<16x32xf32> to vector<16x8xf32>
    %294 = vector.shape_cast %293 : vector<16x8xf32> to vector<2x8x8xf32>
    %295 = vector.extract_strided_slice %282 {offsets = [0, 24], sizes = [16, 8], strides = [1, 1]} : vector<16x32xf32> to vector<16x8xf32>
    %296 = vector.shape_cast %295 : vector<16x8xf32> to vector<2x8x8xf32>
    %297 = tpu.concatenate %290, %292, %294, %296 in 0 : vector<2x8x8xf32>, vector<2x8x8xf32>, vector<2x8x8xf32>, vector<2x8x8xf32> -> vector<8x8x8xf32>
    %298 = vector.extract_strided_slice %283 {offsets = [0, 0], sizes = [16, 8], strides = [1, 1]} : vector<16x32xf32> to vector<16x8xf32>
    %299 = vector.shape_cast %298 : vector<16x8xf32> to vector<2x8x8xf32>
    %300 = vector.extract_strided_slice %283 {offsets = [0, 8], sizes = [16, 8], strides = [1, 1]} : vector<16x32xf32> to vector<16x8xf32>
    %301 = vector.shape_cast %300 : vector<16x8xf32> to vector<2x8x8xf32>
    %302 = vector.extract_strided_slice %283 {offsets = [0, 16], sizes = [16, 8], strides = [1, 1]} : vector<16x32xf32> to vector<16x8xf32>
    %303 = vector.shape_cast %302 : vector<16x8xf32> to vector<2x8x8xf32>
    %304 = vector.extract_strided_slice %283 {offsets = [0, 24], sizes = [16, 8], strides = [1, 1]} : vector<16x32xf32> to vector<16x8xf32>
    %305 = vector.shape_cast %304 : vector<16x8xf32> to vector<2x8x8xf32>
    %306 = tpu.concatenate %299, %301, %303, %305 in 0 : vector<2x8x8xf32>, vector<2x8x8xf32>, vector<2x8x8xf32>, vector<2x8x8xf32> -> vector<8x8x8xf32>
    %307 = vector.extract_strided_slice %284 {offsets = [0, 0], sizes = [16, 8], strides = [1, 1]} : vector<16x32xf32> to vector<16x8xf32>
    %308 = vector.shape_cast %307 : vector<16x8xf32> to vector<2x8x8xf32>
    %309 = vector.extract_strided_slice %284 {offsets = [0, 8], sizes = [16, 8], strides = [1, 1]} : vector<16x32xf32> to vector<16x8xf32>
    %310 = vector.shape_cast %309 : vector<16x8xf32> to vector<2x8x8xf32>
    %311 = vector.extract_strided_slice %284 {offsets = [0, 16], sizes = [16, 8], strides = [1, 1]} : vector<16x32xf32> to vector<16x8xf32>
    %312 = vector.shape_cast %311 : vector<16x8xf32> to vector<2x8x8xf32>
    %313 = vector.extract_strided_slice %284 {offsets = [0, 24], sizes = [16, 8], strides = [1, 1]} : vector<16x32xf32> to vector<16x8xf32>
    %314 = vector.shape_cast %313 : vector<16x8xf32> to vector<2x8x8xf32>
    %315 = tpu.concatenate %308, %310, %312, %314 in 0 : vector<2x8x8xf32>, vector<2x8x8xf32>, vector<2x8x8xf32>, vector<2x8x8xf32> -> vector<8x8x8xf32>
    "tpu.trace_start"() <{level = 10 : i32, message = "bqd,bkd->bqk"}> : () -> ()
    %cst_143 = arith.constant dense<0.000000e+00> : vector<8x8x8xf32>
    %316 = tpu.matmul %297, %306, %cst_143 {dimension_numbers = #tpu.dot_dimension_numbers<[2], [2], [1], [1], [0, 0, 0, 1, 1, 1], [0], [0]>} : vector<8x8x8xf32>, vector<8x8x8xf32>, vector<8x8x8xf32> -> vector<8x8x8xf32>
    "tpu.trace_stop"() : () -> ()
    %cst_144 = arith.constant dense<0xFF800000> : vector<8x8xf32>
    %317 = vector.multi_reduction <maximumf>, %316, %cst_144 [2] : vector<8x8x8xf32> to vector<8x8xf32>
    %318 = vector.shape_cast %317 : vector<8x8xf32> to vector<8x8x1xf32>
    %319 = vector.broadcast %318 : vector<8x8x1xf32> to vector<8x8x8xf32>
    %320 = arith.subf %316, %319 : vector<8x8x8xf32>
    %321 = math.exp %320 : vector<8x8x8xf32>
    %cst_145 = arith.constant dense<0.000000e+00> : vector<8x8xf32>
    %322 = vector.multi_reduction <add>, %321, %cst_145 [2] : vector<8x8x8xf32> to vector<8x8xf32>
    %323 = vector.shape_cast %322 : vector<8x8xf32> to vector<8x8x1xf32>
    %324 = vector.broadcast %323 : vector<8x8x1xf32> to vector<8x8x8xf32>
    %325 = arith.divf %321, %324 : vector<8x8x8xf32>
    "tpu.trace_start"() <{level = 10 : i32, message = "bqk,bkd->bqd"}> : () -> ()
    %cst_146 = arith.constant dense<0.000000e+00> : vector<8x8x8xf32>
    %326 = tpu.matmul %325, %315, %cst_146 {dimension_numbers = #tpu.dot_dimension_numbers<[2], [1], [1], [2], [0, 0, 0, 1, 1, 2], [0], [0]>} : vector<8x8x8xf32>, vector<8x8x8xf32>, vector<8x8x8xf32> -> vector<8x8x8xf32>
    "tpu.trace_stop"() : () -> ()
    %327 = vector.extract_strided_slice %326 {offsets = [0, 0, 0], sizes = [2, 8, 8], strides = [1, 1, 1]} : vector<8x8x8xf32> to vector<2x8x8xf32>
    %328 = vector.shape_cast %327 : vector<2x8x8xf32> to vector<16x8xf32>
    %329 = vector.extract_strided_slice %326 {offsets = [2, 0, 0], sizes = [2, 8, 8], strides = [1, 1, 1]} : vector<8x8x8xf32> to vector<2x8x8xf32>
    %330 = vector.shape_cast %329 : vector<2x8x8xf32> to vector<16x8xf32>
    %331 = vector.extract_strided_slice %326 {offsets = [4, 0, 0], sizes = [2, 8, 8], strides = [1, 1, 1]} : vector<8x8x8xf32> to vector<2x8x8xf32>
    %332 = vector.shape_cast %331 : vector<2x8x8xf32> to vector<16x8xf32>
    %333 = vector.extract_strided_slice %326 {offsets = [6, 0, 0], sizes = [2, 8, 8], strides = [1, 1, 1]} : vector<8x8x8xf32> to vector<2x8x8xf32>
    %334 = vector.shape_cast %333 : vector<2x8x8xf32> to vector<16x8xf32>
    %335 = tpu.concatenate %328, %330, %332, %334 in 1 : vector<16x8xf32>, vector<16x8xf32>, vector<16x8xf32>, vector<16x8xf32> -> vector<16x32xf32>
    %cst_147 = arith.constant dense<0.000000e+00> : vector<16x32xf32>
    %336 = tpu.matmul %335, %286, %cst_147 {dimension_numbers = #tpu.dot_dimension_numbers<[1], [0], [0], [1], [0, 0, 1, 1], [], []>} : vector<16x32xf32>, vector<32x32xf32>, vector<16x32xf32> -> vector<16x32xf32>
    %337 = vector.broadcast %288 : vector<1x32xf32> to vector<16x32xf32>
    %338 = arith.addf %336, %337 : vector<16x32xf32>
    %339 = arith.addf %244, %338 : vector<16x32xf32>
    %c1_148 = arith.constant 1 : index
    %c1_149 = arith.constant 1 : index
    %c0_150 = arith.constant 0 : index
    %c0_151 = arith.constant 0 : index
    %340 = vector.load %arg2[%c1_148, %c1_149, %c0_150, %c0_151] : memref<2x3x1x32xf32, #tpu.memory_space<vmem>>, vector<1x1x1x32xf32>
    %341 = vector.shape_cast %340 : vector<1x1x1x32xf32> to vector<1x32xf32>
    %c1_152 = arith.constant 1 : index
    %c1_153 = arith.constant 1 : index
    %c0_154 = arith.constant 0 : index
    %c0_155 = arith.constant 0 : index
    %342 = vector.load %arg3[%c1_152, %c1_153, %c0_154, %c0_155] : memref<2x3x1x32xf32, #tpu.memory_space<vmem>>, vector<1x1x1x32xf32>
    %343 = vector.shape_cast %342 : vector<1x1x1x32xf32> to vector<1x32xf32>
    %cst_156 = arith.constant dense<0.000000e+00> : vector<16xf32>
    %344 = vector.multi_reduction <add>, %339, %cst_156 [1] : vector<16x32xf32> to vector<16xf32>
    %345 = vector.shape_cast %344 : vector<16xf32> to vector<16x1xf32>
    %cst_157 = arith.constant 3.200000e+01 : f32
    %346 = vector.broadcast %cst_157 : f32 to vector<16x1xf32>
    %347 = arith.divf %345, %346 : vector<16x1xf32>
    %348 = vector.broadcast %347 : vector<16x1xf32> to vector<16x32xf32>
    %349 = arith.subf %339, %348 : vector<16x32xf32>
    %350 = arith.mulf %349, %349 : vector<16x32xf32>
    %cst_158 = arith.constant dense<0.000000e+00> : vector<16xf32>
    %351 = vector.multi_reduction <add>, %350, %cst_158 [1] : vector<16x32xf32> to vector<16xf32>
    %352 = vector.shape_cast %351 : vector<16xf32> to vector<16x1xf32>
    %cst_159 = arith.constant 3.200000e+01 : f32
    %353 = vector.broadcast %cst_159 : f32 to vector<16x1xf32>
    %354 = arith.divf %352, %353 : vector<16x1xf32>
    %355 = vector.broadcast %347 : vector<16x1xf32> to vector<16x32xf32>
    %356 = arith.subf %339, %355 : vector<16x32xf32>
    %cst_160 = arith.constant 9.99999974E-6 : f32
    %357 = vector.broadcast %cst_160 : f32 to vector<16x1xf32>
    %358 = arith.addf %354, %357 : vector<16x1xf32>
    %359 = math.rsqrt %358 : vector<16x1xf32>
    %360 = vector.broadcast %359 : vector<16x1xf32> to vector<16x32xf32>
    %361 = arith.mulf %356, %360 : vector<16x32xf32>
    %362 = vector.broadcast %341 : vector<1x32xf32> to vector<16x32xf32>
    %363 = arith.mulf %361, %362 : vector<16x32xf32>
    %364 = vector.broadcast %343 : vector<1x32xf32> to vector<16x32xf32>
    %365 = arith.addf %363, %364 : vector<16x32xf32>
    %c1_161 = arith.constant 1 : index
    %c1_162 = arith.constant 1 : index
    %c0_163 = arith.constant 0 : index
    %c0_164 = arith.constant 0 : index
    %366 = vector.load %arg4[%c1_161, %c1_162, %c0_163, %c0_164] : memref<2x2x32x96xf32, #tpu.memory_space<vmem>>, vector<1x1x32x96xf32>
    %367 = vector.shape_cast %366 : vector<1x1x32x96xf32> to vector<32x96xf32>
    %cst_165 = arith.constant dense<0.000000e+00> : vector<16x96xf32>
    %368 = tpu.matmul %365, %367, %cst_165 {dimension_numbers = #tpu.dot_dimension_numbers<[1], [0], [0], [1], [0, 0, 1, 1], [], []>} : vector<16x32xf32>, vector<32x96xf32>, vector<16x96xf32> -> vector<16x96xf32>
    %c1_166 = arith.constant 1 : index
    %c1_167 = arith.constant 1 : index
    %c0_168 = arith.constant 0 : index
    %c0_169 = arith.constant 0 : index
    %369 = vector.load %arg5[%c1_166, %c1_167, %c0_168, %c0_169] : memref<2x2x1x96xf32, #tpu.memory_space<vmem>>, vector<1x1x1x96xf32>
    %370 = vector.shape_cast %369 : vector<1x1x1x96xf32> to vector<1x96xf32>
    %371 = vector.broadcast %370 : vector<1x96xf32> to vector<16x96xf32>
    %372 = arith.addf %368, %371 : vector<16x96xf32>
    %373 = vector.extract_strided_slice %372 {offsets = [0, 0], sizes = [16, 32], strides = [1, 1]} : vector<16x96xf32> to vector<16x32xf32>
    %c1_170 = arith.constant 1 : index
    %c1_171 = arith.constant 1 : index
    %c0_172 = arith.constant 0 : index
    %c0_173 = arith.constant 0 : index
    %374 = vector.load %arg4[%c1_170, %c1_171, %c0_172, %c0_173] : memref<2x2x32x96xf32, #tpu.memory_space<vmem>>, vector<1x1x32x96xf32>
    %375 = vector.shape_cast %374 : vector<1x1x32x96xf32> to vector<32x96xf32>
    %cst_174 = arith.constant dense<0.000000e+00> : vector<16x96xf32>
    %376 = tpu.matmul %1, %375, %cst_174 {dimension_numbers = #tpu.dot_dimension_numbers<[1], [0], [0], [1], [0, 0, 1, 1], [], []>} : vector<16x32xf32>, vector<32x96xf32>, vector<16x96xf32> -> vector<16x96xf32>
    %c1_175 = arith.constant 1 : index
    %c1_176 = arith.constant 1 : index
    %c0_177 = arith.constant 0 : index
    %c0_178 = arith.constant 0 : index
    %377 = vector.load %arg5[%c1_175, %c1_176, %c0_177, %c0_178] : memref<2x2x1x96xf32, #tpu.memory_space<vmem>>, vector<1x1x1x96xf32>
    %378 = vector.shape_cast %377 : vector<1x1x1x96xf32> to vector<1x96xf32>
    %379 = vector.broadcast %378 : vector<1x96xf32> to vector<16x96xf32>
    %380 = arith.addf %376, %379 : vector<16x96xf32>
    %381 = vector.extract_strided_slice %380 {offsets = [0, 32], sizes = [16, 32], strides = [1, 1]} : vector<16x96xf32> to vector<16x32xf32>
    %382 = vector.extract_strided_slice %380 {offsets = [0, 64], sizes = [16, 32], strides = [1, 1]} : vector<16x96xf32> to vector<16x32xf32>
    %c1_179 = arith.constant 1 : index
    %c1_180 = arith.constant 1 : index
    %c0_181 = arith.constant 0 : index
    %c0_182 = arith.constant 0 : index
    %383 = vector.load %arg6[%c1_179, %c1_180, %c0_181, %c0_182] : memref<2x2x32x32xf32, #tpu.memory_space<vmem>>, vector<1x1x32x32xf32>
    %384 = vector.shape_cast %383 : vector<1x1x32x32xf32> to vector<32x32xf32>
    %c1_183 = arith.constant 1 : index
    %c1_184 = arith.constant 1 : index
    %c0_185 = arith.constant 0 : index
    %c0_186 = arith.constant 0 : index
    %385 = vector.load %arg7[%c1_183, %c1_184, %c0_185, %c0_186] : memref<2x2x1x32xf32, #tpu.memory_space<vmem>>, vector<1x1x1x32xf32>
    %386 = vector.shape_cast %385 : vector<1x1x1x32xf32> to vector<1x32xf32>
    %387 = vector.extract_strided_slice %373 {offsets = [0, 0], sizes = [16, 8], strides = [1, 1]} : vector<16x32xf32> to vector<16x8xf32>
    %388 = vector.shape_cast %387 : vector<16x8xf32> to vector<2x8x8xf32>
    %389 = vector.extract_strided_slice %373 {offsets = [0, 8], sizes = [16, 8], strides = [1, 1]} : vector<16x32xf32> to vector<16x8xf32>
    %390 = vector.shape_cast %389 : vector<16x8xf32> to vector<2x8x8xf32>
    %391 = vector.extract_strided_slice %373 {offsets = [0, 16], sizes = [16, 8], strides = [1, 1]} : vector<16x32xf32> to vector<16x8xf32>
    %392 = vector.shape_cast %391 : vector<16x8xf32> to vector<2x8x8xf32>
    %393 = vector.extract_strided_slice %373 {offsets = [0, 24], sizes = [16, 8], strides = [1, 1]} : vector<16x32xf32> to vector<16x8xf32>
    %394 = vector.shape_cast %393 : vector<16x8xf32> to vector<2x8x8xf32>
    %395 = tpu.concatenate %388, %390, %392, %394 in 0 : vector<2x8x8xf32>, vector<2x8x8xf32>, vector<2x8x8xf32>, vector<2x8x8xf32> -> vector<8x8x8xf32>
    %396 = vector.extract_strided_slice %381 {offsets = [0, 0], sizes = [16, 8], strides = [1, 1]} : vector<16x32xf32> to vector<16x8xf32>
    %397 = vector.shape_cast %396 : vector<16x8xf32> to vector<2x8x8xf32>
    %398 = vector.extract_strided_slice %381 {offsets = [0, 8], sizes = [16, 8], strides = [1, 1]} : vector<16x32xf32> to vector<16x8xf32>
    %399 = vector.shape_cast %398 : vector<16x8xf32> to vector<2x8x8xf32>
    %400 = vector.extract_strided_slice %381 {offsets = [0, 16], sizes = [16, 8], strides = [1, 1]} : vector<16x32xf32> to vector<16x8xf32>
    %401 = vector.shape_cast %400 : vector<16x8xf32> to vector<2x8x8xf32>
    %402 = vector.extract_strided_slice %381 {offsets = [0, 24], sizes = [16, 8], strides = [1, 1]} : vector<16x32xf32> to vector<16x8xf32>
    %403 = vector.shape_cast %402 : vector<16x8xf32> to vector<2x8x8xf32>
    %404 = tpu.concatenate %397, %399, %401, %403 in 0 : vector<2x8x8xf32>, vector<2x8x8xf32>, vector<2x8x8xf32>, vector<2x8x8xf32> -> vector<8x8x8xf32>
    %405 = vector.extract_strided_slice %382 {offsets = [0, 0], sizes = [16, 8], strides = [1, 1]} : vector<16x32xf32> to vector<16x8xf32>
    %406 = vector.shape_cast %405 : vector<16x8xf32> to vector<2x8x8xf32>
    %407 = vector.extract_strided_slice %382 {offsets = [0, 8], sizes = [16, 8], strides = [1, 1]} : vector<16x32xf32> to vector<16x8xf32>
    %408 = vector.shape_cast %407 : vector<16x8xf32> to vector<2x8x8xf32>
    %409 = vector.extract_strided_slice %382 {offsets = [0, 16], sizes = [16, 8], strides = [1, 1]} : vector<16x32xf32> to vector<16x8xf32>
    %410 = vector.shape_cast %409 : vector<16x8xf32> to vector<2x8x8xf32>
    %411 = vector.extract_strided_slice %382 {offsets = [0, 24], sizes = [16, 8], strides = [1, 1]} : vector<16x32xf32> to vector<16x8xf32>
    %412 = vector.shape_cast %411 : vector<16x8xf32> to vector<2x8x8xf32>
    %413 = tpu.concatenate %406, %408, %410, %412 in 0 : vector<2x8x8xf32>, vector<2x8x8xf32>, vector<2x8x8xf32>, vector<2x8x8xf32> -> vector<8x8x8xf32>
    "tpu.trace_start"() <{level = 10 : i32, message = "bqd,bkd->bqk"}> : () -> ()
    %cst_187 = arith.constant dense<0.000000e+00> : vector<8x8x8xf32>
    %414 = tpu.matmul %395, %404, %cst_187 {dimension_numbers = #tpu.dot_dimension_numbers<[2], [2], [1], [1], [0, 0, 0, 1, 1, 1], [0], [0]>} : vector<8x8x8xf32>, vector<8x8x8xf32>, vector<8x8x8xf32> -> vector<8x8x8xf32>
    "tpu.trace_stop"() : () -> ()
    %cst_188 = arith.constant dense<0xFF800000> : vector<8x8xf32>
    %415 = vector.multi_reduction <maximumf>, %414, %cst_188 [2] : vector<8x8x8xf32> to vector<8x8xf32>
    %416 = vector.shape_cast %415 : vector<8x8xf32> to vector<8x8x1xf32>
    %417 = vector.broadcast %416 : vector<8x8x1xf32> to vector<8x8x8xf32>
    %418 = arith.subf %414, %417 : vector<8x8x8xf32>
    %419 = math.exp %418 : vector<8x8x8xf32>
    %cst_189 = arith.constant dense<0.000000e+00> : vector<8x8xf32>
    %420 = vector.multi_reduction <add>, %419, %cst_189 [2] : vector<8x8x8xf32> to vector<8x8xf32>
    %421 = vector.shape_cast %420 : vector<8x8xf32> to vector<8x8x1xf32>
    %422 = vector.broadcast %421 : vector<8x8x1xf32> to vector<8x8x8xf32>
    %423 = arith.divf %419, %422 : vector<8x8x8xf32>
    "tpu.trace_start"() <{level = 10 : i32, message = "bqk,bkd->bqd"}> : () -> ()
    %cst_190 = arith.constant dense<0.000000e+00> : vector<8x8x8xf32>
    %424 = tpu.matmul %423, %413, %cst_190 {dimension_numbers = #tpu.dot_dimension_numbers<[2], [1], [1], [2], [0, 0, 0, 1, 1, 2], [0], [0]>} : vector<8x8x8xf32>, vector<8x8x8xf32>, vector<8x8x8xf32> -> vector<8x8x8xf32>
    "tpu.trace_stop"() : () -> ()
    %425 = vector.extract_strided_slice %424 {offsets = [0, 0, 0], sizes = [2, 8, 8], strides = [1, 1, 1]} : vector<8x8x8xf32> to vector<2x8x8xf32>
    %426 = vector.shape_cast %425 : vector<2x8x8xf32> to vector<16x8xf32>
    %427 = vector.extract_strided_slice %424 {offsets = [2, 0, 0], sizes = [2, 8, 8], strides = [1, 1, 1]} : vector<8x8x8xf32> to vector<2x8x8xf32>
    %428 = vector.shape_cast %427 : vector<2x8x8xf32> to vector<16x8xf32>
    %429 = vector.extract_strided_slice %424 {offsets = [4, 0, 0], sizes = [2, 8, 8], strides = [1, 1, 1]} : vector<8x8x8xf32> to vector<2x8x8xf32>
    %430 = vector.shape_cast %429 : vector<2x8x8xf32> to vector<16x8xf32>
    %431 = vector.extract_strided_slice %424 {offsets = [6, 0, 0], sizes = [2, 8, 8], strides = [1, 1, 1]} : vector<8x8x8xf32> to vector<2x8x8xf32>
    %432 = vector.shape_cast %431 : vector<2x8x8xf32> to vector<16x8xf32>
    %433 = tpu.concatenate %426, %428, %430, %432 in 1 : vector<16x8xf32>, vector<16x8xf32>, vector<16x8xf32>, vector<16x8xf32> -> vector<16x32xf32>
    %cst_191 = arith.constant dense<0.000000e+00> : vector<16x32xf32>
    %434 = tpu.matmul %433, %384, %cst_191 {dimension_numbers = #tpu.dot_dimension_numbers<[1], [0], [0], [1], [0, 0, 1, 1], [], []>} : vector<16x32xf32>, vector<32x32xf32>, vector<16x32xf32> -> vector<16x32xf32>
    %435 = vector.broadcast %386 : vector<1x32xf32> to vector<16x32xf32>
    %436 = arith.addf %434, %435 : vector<16x32xf32>
    %437 = arith.addf %339, %436 : vector<16x32xf32>
    %c1_192 = arith.constant 1 : index
    %c2_193 = arith.constant 2 : index
    %c0_194 = arith.constant 0 : index
    %c0_195 = arith.constant 0 : index
    %438 = vector.load %arg2[%c1_192, %c2_193, %c0_194, %c0_195] : memref<2x3x1x32xf32, #tpu.memory_space<vmem>>, vector<1x1x1x32xf32>
    %439 = vector.shape_cast %438 : vector<1x1x1x32xf32> to vector<1x32xf32>
    %c1_196 = arith.constant 1 : index
    %c2_197 = arith.constant 2 : index
    %c0_198 = arith.constant 0 : index
    %c0_199 = arith.constant 0 : index
    %440 = vector.load %arg3[%c1_196, %c2_197, %c0_198, %c0_199] : memref<2x3x1x32xf32, #tpu.memory_space<vmem>>, vector<1x1x1x32xf32>
    %441 = vector.shape_cast %440 : vector<1x1x1x32xf32> to vector<1x32xf32>
    %cst_200 = arith.constant dense<0.000000e+00> : vector<16xf32>
    %442 = vector.multi_reduction <add>, %437, %cst_200 [1] : vector<16x32xf32> to vector<16xf32>
    %443 = vector.shape_cast %442 : vector<16xf32> to vector<16x1xf32>
    %cst_201 = arith.constant 3.200000e+01 : f32
    %444 = vector.broadcast %cst_201 : f32 to vector<16x1xf32>
    %445 = arith.divf %443, %444 : vector<16x1xf32>
    %446 = vector.broadcast %445 : vector<16x1xf32> to vector<16x32xf32>
    %447 = arith.subf %437, %446 : vector<16x32xf32>
    %448 = arith.mulf %447, %447 : vector<16x32xf32>
    %cst_202 = arith.constant dense<0.000000e+00> : vector<16xf32>
    %449 = vector.multi_reduction <add>, %448, %cst_202 [1] : vector<16x32xf32> to vector<16xf32>
    %450 = vector.shape_cast %449 : vector<16xf32> to vector<16x1xf32>
    %cst_203 = arith.constant 3.200000e+01 : f32
    %451 = vector.broadcast %cst_203 : f32 to vector<16x1xf32>
    %452 = arith.divf %450, %451 : vector<16x1xf32>
    %453 = vector.broadcast %445 : vector<16x1xf32> to vector<16x32xf32>
    %454 = arith.subf %437, %453 : vector<16x32xf32>
    %cst_204 = arith.constant 9.99999974E-6 : f32
    %455 = vector.broadcast %cst_204 : f32 to vector<16x1xf32>
    %456 = arith.addf %452, %455 : vector<16x1xf32>
    %457 = math.rsqrt %456 : vector<16x1xf32>
    %458 = vector.broadcast %457 : vector<16x1xf32> to vector<16x32xf32>
    %459 = arith.mulf %454, %458 : vector<16x32xf32>
    %460 = vector.broadcast %439 : vector<1x32xf32> to vector<16x32xf32>
    %461 = arith.mulf %459, %460 : vector<16x32xf32>
    %462 = vector.broadcast %441 : vector<1x32xf32> to vector<16x32xf32>
    %463 = arith.addf %461, %462 : vector<16x32xf32>
    %c1_205 = arith.constant 1 : index
    %c0_206 = arith.constant 0 : index
    %c0_207 = arith.constant 0 : index
    %464 = vector.load %arg8[%c1_205, %c0_206, %c0_207] : memref<2x32x128xf32, #tpu.memory_space<vmem>>, vector<1x32x128xf32>
    %465 = vector.shape_cast %464 : vector<1x32x128xf32> to vector<32x128xf32>
    %cst_208 = arith.constant dense<0.000000e+00> : vector<16x128xf32>
    %466 = tpu.matmul %463, %465, %cst_208 {dimension_numbers = #tpu.dot_dimension_numbers<[1], [0], [0], [1], [0, 0, 1, 1], [], []>} : vector<16x32xf32>, vector<32x128xf32>, vector<16x128xf32> -> vector<16x128xf32>
    %c1_209 = arith.constant 1 : index
    %c0_210 = arith.constant 0 : index
    %c0_211 = arith.constant 0 : index
    %467 = vector.load %arg9[%c1_209, %c0_210, %c0_211] : memref<2x1x128xf32, #tpu.memory_space<vmem>>, vector<1x1x128xf32>
    %468 = vector.shape_cast %467 : vector<1x1x128xf32> to vector<1x128xf32>
    %469 = vector.broadcast %468 : vector<1x128xf32> to vector<16x128xf32>
    %470 = arith.addf %466, %469 : vector<16x128xf32>
    %471 = arith.mulf %470, %470 : vector<16x128xf32>
    %472 = arith.mulf %470, %471 : vector<16x128xf32>
    %cst_212 = arith.constant 4.471500e-02 : f32
    %473 = vector.broadcast %cst_212 : f32 to vector<16x128xf32>
    %474 = arith.mulf %473, %472 : vector<16x128xf32>
    %475 = arith.addf %470, %474 : vector<16x128xf32>
    %cst_213 = arith.constant 0.797884583 : f32
    %476 = vector.broadcast %cst_213 : f32 to vector<16x128xf32>
    %477 = arith.mulf %476, %475 : vector<16x128xf32>
    %478 = math.tanh %477 : vector<16x128xf32>
    %cst_214 = arith.constant 1.000000e+00 : f32
    %479 = vector.broadcast %cst_214 : f32 to vector<16x128xf32>
    %480 = arith.addf %479, %478 : vector<16x128xf32>
    %cst_215 = arith.constant 5.000000e-01 : f32
    %481 = vector.broadcast %cst_215 : f32 to vector<16x128xf32>
    %482 = arith.mulf %481, %480 : vector<16x128xf32>
    %483 = arith.mulf %470, %482 : vector<16x128xf32>
    %c1_216 = arith.constant 1 : index
    %c0_217 = arith.constant 0 : index
    %c0_218 = arith.constant 0 : index
    %484 = vector.load %arg10[%c1_216, %c0_217, %c0_218] : memref<2x128x32xf32, #tpu.memory_space<vmem>>, vector<1x128x32xf32>
    %485 = vector.shape_cast %484 : vector<1x128x32xf32> to vector<128x32xf32>
    %cst_219 = arith.constant dense<0.000000e+00> : vector<16x32xf32>
    %486 = tpu.matmul %483, %485, %cst_219 {dimension_numbers = #tpu.dot_dimension_numbers<[1], [0], [0], [1], [0, 0, 1, 1], [], []>} : vector<16x128xf32>, vector<128x32xf32>, vector<16x32xf32> -> vector<16x32xf32>
    %c1_220 = arith.constant 1 : index
    %c0_221 = arith.constant 0 : index
    %c0_222 = arith.constant 0 : index
    %487 = vector.load %arg11[%c1_220, %c0_221, %c0_222] : memref<2x1x32xf32, #tpu.memory_space<vmem>>, vector<1x1x32xf32>
    %488 = vector.shape_cast %487 : vector<1x1x32xf32> to vector<1x32xf32>
    %489 = vector.broadcast %488 : vector<1x32xf32> to vector<16x32xf32>
    %490 = arith.addf %486, %489 : vector<16x32xf32>
    %491 = arith.addf %437, %490 : vector<16x32xf32>
    %492 = tpu.concatenate %283, %284, %381, %382 in 1 : vector<16x32xf32>, vector<16x32xf32>, vector<16x32xf32>, vector<16x32xf32> -> vector<16x128xf32>
    %c1_223 = arith.constant 1 : index
    %c0_224 = arith.constant 0 : index
    %c0_225 = arith.constant 0 : index
    %493 = vector.load %arg15[%c1_223, %c0_224, %c0_225] : memref<2x16x128xf32, #tpu.memory_space<vmem>>, vector<1x16x128xf32>
    %494 = vector.shape_cast %493 : vector<1x16x128xf32> to vector<16x128xf32>
    %495 = vector.shape_cast %492 : vector<16x128xf32> to vector<1x16x128xf32>
    tpu.vector_store %arg15[%c1_223, %c0_224, %c0_225], %495 {strides = array<i32>} : memref<2x16x128xf32, #tpu.memory_space<vmem>>, vector<1x16x128xf32>,
    %c0_226 = arith.constant 0 : index
    %c0_227 = arith.constant 0 : index
    %496 = vector.load %arg12[%c0_226, %c0_227] : memref<1x32xf32, #tpu.memory_space<vmem>>, vector<1x32xf32>
    %c0_228 = arith.constant 0 : index
    %c0_229 = arith.constant 0 : index
    %497 = vector.load %arg13[%c0_228, %c0_229] : memref<1x32xf32, #tpu.memory_space<vmem>>, vector<1x32xf32>
    %cst_230 = arith.constant dense<0.000000e+00> : vector<16xf32>
    %498 = vector.multi_reduction <add>, %491, %cst_230 [1] : vector<16x32xf32> to vector<16xf32>
    %499 = vector.shape_cast %498 : vector<16xf32> to vector<16x1xf32>
    %cst_231 = arith.constant 3.200000e+01 : f32
    %500 = vector.broadcast %cst_231 : f32 to vector<16x1xf32>
    %501 = arith.divf %499, %500 : vector<16x1xf32>
    %502 = vector.broadcast %501 : vector<16x1xf32> to vector<16x32xf32>
    %503 = arith.subf %491, %502 : vector<16x32xf32>
    %504 = arith.mulf %503, %503 : vector<16x32xf32>
    %cst_232 = arith.constant dense<0.000000e+00> : vector<16xf32>
    %505 = vector.multi_reduction <add>, %504, %cst_232 [1] : vector<16x32xf32> to vector<16xf32>
    %506 = vector.shape_cast %505 : vector<16xf32> to vector<16x1xf32>
    %cst_233 = arith.constant 3.200000e+01 : f32
    %507 = vector.broadcast %cst_233 : f32 to vector<16x1xf32>
    %508 = arith.divf %506, %507 : vector<16x1xf32>
    %509 = vector.broadcast %501 : vector<16x1xf32> to vector<16x32xf32>
    %510 = arith.subf %491, %509 : vector<16x32xf32>
    %cst_234 = arith.constant 9.99999974E-6 : f32
    %511 = vector.broadcast %cst_234 : f32 to vector<16x1xf32>
    %512 = arith.addf %508, %511 : vector<16x1xf32>
    %513 = math.rsqrt %512 : vector<16x1xf32>
    %514 = vector.broadcast %513 : vector<16x1xf32> to vector<16x32xf32>
    %515 = arith.mulf %510, %514 : vector<16x32xf32>
    %516 = vector.broadcast %496 : vector<1x32xf32> to vector<16x32xf32>
    %517 = arith.mulf %515, %516 : vector<16x32xf32>
    %518 = vector.broadcast %497 : vector<1x32xf32> to vector<16x32xf32>
    %519 = arith.addf %517, %518 : vector<16x32xf32>
    %c0_235 = arith.constant 0 : index
    %c0_236 = arith.constant 0 : index
    %520 = vector.load %arg14[%c0_235, %c0_236] : memref<16x32xf32, #tpu.memory_space<vmem>>, vector<16x32xf32>
    tpu.vector_store %arg14[%c0_235, %c0_236], %519 {strides = array<i32>} : memref<16x32xf32, #tpu.memory_space<vmem>>, vector<16x32xf32>,
    return
  }
}

</mosaic_0001>

<bundles_post_ra>
// kernel: transformer_forward.1
= control target key start
LH: loop header
LB: loop body
LE: loop exit
PB: predicated region body
PF: predicated region fallthrough
CT: control target
= control target key end

     0   :  { %21 = vsyncpa [#allocation3], 0  ;;  %s9954_s0 = inlined_call_operand.hbm [shape: f32[16,32], index: 0, kind: input, shape index: {}]   ;;  %s9955_s1 = inlined_call_operand.hbm [shape: f32[16,32], index: 1, kind: input, shape index: {}]   ;;  %s9956_s2 = inlined_call_operand.vmem [shape: f32[2,3,1,32], index: 2, kind: input, shape index: {}]   ;;  %s9957_s3 = inlined_call_operand.vmem [shape: f32[2,3,1,32], index: 3, kind: input, shape index: {}]   ;;  %s9958_s4 = inlined_call_operand.vmem [shape: f32[2,2,32,96], index: 4, kind: input, shape index: {}]   ;;  %s9959_s5 = inlined_call_operand.vmem [shape: f32[2,2,1,96], index: 5, kind: input, shape index: {}]   ;;  %s9960_s6 = inlined_call_operand.vmem [shape: f32[2,2,32,32], index: 6, kind: input, shape index: {}]   ;;  %s9961_s7 = inlined_call_operand.hbm [shape: f32[2,2,1,32], index: 7, kind: input, shape index: {}]   ;;  %s9962_s8 = inlined_call_operand.vmem [shape: f32[2,32,128], index: 8, kind: input, shape index: {}]   ;;  %s9963_s9 = inlined_call_operand.vmem [shape: f32[2,1,128], index: 9, kind: input, shape index: {}]   ;;  %s9964_s10 = inlined_call_operand.vmem [shape: f32[2,128,32], index: 10, kind: input, shape index: {}]   ;;  %s9965_s11 = inlined_call_operand.vmem [shape: f32[2,1,32], index: 11, kind: input, shape index: {}]   ;;  %s9966_s12 = inlined_call_operand.vmem [shape: f32[1,32], index: 12, kind: input, shape index: {}]   ;;  %s9967_s13 = inlined_call_operand.vmem [shape: f32[1,32], index: 13, kind: input, shape index: {}]   ;;  %s9968_s14 = inlined_call_operand.hbm [shape: f32[16,32], index: 14, kind: output, shape index: {0}]   ;;  %s9969_s15 = inlined_call_operand.vmem [shape: f32[2,16,128], index: 15, kind: output, shape index: {1}]  }
   0x1   :  { %22 = vsyncpa [#allocation6], 0 }
   0x2   :  { %23 = vsyncpa [#allocation4], 0  ;;  %s8631_s18 = smov [#allocation5]   ;;  %s8632_s20 = smov [#allocation2]  }
   0x3   :  { %s41_s19 = sshll.u32 %s8631_s18, 4  ;;  %s29_s21 = sshll.u32 %s8632_s20, 4  ;;  %s42_s19 = int_to_ptr.vmem [resolvable:$true] %s41_s19  ;;  %s8728_s21 = int_to_ptr.vmem [resolvable:$true] %s29_s21 }
   0x4   :  { %s8537_s24 = scalar_lea.hbm %s9955_s1, 256 }
   0x5   :  { %p8538_p0 = scmp.ne.s32.totalorder %s9955_s1, %s8537_s24  ;;  %p8541_p1 = scmp.lt.u32.totalorder %s8537_s24, %s9955_s1 }
   0x7   :  { %p8543_p2 = pnand %p8541_p1, %p8538_p0 }
   0x9   :  { %8546 = shalt.err (!%p8543_p2)
}
   0xa   :  { %s8547_s29 = scalar_lea.vmem %s42_s19, 256  ;;  %p8552_p4 = scmp.lt.s32.totalorder %s42_s19, %s42_s19 }
   0xb   :  { %p8548_p3 = scmp.ne.s32.totalorder %s42_s19, %s8547_s29  ;;  %p8553_p5 = scmp.lt.s32.totalorder %s8547_s29, %s8547_s29 }
   0xd   :  { %p8554_p6 = por %p8553_p5, %p8552_p4 }
   0xf   :  { %p8555_p7 = pnand %p8554_p6, %p8548_p3 }
  0x11   :  { %8558 = shalt.err (!%p8555_p7)
}
  0x12   :  { %s9970_s30 = smov 128   ;;  %s8634_s16 = smov 8  }
  0x13   :  { %47 = dma.hbm_to_vmem [thread:$0]  %s9955_s1, 256, %s42_s19, [#allocation6], %s9970_s30, %s9970_s30, %s8634_s16  }
  0x14   :  { %s8559_s23 = scalar_lea.hbm %s9954_s0, 256 }
  0x15   :  { %p8560_p8 = scmp.ne.s32.totalorder %s9954_s0, %s8559_s23  ;;  %p8563_p9 = scmp.lt.u32.totalorder %s8559_s23, %s9954_s0 }
  0x17   :  { %p8565_p10 = pnand %p8563_p9, %p8560_p8 }
  0x19   :  { %8568 = shalt.err (!%p8565_p10)
}
  0x1a   :  { %s8569_s28 = scalar_lea.vmem %s8728_s21, 256  ;;  %p8574_p12 = scmp.lt.s32.totalorder %s8728_s21, %s8728_s21 }
  0x1b   :  { %p8570_p11 = scmp.ne.s32.totalorder %s8728_s21, %s8569_s28  ;;  %p8575_p13 = scmp.lt.s32.totalorder %s8569_s28, %s8569_s28 }
  0x1d   :  { %p8576_p0 = por %p8575_p13, %p8574_p12 }
  0x1f   :  { %p8577_p1 = pnand %p8576_p0, %p8570_p11 }
  0x21   :  { %8580 = shalt.err (!%p8577_p1)
}
  0x22   :  { %35 = dma.hbm_to_vmem [thread:$0]  %s9954_s0, 256, %s8728_s21, [#allocation3], %s9970_s30, %s9970_s30, %s8634_s16  }
  0x23   :  { %s8635_s29 = smov [#allocation7]   ;;  %s8581_s22 = scalar_lea.hbm %s9961_s7, 64 }
  0x24   :  { %s63_s17 = sshll.u32 %s8635_s29, 4  ;;  %p8582_p2 = scmp.ne.s32.totalorder %s9961_s7, %s8581_s22  ;;  %s64_s17 = int_to_ptr.vmem [resolvable:$true] %s63_s17 }
  0x25   :  { %p8585_p3 = scmp.lt.u32.totalorder %s8581_s22, %s9961_s7 }
  0x27   :  { %p8587_p4 = pnand %p8585_p3, %p8582_p2 }
  0x29   :  { %8590 = shalt.err (!%p8587_p4)
}
  0x2a   :  { %s8591_s27 = scalar_lea.vmem %s64_s17, 64  ;;  %p8596_p6 = scmp.lt.s32.totalorder %s64_s17, %s64_s17 }
  0x2b   :  { %p8592_p5 = scmp.ne.s32.totalorder %s64_s17, %s8591_s27  ;;  %p8597_p7 = scmp.lt.s32.totalorder %s8591_s27, %s8591_s27 }
  0x2d   :  { %p8598_p8 = por %p8597_p7, %p8596_p6 }
  0x2f   :  { %p8599_p9 = pnand %p8598_p8, %p8592_p5 }
  0x31   :  { %8602 = shalt.err (!%p8599_p9)
}
  0x32   :  { %s8636_s0 = smov 16   ;;  %s8637_s21 = smov 1  }
  0x33   :  { %69 = dma.hbm_to_vmem [thread:$0]  %s9961_s7, 64, %s64_s17, [#allocation6], %s8636_s0, %s8636_s0, %s8637_s21  }
  0x34   :  { %8625 = dma.done.wait [#allocation3], 256  }
  0x35   :  { %8626 = vsyncadd [#allocation3], 4294967040 }
  0x36   :  { %8627 = dma.done.wait [#allocation6], 320  }
  0x37   :  { %8628 = vsyncadd [#allocation6], 4294966976  ;;  %vm97_vm0 = vcmask 261120   ;;  %v8779_v0 = vld [vmem:[#allocation2] sm:$0xff]  ;;  %v8781_v1 = vld [vmem:[#allocation2 + $0x8] sm:$0xff]  ;;  %v8638_v37 = vmov 0.0  }
  0x38   :  { %v98_v2 = vsel %vm97_vm0, %v8779_v0, 0.0  ;;  %v101_v3 = vsel %vm97_vm0, %v8781_v1, 0.0  ;;  %v141_v14 = vld [vmem:[%s9958_s4] sm:$0xff]  ;;  %v142_v15 = vld [vmem:[%s9958_s4 + $0x8] sm:$0xff]  ;;  %v143_v16 = vld [vmem:[%s9958_s4 + $0x10] sm:$0xff]  ;;  %7693 = vmatprep.subr.mxu0 %v8638_v37  ;;  %vm8639_vm1 = vmmov 0  }
  0x39   :  { %99 = vadd.xlane.f32.xlu0 %v98_v2  ;;  %v8194_v17 = vpack.c.bf16 %v142_v15, %v141_v14  ;;  %v144_v18 = vld [vmem:[%s9958_s4 + $0x18] sm:$0xff]  ;;  %v7229_v27 = vld [vmem:[%s9956_s2] ss:$0 sm:$0xff]  ;;  %7695 = vmatprep.mubr.msk.f32.mxu0 %vm8639_vm1, %v8638_v37  ;;  %s8640_s1 = smov 120   ;;  %s8641_s7 = smov 112   ;;  %vm254_vm2 = vcmask 64512  }
  0x3a   :  { %v8198_v19 = vpack.c.bf16 %v144_v18, %v143_v16  ;;  %v7230_v29 = vld [vmem:[%s9957_s3] ss:$0 sm:$0xff]  ;;  %s8642_s19 = smov 104   ;;  %s8643_s29 = smov 96   ;;  %vm1583_vm3 = vcmask 130048   ;;  %vm1586_vm4 = vcmask 195584  }
  0x3b   :  { %8195 = vmatprep.subr.bf16.mxu1 %v8194_v17  ;;  %v7231_v36 = vld [vmem:[%s9959_s5] ss:$0 sm:$0xff]  ;;  %s8644_s17 = smov 64   ;;  %s8645_s21 = smov 24   ;;  %vm3621_vm5 = vcmask 523264   ;;  %vm3624_vm6 = vcmask 785408  }
  0x3c   :  { %8197 = vmatpush3.bf16.msra.mxu1 %v8194_v17 }
  0x3d   :  { %102 = vadd.xlane.f32.xlu0 %v101_v3  ;;  %8199 = vmatprep.subr.bf16.mxu1 %v8198_v19 }
  0x40   :  { %8201 = vmatpush3.bf16.msra.mxu1 %v8198_v19 }
  0x41   :  { %7683 = vmatprep.subr.mxu1 %v8638_v37 }
  0xc6   :  { %v100_v4 = vpop.xlane.xlu0 %99 }
  0xc7   :  { %v105_v5 = vmul.f32 0.03125, %v100_v4 }
  0xc9   :  { %v107_v6 = vsub.f32 %v8779_v0, %v105_v5 }
  0xca   :  { %v103_v7 = vpop.xlane.xlu0 %102 }
  0xcb   :  { %v106_v8 = vmul.f32 0.03125, %v103_v7  ;;  %v109_v9 = vmul.f32 %v107_v6, %v107_v6 }
  0xcd   :  { %v108_v10 = vsub.f32 %v8781_v1, %v106_v8  ;;  %v111_v11 = vsel %vm97_vm0, %v109_v9, 0.0 }
  0xce   :  { %112 = vadd.xlane.f32.xlu1 %v111_v11 }
  0xcf   :  { %v110_v12 = vmul.f32 %v108_v10, %v108_v10 }
  0xd1   :  { %v114_v13 = vsel %vm97_vm0, %v110_v12, 0.0 }
  0xd2   :  { %115 = vadd.xlane.f32.xlu1 %v114_v13 }
 0x15b   :  { %v113_v20 = vpop.xlane.xlu1 %112 }
 0x15c   :  { %v117_v21 = vmul.f32 0.03125, %v113_v20 }
 0x15e   :  { %v119_v22 = vadd.f32 1e-05, %v117_v21 }
 0x15f   :  { %v116_v23 = vpop.xlane.xlu1 %115 }
 0x160   :  { %8371 = vrsqrt.f32 %v119_v22  ;;  %v118_v24 = vmul.f32 0.03125, %v116_v23 }
 0x162   :  { %v120_v25 = vadd.f32 1e-05, %v118_v24 }
 0x164   :  { %8373 = vrsqrt.f32 %v120_v25 }
 0x16a   :  { %v8372_v26 = vpop.eup %8371 }
 0x16b   :  { %v123_v28 = vmul.f32 %v8372_v26, %v107_v6 }
 0x16d   :  { %v131_v30 = vmul.f32 %v7229_v27, %v123_v28 }
 0x16e   :  { %v8374_v31 = vpop.eup %8373 }
 0x16f   :  { %v124_v32 = vmul.f32 %v8374_v31, %v108_v10  ;;  %v139_v33 = vadd.f32 %v7230_v29, %v131_v30 }
 0x171   :  { %v132_v34 = vmul.f32 %v7229_v27, %v124_v32  ;;  %7680 = vmatprep.mubr.msk.f32.mxu1 %vm97_vm0, %v139_v33 }
 0x173   :  { %v140_v35 = vadd.f32 %v7230_v29, %v132_v34 }
 0x175   :  { %7681 = vmatmul.mubr.msk.f32.vlgmr.msra.gmra.mrb[0].mxu1 %vm97_vm0, %v140_v35 }
 0x176   :  { %7685 = vmatprep.mubr.msk.f32.mxu1 %vm8639_vm1, %v8638_v37 }
 0x248   :  { %v7682_v38 = vpop.f32.mrb[0].mxu1 }
 0x249   :  { %v8820_v39 = vadd.f32 %v7682_v38, %v7231_v36  ;;  %v224_v40 = vpop.f32.mrb[1].mxu1 }
 0x24a   :  { %v8822_v41 = vadd.f32 %v7231_v36, %v224_v40 }
 0x24b   :  { %242 = vrot.lane.b32.xlu1 %v8820_v39, %s8640_s1 }
 0x24c   :  { %240 = vrot.lane.b32.xlu0 %v8822_v41, %s8640_s1 }
 0x24f   :  { %244 = vrot.lane.b32.xlu1 %v8822_v41, %s8641_s7 }
 0x250   :  { %248 = vrot.lane.b32.xlu0 %v8822_v41, %s8642_s19 }
 0x253   :  { %246 = vrot.lane.b32.xlu1 %v8820_v39, %s8641_s7 }
 0x254   :  { %252 = vrot.lane.b32.xlu0 %v8822_v41, %s8643_s29 }
 0x257   :  { %250 = vrot.lane.b32.xlu1 %v8820_v39, %s8642_s19 }
 0x25b   :  { %329 = vrot.lane.b32.xlu1 %v8820_v39, %s8643_s29 }
 0x2bd   :  { %v8840_v42 = vpop.permute.xlu1 %242 }
 0x2be   :  { %481 = vrot.lane.b32.xlu1 %v8840_v42, %s8643_s29  ;;  %v8844_v43 = vpop.permute.xlu0 %240 }
 0x2bf   :  { %405 = vrot.lane.b32.xlu0 %v8844_v43, %s8643_s29 }
 0x2c1   :  { %v8848_v44 = vpop.permute.xlu1 %244 }
 0x2c2   :  { %v8850_v45 = vpop.permute.xlu0 %248 }
 0x2c3   :  { %557 = vrot.lane.b32.xlu0 %v8848_v44, %s8643_s29 }
 0x2c5   :  { %v8854_v46 = vpop.permute.xlu1 %246 }
 0x2c6   :  { %633 = vrot.lane.b32.xlu1 %v8854_v46, %s8643_s29  ;;  %v8858_v47 = vpop.permute.xlu0 %252 }
 0x2c7   :  { %709 = vrot.lane.b32.xlu0 %v8850_v45, %s8643_s29  ;;  %7684 = vmatpush3.xpose.msk.msra.mxu1 %vm254_vm2, %v8858_v47 }
 0x2c8   :  { %7688 = vmatprep.subr.mxu1 %v8638_v37 }
 0x2c9   :  { %v8865_v48 = vpop.permute.xlu1 %250 }
 0x2ca   :  { %785 = vrot.lane.b32.xlu1 %v8865_v48, %s8643_s29  ;;  %7686 = vmatmul.mubr.msk.f32.vlgmr.msra.gmra.mrb[2].mxu1 %vm254_vm2, %v8822_v41 }
 0x2cb   :  { %7690 = vmatprep.mubr.msk.f32.mxu1 %vm8639_vm1, %v8638_v37 }
 0x2cd   :  { %v8873_v49 = vpop.permute.xlu1 %329 }
 0x2ce   :  { %7689 = vmatpush3.xpose.msk.msra.mxu1 %vm254_vm2, %v8873_v49 }
 0x2cf   :  { %7698 = vmatprep.subr.mxu1 %v8638_v37 }
 0x2d1   :  { %7691 = vmatmul.mubr.msk.f32.vlgmr.msra.gmra.mrb[4].mxu1 %vm254_vm2, %v8820_v39 }
 0x2d2   :  { %7700 = vmatprep.mubr.msk.f32.mxu1 %vm8639_vm1, %v8638_v37 }
 0x330   :  { %v482_v50 = vpop.permute.xlu1 %481 }
 0x331   :  { %7699 = vmatpush3.xpose.msk.msra.mxu1 %vm254_vm2, %v482_v50  ;;  %v406_v51 = vpop.permute.xlu0 %405 }
 0x332   :  { %7694 = vmatpush3.xpose.msk.msra.mxu0 %vm254_vm2, %v406_v51  ;;  %7708 = vmatprep.subr.mxu1 %v8638_v37 }
 0x333   :  { %7703 = vmatprep.subr.mxu0 %v8638_v37 }
 0x334   :  { %7701 = vmatmul.mubr.msk.f32.vlgmr.msra.gmra.mrb[6].mxu1 %vm254_vm2, %v8840_v42 }
 0x335   :  { %7696 = vmatmul.mubr.msk.f32.vlgmr.msra.gmra.mrb[0].mxu0 %vm254_vm2, %v8844_v43  ;;  %v558_v52 = vpop.permute.xlu0 %557  ;;  %7710 = vmatprep.mubr.msk.f32.mxu1 %vm8639_vm1, %v8638_v37 }
 0x336   :  { %7704 = vmatpush3.xpose.msk.msra.mxu0 %vm254_vm2, %v558_v52  ;;  %7705 = vmatprep.mubr.msk.f32.mxu0 %vm8639_vm1, %v8638_v37 }
 0x337   :  { %7713 = vmatprep.subr.mxu0 %v8638_v37 }
 0x338   :  { %v634_v53 = vpop.permute.xlu1 %633 }
 0x339   :  { %7706 = vmatmul.mubr.msk.f32.vlgmr.msra.gmra.mrb[2].mxu0 %vm254_vm2, %v8848_v44  ;;  %7709 = vmatpush3.xpose.msk.msra.mxu1 %vm254_vm2, %v634_v53  ;;  %v710_v54 = vpop.permute.xlu0 %709 }
 0x33a   :  { %7714 = vmatpush3.xpose.msk.msra.mxu0 %vm254_vm2, %v710_v54  ;;  %7715 = vmatprep.mubr.msk.f32.mxu0 %vm8639_vm1, %v8638_v37 }
 0x33b   :  { %7718 = vmatprep.subr.mxu1 %v8638_v37  ;;  %7723 = vmatprep.subr.mxu0 %v8638_v37 }
 0x33c   :  { %v786_v55 = vpop.permute.xlu1 %785  ;;  %7711 = vmatmul.mubr.msk.f32.vlgmr.msra.gmra.mrb[8].mxu1 %vm254_vm2, %v8854_v46 }
 0x33d   :  { %7716 = vmatmul.mubr.msk.f32.vlgmr.msra.gmra.mrb[4].mxu0 %vm254_vm2, %v8850_v45  ;;  %7719 = vmatpush3.xpose.msk.msra.mxu1 %vm254_vm2, %v786_v55 }
 0x33e   :  { %7720 = vmatprep.mubr.msk.f32.mxu1 %vm8639_vm1, %v8638_v37  ;;  %7728 = vmatprep.subr.mxu1 %v8638_v37 }
 0x33f   :  { %7725 = vmatprep.mubr.msk.f32.mxu0 %vm8639_vm1, %v8638_v37 }
 0x340   :  { %7721 = vmatmul.mubr.msk.f32.vlgmr.msra.gmra.mrb[10].mxu1 %vm254_vm2, %v8865_v48 }
 0x341   :  { %7730 = vmatprep.mubr.msk.f32.mxu1 %vm8639_vm1, %v8638_v37 }
 0x39d   :  { %v325_v56 = vpop.f32.mrb[2].mxu1 }
 0x39e   :  { %v7687_v57 = vpop.f32.mrb[3].mxu1  ;;  %v861_v58 = vsel %vm254_vm2, %v325_v56, -inf }
 0x39f   :  { %862 = vmax.xlane.f32.xlu0 %v861_v58 }
 0x3a4   :  { %v401_v59 = vpop.f32.mrb[4].mxu1 }
 0x3a5   :  { %v7692_v60 = vpop.f32.mrb[5].mxu1  ;;  %v864_v61 = vsel %vm254_vm2, %v401_v59, -inf }
 0x3a6   :  { %865 = vmax.xlane.f32.xlu1 %v864_v61 }
 0x407   :  { %v553_v62 = vpop.f32.mrb[6].mxu1 }
 0x408   :  { %v477_v63 = vpop.f32.mrb[0].mxu0  ;;  %v7702_v2 = vpop.f32.mrb[7].mxu1  ;;  %v870_v3 = vsel %vm254_vm2, %v553_v62, -inf }
 0x409   :  { %871 = vmax.xlane.f32.xlu0 %v870_v3  ;;  %v7697_v4 = vpop.f32.mrb[1].mxu0  ;;  %v867_v6 = vsel %vm254_vm2, %v477_v63, -inf }
 0x40c   :  { %v629_v5 = vpop.f32.mrb[2].mxu0 }
 0x40d   :  { %868 = vmax.xlane.f32.xlu0 %v867_v6  ;;  %v7707_v7 = vpop.f32.mrb[3].mxu0  ;;  %v873_v12 = vsel %vm254_vm2, %v629_v5, -inf }
 0x40f   :  { %v705_v8 = vpop.f32.mrb[8].mxu1 }
 0x410   :  { %v7712_v9 = vpop.f32.mrb[9].mxu1  ;;  %v781_v10 = vpop.f32.mrb[4].mxu0  ;;  %v876_v11 = vsel %vm254_vm2, %v705_v8, -inf }
 0x411   :  { %877 = vmax.xlane.f32.xlu1 %v876_v11  ;;  %874 = vmax.xlane.f32.xlu0 %v873_v12  ;;  %v7717_v13 = vpop.f32.mrb[5].mxu0  ;;  %v879_v17 = vsel %vm254_vm2, %v781_v10, -inf }
 0x413   :  { %v857_v14 = vpop.f32.mrb[10].mxu1 }
 0x414   :  { %v7722_v15 = vpop.f32.mrb[11].mxu1  ;;  %v882_v16 = vsel %vm254_vm2, %v857_v14, -inf }
 0x415   :  { %883 = vmax.xlane.f32.xlu1 %v882_v16  ;;  %880 = vmax.xlane.f32.xlu0 %v879_v17 }
 0x426   :  { %1025 = vrot.lane.b32.xlu1 %v8820_v39, %s8644_s17 }
 0x42a   :  { %1101 = vrot.lane.b32.xlu1 %v8844_v43, %s8644_s17 }
 0x42b   :  { %949 = vrot.lane.b32.xlu0 %v8822_v41, %s8644_s17 }
 0x42c   :  { %v863_v18 = vpop.xlane.xlu0 %862 }
 0x42d   :  { %v885_v19 = vsub.f32 %v325_v56, %v863_v18 }
 0x42e   :  { %1177 = vrot.lane.b32.xlu1 %v8840_v42, %s8644_s17 }
 0x42f   :  { %1253 = vrot.lane.b32.xlu0 %v8848_v44, %s8644_s17  ;;  %v893_v20 = vmul.f32 1.442695, %v885_v19 }
 0x431   :  { %8375 = vpow2.f32 %v893_v20 }
 0x432   :  { %1329 = vrot.lane.b32.xlu1 %v8854_v46, %s8644_s17 }
 0x433   :  { %v866_v21 = vpop.xlane.xlu1 %865 }
 0x434   :  { %v886_v22 = vsub.f32 %v401_v59, %v866_v21 }
 0x436   :  { %v895_v23 = vmul.f32 1.442695, %v886_v22 }
 0x438   :  { %8377 = vpow2.f32 %v895_v23 }
 0x43b   :  { %v8938_v24 = vpop.eup %8375 }
 0x43c   :  { %v909_v25 = vsel %vm254_vm2, %v8938_v24, 0.0 }
 0x442   :  { %v8942_v26 = vpop.eup %8377 }
 0x443   :  { %v912_v27 = vsel %vm254_vm2, %v8942_v26, 0.0 }
 0x44e   :  { %910 = vadd.xlane.f32.xlu0 %v909_v25 }
 0x456   :  { %913 = vadd.xlane.f32.xlu1 %v912_v27 }
 0x496   :  { %v872_v28 = vpop.xlane.xlu0 %871 }
 0x497   :  { %v888_v29 = vsub.f32 %v553_v62, %v872_v28 }
 0x499   :  { %v899_v30 = vmul.f32 1.442695, %v888_v29 }
 0x49a   :  { %v869_v31 = vpop.xlane.xlu0 %868 }
 0x49b   :  { %8379 = vpow2.f32 %v899_v30  ;;  %v887_v32 = vsub.f32 %v477_v63, %v869_v31 }
 0x49d   :  { %v897_v33 = vmul.f32 1.442695, %v887_v32 }
 0x49e   :  { %v878_v34 = vpop.xlane.xlu1 %877  ;;  %v875_v35 = vpop.xlane.xlu0 %874 }
 0x49f   :  { %8381 = vpow2.f32 %v897_v33  ;;  %v890_v36 = vsub.f32 %v705_v8, %v878_v34  ;;  %v889_v38 = vsub.f32 %v629_v5, %v875_v35  ;;  %v233_v35 = vld [vmem:[%s9960_s6] sm:$0xff] }
 0x4a1   :  { %v903_v39 = vmul.f32 1.442695, %v890_v36  ;;  %v901_v40 = vmul.f32 1.442695, %v889_v38  ;;  %v234_v36 = vld [vmem:[%s9960_s6 + $0x8] sm:$0xff] }
 0x4a2   :  { %v884_v41 = vpop.xlane.xlu1 %883  ;;  %v881_v42 = vpop.xlane.xlu0 %880  ;;  %v8202_v38 = vpack.c.bf16 %v234_v36, %v233_v35 }
 0x4a3   :  { %8383 = vpow2.f32 %v903_v39  ;;  %v892_v43 = vsub.f32 %v857_v14, %v884_v41  ;;  %v891_v44 = vsub.f32 %v781_v10, %v881_v42  ;;  %v235_v39 = vld [vmem:[%s9960_s6 + $0x10] sm:$0xff] }
 0x4a4   :  { %8385 = vpow2.f32 %v901_v40  ;;  %v236_v40 = vld [vmem:[%s9960_s6 + $0x18] sm:$0xff] }
 0x4a5   :  { %v8380_v46 = vpop.eup %8379  ;;  %v907_v50 = vmul.f32 1.442695, %v892_v43  ;;  %v905_v51 = vmul.f32 1.442695, %v891_v44  ;;  %v8206_v41 = vpack.c.bf16 %v236_v40, %v235_v39 }
 0x4a6   :  { %v1026_v52 = vpop.permute.xlu1 %1025  ;;  %v950_v53 = vpop.permute.xlu0 %949  ;;  %v918_v54 = vsel %vm254_vm2, %v8380_v46, 0.0 }
 0x4a7   :  { %8387 = vpow2.f32 %v907_v50  ;;  %7729 = vmatpush3.msra.mxu1 %v1026_v52  ;;  %919 = vadd.xlane.f32.xlu1 %v918_v54 }
 0x4a8   :  { %8389 = vpow2.f32 %v905_v51  ;;  %7724 = vmatpush3.msra.mxu0 %v950_v53  ;;  %7738 = vmatprep.subr.mxu1 %v8638_v37 }
 0x4a9   :  { %v8382_v55 = vpop.eup %8381  ;;  %7733 = vmatprep.subr.mxu0 %v8638_v37 }
 0x4aa   :  { %v915_v56 = vsel %vm254_vm2, %v8382_v55, 0.0  ;;  %v1102_v3 = vpop.permute.xlu1 %1101  ;;  %v1254_v4 = vpop.permute.xlu0 %1253 }
 0x4ab   :  { %916 = vadd.xlane.f32.xlu0 %v915_v56 }
 0x4ad   :  { %v8384_v57 = vpop.eup %8383 }
 0x4ae   :  { %v8386_v58 = vpop.eup %8385  ;;  %v924_v59 = vsel %vm254_vm2, %v8384_v57, 0.0  ;;  %v1178_v5 = vpop.permute.xlu1 %1177 }
 0x4af   :  { %925 = vadd.xlane.f32.xlu1 %v924_v59  ;;  %v921_v60 = vsel %vm254_vm2, %v8386_v58, 0.0 }
 0x4b0   :  { %922 = vadd.xlane.f32.xlu0 %v921_v60 }
 0x4b1   :  { %v8952_v61 = vpop.eup %8387 }
 0x4b2   :  { %v8954_v62 = vpop.eup %8389  ;;  %v930_v63 = vsel %vm254_vm2, %v8952_v61, 0.0  ;;  %v1330_v7 = vpop.permute.xlu1 %1329 }
 0x4b3   :  { %931 = vadd.xlane.f32.xlu1 %v930_v63  ;;  %v927_v2 = vsel %vm254_vm2, %v8954_v62, 0.0 }
 0x4b4   :  { %928 = vadd.xlane.f32.xlu0 %v927_v2 }
 0x4c4   :  { %1481 = vrot.lane.b32.xlu1 %v8865_v48, %s8644_s17 }
 0x4ca   :  { %1405 = vrot.lane.b32.xlu0 %v8850_v45, %s8644_s17 }
 0x4db   :  { %v911_v6 = vpop.xlane.xlu0 %910 }
 0x4dc   :  { %8391 = vrcp.f32 %v911_v6 }
 0x4e3   :  { %v914_v8 = vpop.xlane.xlu1 %913 }
 0x4e4   :  { %8393 = vrcp.f32 %v914_v8  ;;  %v7258_v8 = vld [vmem:[#allocation7] ss:$0 sm:$0xff] }
 0x4e6   :  { %v8392_v9 = vpop.eup %8391 }
 0x4e7   :  { %v934_v10 = vmul.f32 %v8392_v9, %v8938_v24 }
 0x4e9   :  { %7726 = vmatmul.mubr.msk.f32.vlgmr.msra.gmra.mrb[6].mxu0 %vm254_vm2, %v934_v10 }
 0x4ea   :  { %7734 = vmatpush3.msra.mxu0 %v1102_v3  ;;  %7735 = vmatprep.mubr.msk.f32.mxu0 %vm8639_vm1, %v8638_v37 }
 0x4eb   :  { %7743 = vmatprep.subr.mxu0 %v8638_v37 }
 0x4ee   :  { %v8394_v45 = vpop.eup %8393 }
 0x4ef   :  { %v936_v48 = vmul.f32 %v8394_v45, %v8942_v26 }
 0x4f1   :  { %7731 = vmatmul.mubr.msk.f32.vlgmr.msra.gmra.mrb[12].mxu1 %vm254_vm2, %v936_v48 }
 0x4f2   :  { %7739 = vmatpush3.msra.mxu1 %v1178_v5  ;;  %7740 = vmatprep.mubr.msk.f32.mxu1 %vm8639_vm1, %v8638_v37 }
 0x4f3   :  { %7748 = vmatprep.subr.mxu1 %v8638_v37 }
 0x534   :  { %v920_v11 = vpop.xlane.xlu1 %919 }
 0x535   :  { %8395 = vrcp.f32 %v920_v11 }
 0x538   :  { %v917_v12 = vpop.xlane.xlu0 %916 }
 0x539   :  { %8397 = vrcp.f32 %v917_v12 }
 0x53c   :  { %v926_v13 = vpop.xlane.xlu1 %925 }
 0x53d   :  { %8399 = vrcp.f32 %v926_v13  ;;  %v923_v14 = vpop.xlane.xlu0 %922 }
 0x53e   :  { %8401 = vrcp.f32 %v923_v14 }
 0x53f   :  { %v8396_v15 = vpop.eup %8395 }
 0x540   :  { %v932_v16 = vpop.xlane.xlu1 %931  ;;  %v940_v17 = vmul.f32 %v8396_v15, %v8380_v46  ;;  %v7265_v15 = vld [vmem:[%s9958_s4 + $0x20] sm:$0xff] }
 0x541   :  { %8403 = vrcp.f32 %v932_v16  ;;  %v929_v18 = vpop.xlane.xlu0 %928 }
 0x542   :  { %8405 = vrcp.f32 %v929_v18  ;;  %7741 = vmatmul.mubr.msk.f32.vlgmr.msra.gmra.mrb[14].mxu1 %vm254_vm2, %v940_v17  ;;  %v7268_v17 = vld [vmem:[%s9958_s4 + $0x38] sm:$0xff]  ;;  %v93_v18 = vld [vmem:[#allocation5] sm:$0xff] }
 0x543   :  { %v8398_v19 = vpop.eup %8397  ;;  %7749 = vmatpush3.msra.mxu1 %v1330_v7  ;;  %7750 = vmatprep.mubr.msk.f32.mxu1 %vm8639_vm1, %v8638_v37 }
 0x544   :  { %v938_v20 = vmul.f32 %v8398_v19, %v8382_v55  ;;  %7758 = vmatprep.subr.mxu1 %v8638_v37  ;;  %v1482_v25 = vpop.permute.xlu1 %1481 }
 0x545   :  { %v1406_v27 = vpop.permute.xlu0 %1405 }
 0x546   :  { %7736 = vmatmul.mubr.msk.f32.vlgmr.msra.gmra.mrb[8].mxu0 %vm254_vm2, %v938_v20  ;;  %v94_v20 = vld [vmem:[#allocation5 + $0x8] sm:$0xff] }
 0x547   :  { %v8400_v21 = vpop.eup %8399  ;;  %7744 = vmatpush3.msra.mxu0 %v1254_v4  ;;  %7745 = vmatprep.mubr.msk.f32.mxu0 %vm8639_vm1, %v8638_v37 }
 0x548   :  { %v8402_v22 = vpop.eup %8401  ;;  %7753 = vmatprep.subr.mxu0 %v8638_v37  ;;  %v944_v23 = vmul.f32 %v8400_v21, %v8384_v57 }
 0x549   :  { %v942_v24 = vmul.f32 %v8402_v22, %v8386_v58 }
 0x54a   :  { %7751 = vmatmul.mubr.msk.f32.vlgmr.msra.gmra.mrb[16].mxu1 %vm254_vm2, %v944_v23 }
 0x54b   :  { %v8404_v26 = vpop.eup %8403  ;;  %7746 = vmatmul.mubr.msk.f32.vlgmr.msra.gmra.mrb[10].mxu0 %vm254_vm2, %v942_v24  ;;  %7759 = vmatpush3.msra.mxu1 %v1482_v25 }
 0x54c   :  { %v8406_v28 = vpop.eup %8405  ;;  %7754 = vmatpush3.msra.mxu0 %v1406_v27  ;;  %7755 = vmatprep.mubr.msk.f32.mxu0 %vm8639_vm1, %v8638_v37  ;;  %v948_v29 = vmul.f32 %v8404_v26, %v8952_v61 }
 0x54d   :  { %7760 = vmatprep.mubr.msk.f32.mxu1 %vm8639_vm1, %v8638_v37  ;;  %v946_v30 = vmul.f32 %v8406_v28, %v8954_v62  ;;  %8203 = vmatprep.subr.bf16.mxu1 %v8202_v38 }
 0x54e   :  { %7761 = vmatmul.mubr.msk.f32.vlgmr.msra.gmra.mrb[18].mxu1 %vm254_vm2, %v948_v29 }
 0x54f   :  { %7756 = vmatmul.mubr.msk.f32.vlgmr.msra.gmra.mrb[12].mxu0 %vm254_vm2, %v946_v30  ;;  %8205 = vmatpush3.bf16.msra.mxu1 %v8202_v38 }
 0x550   :  { %8207 = vmatprep.subr.bf16.mxu1 %v8206_v41  ;;  %7793 = vmatprep.mubr.msk.f32.mxu0 %vm97_vm0, %v93_v18 }
 0x553   :  { %8209 = vmatpush3.bf16.msra.mxu1 %v8206_v41 }
 0x5bc   :  { %v1021_v31 = vpop.f32.mrb[6].mxu0 }
 0x5bd   :  { %v7727_v32 = vpop.f32.mrb[7].mxu0 }
 0x5c4   :  { %v1097_v33 = vpop.f32.mrb[12].mxu1 }
 0x5c5   :  { %v7732_v34 = vpop.f32.mrb[13].mxu1 }
 0x615   :  { %v1249_v42 = vpop.f32.mrb[14].mxu1 }
 0x616   :  { %1561 = vrot.lane.b32.xlu1 %v1249_v42, %s8634_s16  ;;  %v7742_v43 = vpop.f32.mrb[15].mxu1 }
 0x619   :  { %v1173_v44 = vpop.f32.mrb[8].mxu0 }
 0x61a   :  { %1559 = vrot.lane.b32.xlu0 %v1173_v44, %s8634_s16  ;;  %v7737_v46 = vpop.f32.mrb[9].mxu0  ;;  %v7263_v44 = vld [vmem:[%s9956_s2 + $0x1] ss:$0 sm:$0xff] }
 0x61d   :  { %v1401_v50 = vpop.f32.mrb[16].mxu1 }
 0x61e   :  { %v1325_v51 = vpop.f32.mrb[10].mxu0  ;;  %1569 = vrot.lane.b32.xlu1 %v1401_v50, %s8636_s0  ;;  %v7752_v52 = vpop.f32.mrb[17].mxu1  ;;  %v7264_v50 = vld [vmem:[%s9957_s3 + $0x1] ss:$0 sm:$0xff] }
 0x61f   :  { %1567 = vrot.lane.b32.xlu0 %v1325_v51, %s8636_s0  ;;  %v7747_v53 = vpop.f32.mrb[11].mxu0 }
 0x621   :  { %v1553_v54 = vpop.f32.mrb[18].mxu1 }
 0x622   :  { %v1477_v55 = vpop.f32.mrb[12].mxu0  ;;  %1577 = vrot.lane.b32.xlu1 %v1553_v54, %s8645_s21  ;;  %v7762_v56 = vpop.f32.mrb[19].mxu1 }
 0x623   :  { %1575 = vrot.lane.b32.xlu0 %v1477_v55, %s8645_s21  ;;  %v7757_v57 = vpop.f32.mrb[13].mxu0 }
 0x688   :  { %v1562_v58 = vpop.permute.xlu1 %1561 }
 0x689   :  { %v1582_v62 = vsel %vm254_vm2, %v1097_v33, %v1562_v58 }
 0x68c   :  { %v1560_v59 = vpop.permute.xlu0 %1559 }
 0x68d   :  { %v1581_v63 = vsel %vm254_vm2, %v1021_v31, %v1560_v59  ;;  %v7270_v31 = vld [vmem:[%s9959_s5 + $0x1] ss:$0 sm:$0xff] }
 0x690   :  { %v1570_v60 = vpop.permute.xlu1 %1569 }
 0x691   :  { %v1568_v61 = vpop.permute.xlu0 %1567  ;;  %v1585_v2 = vsel %vm1583_vm3, %v1582_v62, %v1570_v60 }
 0x692   :  { %v1584_v4 = vsel %vm1583_vm3, %v1581_v63, %v1568_v61 }
 0x694   :  { %v1578_v3 = vpop.permute.xlu1 %1577 }
 0x695   :  { %v1588_v5 = vsel %vm1586_vm4, %v1585_v2, %v1578_v3  ;;  %v1576_v6 = vpop.permute.xlu0 %1575 }
 0x696   :  { %v1587_v7 = vsel %vm1586_vm4, %v1584_v4, %v1576_v6 }
 0x697   :  { %7771 = vmatprep.mubr.msk.f32.mxu1 %vm97_vm0, %v1587_v7 }
 0x698   :  { %7772 = vmatmul.mubr.msk.f32.vlgmr.msra.gmra.mrb[20].mxu1 %vm97_vm0, %v1588_v5 }
 0x76b   :  { %v7773_v9 = vpop.f32.mrb[20].mxu1 }
 0x76c   :  { %v1673_v10 = vadd.f32 %v7773_v9, %v7258_v8  ;;  %v1667_v45 = vpop.f32.mrb[21].mxu1 }
 0x76d   :  { %v1668_v48 = vadd.f32 %v7258_v8, %v1667_v45 }
 0x76e   :  { %v9019_v11 = vadd.f32 %v1673_v10, %v8781_v1  ;;  %v7266_v1 = vld [vmem:[%s9958_s4 + $0x28] sm:$0xff] }
 0x76f   :  { %v9022_v12 = vadd.f32 %v1668_v48, %v8779_v0  ;;  %v7267_v0 = vld [vmem:[%s9958_s4 + $0x30] sm:$0xff]  ;;  %v8210_v16 = vpack.c.bf16 %v7266_v1, %v7265_v15 }
 0x770   :  { %v1685_v13 = vsel %vm97_vm0, %v9019_v11, 0.0  ;;  %v8214_v19 = vpack.c.bf16 %v7268_v17, %v7267_v0 }
 0x771   :  { %1686 = vadd.xlane.f32.xlu1 %v1685_v13  ;;  %v1682_v14 = vsel %vm97_vm0, %v9022_v12, 0.0  ;;  %8219 = vmatprep.subr.bf16.mxu0 %v8210_v16 }
 0x772   :  { %1683 = vadd.xlane.f32.xlu0 %v1682_v14  ;;  %8211 = vmatprep.subr.bf16.mxu1 %v8210_v16 }
 0x773   :  { %8221 = vmatpush3.bf16.msra.mxu0 %v8210_v16  ;;  %8213 = vmatpush3.bf16.msra.mxu1 %v8210_v16 }
 0x774   :  { %8223 = vmatprep.subr.bf16.mxu0 %v8214_v19  ;;  %8215 = vmatprep.subr.bf16.mxu1 %v8214_v19 }
 0x777   :  { %8225 = vmatpush3.bf16.msra.mxu0 %v8214_v19  ;;  %8217 = vmatpush3.bf16.msra.mxu1 %v8214_v19 }
 0x778   :  { %7796 = vmatprep.subr.mxu1 %v8638_v37  ;;  %7806 = vmatprep.subr.mxu0 %v8638_v37 }
 0x77a   :  { %7794 = vmatmul.mubr.msk.f32.vlgmr.msra.gmra.mrb[14].mxu0 %vm97_vm0, %v94_v20 }
 0x77b   :  { %7808 = vmatprep.mubr.msk.f32.mxu0 %vm8639_vm1, %v8638_v37 }
 0x7fe   :  { %v1687_v21 = vpop.xlane.xlu1 %1686 }
 0x7ff   :  { %v1689_v22 = vmul.f32 0.03125, %v1687_v21  ;;  %v1684_v23 = vpop.xlane.xlu0 %1683 }
 0x800   :  { %v1688_v24 = vmul.f32 0.03125, %v1684_v23 }
 0x801   :  { %v1691_v25 = vsub.f32 %v9019_v11, %v1689_v22 }
 0x802   :  { %v1690_v26 = vsub.f32 %v9022_v12, %v1688_v24 }
 0x803   :  { %v1693_v29 = vmul.f32 %v1691_v25, %v1691_v25 }
 0x804   :  { %v1692_v27 = vmul.f32 %v1690_v26, %v1690_v26 }
 0x805   :  { %v1697_v30 = vsel %vm97_vm0, %v1693_v29, 0.0 }
 0x806   :  { %v1694_v28 = vsel %vm97_vm0, %v1692_v27, 0.0 }
 0x807   :  { %1695 = vadd.xlane.f32.xlu0 %v1694_v28 }
 0x80b   :  { %1698 = vadd.xlane.f32.xlu0 %v1697_v30 }
 0x84d   :  { %v7795_v32 = vpop.f32.mrb[14].mxu0 }
 0x84e   :  { %v9053_v33 = vadd.f32 %v7795_v32, %v7270_v31  ;;  %v1890_v34 = vpop.f32.mrb[15].mxu0 }
 0x84f   :  { %v9055_v35 = vadd.f32 %v7270_v31, %v1890_v34 }
 0x850   :  { %1924 = vrot.lane.b32.xlu1 %v9053_v33, %s8640_s1 }
 0x851   :  { %1922 = vrot.lane.b32.xlu0 %v9055_v35, %s8640_s1 }
 0x854   :  { %1926 = vrot.lane.b32.xlu1 %v9055_v35, %s8641_s7 }
 0x855   :  { %1930 = vrot.lane.b32.xlu0 %v9055_v35, %s8642_s19 }
 0x858   :  { %1928 = vrot.lane.b32.xlu1 %v9053_v33, %s8641_s7 }
 0x859   :  { %1934 = vrot.lane.b32.xlu0 %v9055_v35, %s8643_s29 }
 0x85c   :  { %1932 = vrot.lane.b32.xlu1 %v9053_v33, %s8642_s19 }
 0x860   :  { %2010 = vrot.lane.b32.xlu1 %v9053_v33, %s8643_s29 }
 0x894   :  { %v1696_v36 = vpop.xlane.xlu0 %1695 }
 0x895   :  { %v1700_v38 = vmul.f32 0.03125, %v1696_v36 }
 0x897   :  { %v1702_v39 = vadd.f32 1e-05, %v1700_v38 }
 0x898   :  { %v1699_v40 = vpop.xlane.xlu0 %1698 }
 0x899   :  { %8407 = vrsqrt.f32 %v1702_v39  ;;  %v1701_v41 = vmul.f32 0.03125, %v1699_v40 }
 0x89b   :  { %v1703_v42 = vadd.f32 1e-05, %v1701_v41 }
 0x89d   :  { %8409 = vrsqrt.f32 %v1703_v42 }
 0x8a3   :  { %v8408_v43 = vpop.eup %8407 }
 0x8a4   :  { %v1706_v46 = vmul.f32 %v8408_v43, %v1690_v26 }
 0x8a6   :  { %v1714_v51 = vmul.f32 %v7263_v44, %v1706_v46 }
 0x8a7   :  { %v8410_v52 = vpop.eup %8409 }
 0x8a8   :  { %v1707_v53 = vmul.f32 %v8410_v52, %v1691_v25  ;;  %v1722_v54 = vadd.f32 %v7264_v50, %v1714_v51 }
 0x8aa   :  { %v1715_v55 = vmul.f32 %v7263_v44, %v1707_v53  ;;  %7782 = vmatprep.mubr.msk.f32.mxu1 %vm97_vm0, %v1722_v54 }
 0x8ac   :  { %v1723_v56 = vadd.f32 %v7264_v50, %v1715_v55 }
 0x8ae   :  { %7783 = vmatmul.mubr.msk.f32.vlgmr.msra.gmra.mrb[22].mxu1 %vm97_vm0, %v1723_v56 }
 0x8af   :  { %7798 = vmatprep.mubr.msk.f32.mxu1 %vm8639_vm1, %v8638_v37 }
 0x8c2   :  { %v9083_v57 = vpop.permute.xlu1 %1924 }
 0x8c3   :  { %v9085_v58 = vpop.permute.xlu0 %1922  ;;  %2162 = vrot.lane.b32.xlu1 %v9083_v57, %s8643_s29 }
 0x8c4   :  { %2086 = vrot.lane.b32.xlu0 %v9085_v58, %s8643_s29 }
 0x8c6   :  { %v9091_v59 = vpop.permute.xlu1 %1926 }
 0x8c7   :  { %v9093_v60 = vpop.permute.xlu0 %1930 }
 0x8c8   :  { %2238 = vrot.lane.b32.xlu0 %v9091_v59, %s8643_s29 }
 0x8ca   :  { %v9097_v61 = vpop.permute.xlu1 %1928 }
 0x8cb   :  { %2314 = vrot.lane.b32.xlu1 %v9097_v61, %s8643_s29  ;;  %v1935_v62 = vpop.permute.xlu0 %1934 }
 0x8cc   :  { %2390 = vrot.lane.b32.xlu0 %v9093_v60, %s8643_s29  ;;  %7797 = vmatpush3.xpose.msk.msra.mxu1 %vm254_vm2, %v1935_v62 }
 0x8cd   :  { %7801 = vmatprep.subr.mxu1 %v8638_v37 }
 0x8ce   :  { %v9105_v63 = vpop.permute.xlu1 %1932 }
 0x8cf   :  { %2466 = vrot.lane.b32.xlu1 %v9105_v63, %s8643_s29 }
 0x8d2   :  { %v2011_v7 = vpop.permute.xlu1 %2010 }
 0x935   :  { %v2163_v8 = vpop.permute.xlu1 %2162 }
 0x936   :  { %v2087_v2 = vpop.permute.xlu0 %2086 }
 0x937   :  { %7807 = vmatpush3.xpose.msk.msra.mxu0 %vm254_vm2, %v2087_v2 }
 0x938   :  { %7816 = vmatprep.subr.mxu0 %v8638_v37 }
 0x93a   :  { %v2239_v10 = vpop.permute.xlu0 %2238 }
 0x93d   :  { %v2315_v9 = vpop.permute.xlu1 %2314 }
 0x93e   :  { %v2391_v48 = vpop.permute.xlu0 %2390 }
 0x941   :  { %v2467_v45 = vpop.permute.xlu1 %2466 }
 0x981   :  { %v7784_v3 = vpop.f32.mrb[22].mxu1 }
 0x982   :  { %v1815_v4 = vadd.f32 %v7784_v3, %v7270_v31  ;;  %v1809_v5 = vpop.f32.mrb[23].mxu1 }
 0x983   :  { %v1810_v6 = vadd.f32 %v7270_v31, %v1809_v5 }
 0x984   :  { %1910 = vrot.lane.b32.xlu1 %v1815_v4, %s8640_s1 }
 0x985   :  { %1908 = vrot.lane.b32.xlu0 %v1810_v6, %s8640_s1  ;;  %7799 = vmatmul.mubr.msk.f32.vlgmr.msra.gmra.mrb[24].mxu1 %vm254_vm2, %v1810_v6 }
 0x986   :  { %7802 = vmatpush3.xpose.msk.msra.mxu1 %vm254_vm2, %v2011_v7  ;;  %7803 = vmatprep.mubr.msk.f32.mxu1 %vm8639_vm1, %v8638_v37 }
 0x987   :  { %7811 = vmatprep.subr.mxu1 %v8638_v37 }
 0x988   :  { %1914 = vrot.lane.b32.xlu1 %v1815_v4, %s8641_s7 }
 0x989   :  { %1912 = vrot.lane.b32.xlu0 %v1810_v6, %s8641_s7  ;;  %7804 = vmatmul.mubr.msk.f32.vlgmr.msra.gmra.mrb[26].mxu1 %vm254_vm2, %v1815_v4 }
 0x98a   :  { %7812 = vmatpush3.xpose.msk.msra.mxu1 %vm254_vm2, %v2163_v8  ;;  %7813 = vmatprep.mubr.msk.f32.mxu1 %vm8639_vm1, %v8638_v37 }
 0x98b   :  { %7821 = vmatprep.subr.mxu1 %v8638_v37 }
 0x98c   :  { %1918 = vrot.lane.b32.xlu1 %v1815_v4, %s8642_s19 }
 0x98d   :  { %1916 = vrot.lane.b32.xlu0 %v1810_v6, %s8642_s19 }
 0x9f6   :  { %v1911_v13 = vpop.permute.xlu1 %1910 }
 0x9f7   :  { %7814 = vmatmul.mubr.msk.f32.vlgmr.msra.gmra.mrb[28].mxu1 %vm254_vm2, %v1911_v13  ;;  %v1909_v14 = vpop.permute.xlu0 %1908 }
 0x9f8   :  { %7822 = vmatpush3.xpose.msk.msra.mxu1 %vm254_vm2, %v2315_v9  ;;  %7809 = vmatmul.mubr.msk.f32.vlgmr.msra.gmra.mrb[16].mxu0 %vm254_vm2, %v1909_v14 }
 0x9f9   :  { %7817 = vmatpush3.xpose.msk.msra.mxu0 %vm254_vm2, %v2239_v10  ;;  %7823 = vmatprep.mubr.msk.f32.mxu1 %vm8639_vm1, %v8638_v37 }
 0x9fa   :  { %v1915_v15 = vpop.permute.xlu1 %1914  ;;  %7831 = vmatprep.subr.mxu1 %v8638_v37  ;;  %7818 = vmatprep.mubr.msk.f32.mxu0 %vm8639_vm1, %v8638_v37 }
 0x9fb   :  { %7824 = vmatmul.mubr.msk.f32.vlgmr.msra.gmra.mrb[30].mxu1 %vm254_vm2, %v1915_v15  ;;  %7826 = vmatprep.subr.mxu0 %v8638_v37  ;;  %v1913_v1 = vpop.permute.xlu0 %1912 }
 0x9fc   :  { %7832 = vmatpush3.xpose.msk.msra.mxu1 %vm254_vm2, %v2467_v45  ;;  %7819 = vmatmul.mubr.msk.f32.vlgmr.msra.gmra.mrb[18].mxu0 %vm254_vm2, %v1913_v1 }
 0x9fd   :  { %7827 = vmatpush3.xpose.msk.msra.mxu0 %vm254_vm2, %v2391_v48  ;;  %7833 = vmatprep.mubr.msk.f32.mxu1 %vm8639_vm1, %v8638_v37 }
 0x9fe   :  { %v1919_v0 = vpop.permute.xlu1 %1918  ;;  %7828 = vmatprep.mubr.msk.f32.mxu0 %vm8639_vm1, %v8638_v37  ;;  %7841 = vmatprep.subr.mxu1 %v8638_v37 }
 0x9ff   :  { %7834 = vmatmul.mubr.msk.f32.vlgmr.msra.gmra.mrb[32].mxu1 %vm254_vm2, %v1919_v0  ;;  %v1917_v16 = vpop.permute.xlu0 %1916  ;;  %7836 = vmatprep.subr.mxu0 %v8638_v37 }
 0xa00   :  { %7829 = vmatmul.mubr.msk.f32.vlgmr.msra.gmra.mrb[20].mxu0 %vm254_vm2, %v1917_v16  ;;  %7843 = vmatprep.mubr.msk.f32.mxu1 %vm8639_vm1, %v8638_v37 }
 0xa01   :  { %7838 = vmatprep.mubr.msk.f32.mxu0 %vm8639_vm1, %v8638_v37 }
 0xa58   :  { %v2006_v17 = vpop.f32.mrb[24].mxu1 }
 0xa59   :  { %v7800_v18 = vpop.f32.mrb[25].mxu1  ;;  %v2542_v19 = vsel %vm254_vm2, %v2006_v17, -inf }
 0xa5a   :  { %2543 = vmax.xlane.f32.xlu0 %v2542_v19 }
 0xa5c   :  { %v2082_v20 = vpop.f32.mrb[26].mxu1 }
 0xa5d   :  { %v7805_v21 = vpop.f32.mrb[27].mxu1  ;;  %v2545_v22 = vsel %vm254_vm2, %v2082_v20, -inf }
 0xa5e   :  { %2546 = vmax.xlane.f32.xlu1 %v2545_v22 }
 0xaca   :  { %v2234_v23 = vpop.f32.mrb[28].mxu1 }
 0xacb   :  { %v2158_v24 = vpop.f32.mrb[16].mxu0  ;;  %v7815_v25 = vpop.f32.mrb[29].mxu1  ;;  %v2551_v26 = vsel %vm254_vm2, %v2234_v23, -inf }
 0xacc   :  { %2552 = vmax.xlane.f32.xlu0 %v2551_v26  ;;  %v7810_v27 = vpop.f32.mrb[17].mxu0  ;;  %v2548_v32 = vsel %vm254_vm2, %v2158_v24, -inf }
 0xace   :  { %v2386_v28 = vpop.f32.mrb[30].mxu1 }
 0xacf   :  { %v2310_v29 = vpop.f32.mrb[18].mxu0  ;;  %v7825_v30 = vpop.f32.mrb[31].mxu1  ;;  %v2557_v31 = vsel %vm254_vm2, %v2386_v28, -inf }
 0xad0   :  { %2558 = vmax.xlane.f32.xlu1 %v2557_v31  ;;  %2549 = vmax.xlane.f32.xlu0 %v2548_v32  ;;  %v7820_v34 = vpop.f32.mrb[19].mxu0  ;;  %v2554_v41 = vsel %vm254_vm2, %v2310_v29, -inf }
 0xad2   :  { %v2538_v36 = vpop.f32.mrb[32].mxu1 }
 0xad3   :  { %v2462_v38 = vpop.f32.mrb[20].mxu0  ;;  %v7835_v39 = vpop.f32.mrb[33].mxu1  ;;  %v2563_v40 = vsel %vm254_vm2, %v2538_v36, -inf }
 0xad4   :  { %2564 = vmax.xlane.f32.xlu1 %v2563_v40  ;;  %2555 = vmax.xlane.f32.xlu0 %v2554_v41  ;;  %v7830_v42 = vpop.f32.mrb[21].mxu0  ;;  %v2560_v43 = vsel %vm254_vm2, %v2462_v38, -inf }
 0xad8   :  { %2561 = vmax.xlane.f32.xlu0 %v2560_v43 }
 0xae5   :  { %2706 = vrot.lane.b32.xlu1 %v9053_v33, %s8644_s17 }
 0xae7   :  { %v2544_v44 = vpop.xlane.xlu0 %2543 }
 0xae8   :  { %v2566_v46 = vsub.f32 %v2006_v17, %v2544_v44 }
 0xae9   :  { %2782 = vrot.lane.b32.xlu1 %v9085_v58, %s8644_s17 }
 0xaea   :  { %v2574_v51 = vmul.f32 1.442695, %v2566_v46 }
 0xaeb   :  { %v2547_v50 = vpop.xlane.xlu1 %2546 }
 0xaec   :  { %v2567_v52 = vsub.f32 %v2082_v20, %v2547_v50  ;;  %8411 = vpow2.f32 %v2574_v51 }
 0xaed   :  { %2858 = vrot.lane.b32.xlu1 %v9083_v57, %s8644_s17 }
 0xaee   :  { %2630 = vrot.lane.b32.xlu0 %v9055_v35, %s8644_s17  ;;  %v2576_v53 = vmul.f32 1.442695, %v2567_v52 }
 0xaf0   :  { %8413 = vpow2.f32 %v2576_v53 }
 0xaf1   :  { %3010 = vrot.lane.b32.xlu1 %v9097_v61, %s8644_s17 }
 0xaf2   :  { %2934 = vrot.lane.b32.xlu0 %v9091_v59, %s8644_s17 }
 0xaf6   :  { %v9173_v54 = vpop.eup %8411 }
 0xaf7   :  { %v2590_v55 = vsel %vm254_vm2, %v9173_v54, 0.0 }
 0xafa   :  { %v9177_v56 = vpop.eup %8413 }
 0xafb   :  { %v2593_v57 = vsel %vm254_vm2, %v9177_v56, 0.0 }
 0xb11   :  { %2591 = vadd.xlane.f32.xlu0 %v2590_v55 }
 0xb15   :  { %2594 = vadd.xlane.f32.xlu1 %v2593_v57 }
 0xb59   :  { %v2553_v58 = vpop.xlane.xlu0 %2552 }
 0xb5a   :  { %v2569_v59 = vsub.f32 %v2234_v23, %v2553_v58 }
 0xb5c   :  { %v2580_v61 = vmul.f32 1.442695, %v2569_v59 }
 0xb5d   :  { %v2559_v62 = vpop.xlane.xlu1 %2558  ;;  %v2550_v2 = vpop.xlane.xlu0 %2549 }
 0xb5e   :  { %8415 = vpow2.f32 %v2580_v61  ;;  %v2571_v3 = vsub.f32 %v2386_v28, %v2559_v62  ;;  %v2568_v4 = vsub.f32 %v2158_v24, %v2550_v2 }
 0xb60   :  { %v2584_v5 = vmul.f32 1.442695, %v2571_v3  ;;  %v2578_v6 = vmul.f32 1.442695, %v2568_v4 }
 0xb61   :  { %v2565_v7 = vpop.xlane.xlu1 %2564  ;;  %v2556_v8 = vpop.xlane.xlu0 %2555 }
 0xb62   :  { %8417 = vpow2.f32 %v2584_v5  ;;  %v2573_v9 = vsub.f32 %v2538_v36, %v2565_v7  ;;  %v2570_v10 = vsub.f32 %v2310_v29, %v2556_v8  ;;  %v7275_v7 = vld [vmem:[%s9960_s6 + $0x20] sm:$0xff]  ;;  %v7276_v8 = vld [vmem:[%s9960_s6 + $0x28] sm:$0xff] }
 0xb63   :  { %8419 = vpow2.f32 %v2578_v6 }
 0xb64   :  { %v2588_v45 = vmul.f32 1.442695, %v2573_v9  ;;  %v2582_v48 = vmul.f32 1.442695, %v2570_v10  ;;  %v8226_v9 = vpack.c.bf16 %v7276_v8, %v7275_v7  ;;  %v7277_v10 = vld [vmem:[%s9960_s6 + $0x30] sm:$0xff] }
 0xb65   :  { %v2707_v13 = vpop.permute.xlu1 %2706  ;;  %v2562_v14 = vpop.xlane.xlu0 %2561 }
 0xb66   :  { %8421 = vpow2.f32 %v2588_v45  ;;  %v2572_v15 = vsub.f32 %v2462_v38, %v2562_v14  ;;  %7842 = vmatpush3.msra.mxu1 %v2707_v13  ;;  %v7278_v45 = vld [vmem:[%s9960_s6 + $0x38] sm:$0xff] }
 0xb67   :  { %8423 = vpow2.f32 %v2582_v48  ;;  %7851 = vmatprep.subr.mxu1 %v8638_v37  ;;  %v8230_v48 = vpack.c.bf16 %v7278_v45, %v7277_v10  ;;  %v7308_v10 = vld [vmem:[%s9956_s2 + $0x2] ss:$0 sm:$0xff] }
 0xb68   :  { %v8416_v1 = vpop.eup %8415  ;;  %v2586_v0 = vmul.f32 1.442695, %v2572_v15 }
 0xb69   :  { %v2631_v16 = vpop.permute.xlu0 %2630  ;;  %v2599_v17 = vsel %vm254_vm2, %v8416_v1, 0.0  ;;  %v2783_v28 = vpop.permute.xlu1 %2782 }
 0xb6a   :  { %8425 = vpow2.f32 %v2586_v0  ;;  %2600 = vadd.xlane.f32.xlu1 %v2599_v17  ;;  %7837 = vmatpush3.msra.mxu0 %v2631_v16 }
 0xb6b   :  { %7846 = vmatprep.subr.mxu0 %v8638_v37 }
 0xb6c   :  { %v8418_v18 = vpop.eup %8417 }
 0xb6d   :  { %v8420_v19 = vpop.eup %8419  ;;  %v2605_v20 = vsel %vm254_vm2, %v8418_v18, 0.0  ;;  %v2859_v29 = vpop.permute.xlu1 %2858 }
 0xb6e   :  { %2606 = vadd.xlane.f32.xlu1 %v2605_v20  ;;  %v2596_v21 = vsel %vm254_vm2, %v8420_v19, 0.0  ;;  %v2935_v30 = vpop.permute.xlu0 %2934 }
 0xb6f   :  { %2597 = vadd.xlane.f32.xlu0 %v2596_v21 }
 0xb70   :  { %v8422_v22 = vpop.eup %8421 }
 0xb71   :  { %v9186_v23 = vpop.eup %8423  ;;  %v2611_v24 = vsel %vm254_vm2, %v8422_v22, 0.0  ;;  %v3011_v31 = vpop.permute.xlu1 %3010 }
 0xb72   :  { %2612 = vadd.xlane.f32.xlu1 %v2611_v24  ;;  %v2602_v25 = vsel %vm254_vm2, %v9186_v23, 0.0 }
 0xb73   :  { %2603 = vadd.xlane.f32.xlu0 %v2602_v25 }
 0xb74   :  { %v9191_v26 = vpop.eup %8425 }
 0xb75   :  { %v2608_v27 = vsel %vm254_vm2, %v9191_v26, 0.0 }
 0xb77   :  { %2609 = vadd.xlane.f32.xlu0 %v2608_v27 }
 0xb83   :  { %3162 = vrot.lane.b32.xlu1 %v9105_v63, %s8644_s17 }
 0xb8d   :  { %3086 = vrot.lane.b32.xlu0 %v9093_v60, %s8644_s17 }
 0xb9e   :  { %v2592_v32 = vpop.xlane.xlu0 %2591 }
 0xb9f   :  { %8427 = vrcp.f32 %v2592_v32 }
 0xba2   :  { %v2595_v34 = vpop.xlane.xlu1 %2594 }
 0xba3   :  { %8429 = vrcp.f32 %v2595_v34 }
 0xba9   :  { %v8428_v36 = vpop.eup %8427 }
 0xbaa   :  { %v2615_v38 = vmul.f32 %v8428_v36, %v9173_v54 }
 0xbac   :  { %7839 = vmatmul.mubr.msk.f32.vlgmr.msra.gmra.mrb[22].mxu0 %vm254_vm2, %v2615_v38  ;;  %v7303_v38 = vld [vmem:[#allocation7 + $0x1] ss:$0 sm:$0xff] }
 0xbad   :  { %v8430_v39 = vpop.eup %8429  ;;  %7847 = vmatpush3.msra.mxu0 %v2783_v28  ;;  %7848 = vmatprep.mubr.msk.f32.mxu0 %vm8639_vm1, %v8638_v37 }
 0xbae   :  { %v2617_v60 = vmul.f32 %v8430_v39, %v9177_v56  ;;  %7856 = vmatprep.subr.mxu0 %v8638_v37 }
 0xbb0   :  { %7844 = vmatmul.mubr.msk.f32.vlgmr.msra.gmra.mrb[34].mxu1 %vm254_vm2, %v2617_v60 }
 0xbb1   :  { %7852 = vmatpush3.msra.mxu1 %v2859_v29  ;;  %7853 = vmatprep.mubr.msk.f32.mxu1 %vm8639_vm1, %v8638_v37 }
 0xbb2   :  { %7861 = vmatprep.subr.mxu1 %v8638_v37 }
 0xbf7   :  { %v2601_v63 = vpop.xlane.xlu1 %2600 }
 0xbf8   :  { %8431 = vrcp.f32 %v2601_v63 }
 0xbfb   :  { %v2607_v40 = vpop.xlane.xlu1 %2606 }
 0xbfc   :  { %8433 = vrcp.f32 %v2607_v40  ;;  %v2598_v41 = vpop.xlane.xlu0 %2597 }
 0xbfd   :  { %8435 = vrcp.f32 %v2598_v41 }
 0xbff   :  { %v2613_v42 = vpop.xlane.xlu1 %2612 }
 0xc00   :  { %8437 = vrcp.f32 %v2613_v42  ;;  %v2604_v43 = vpop.xlane.xlu0 %2603 }
 0xc01   :  { %8439 = vrcp.f32 %v2604_v43 }
 0xc02   :  { %v8432_v44 = vpop.eup %8431 }
 0xc03   :  { %v2621_v46 = vmul.f32 %v8432_v44, %v8416_v1  ;;  %v3163_v55 = vpop.permute.xlu1 %3162 }
 0xc04   :  { %v2610_v50 = vpop.xlane.xlu0 %2609 }
 0xc05   :  { %8441 = vrcp.f32 %v2610_v50  ;;  %7854 = vmatmul.mubr.msk.f32.vlgmr.msra.gmra.mrb[36].mxu1 %vm254_vm2, %v2621_v46 }
 0xc06   :  { %v8434_v51 = vpop.eup %8433  ;;  %7862 = vmatpush3.msra.mxu1 %v3011_v31  ;;  %7863 = vmatprep.mubr.msk.f32.mxu1 %vm8639_vm1, %v8638_v37 }
 0xc07   :  { %v8436_v52 = vpop.eup %8435  ;;  %7871 = vmatprep.subr.mxu1 %v8638_v37  ;;  %v2625_v53 = vmul.f32 %v8434_v51, %v8418_v18 }
 0xc08   :  { %v2619_v54 = vmul.f32 %v8436_v52, %v8420_v19  ;;  %v3087_v61 = vpop.permute.xlu0 %3086 }
 0xc09   :  { %7864 = vmatmul.mubr.msk.f32.vlgmr.msra.gmra.mrb[38].mxu1 %vm254_vm2, %v2625_v53 }
 0xc0a   :  { %v8438_v56 = vpop.eup %8437  ;;  %7849 = vmatmul.mubr.msk.f32.vlgmr.msra.gmra.mrb[24].mxu0 %vm254_vm2, %v2619_v54  ;;  %7872 = vmatpush3.msra.mxu1 %v3163_v55 }
 0xc0b   :  { %v8440_v57 = vpop.eup %8439  ;;  %7857 = vmatpush3.msra.mxu0 %v2935_v30  ;;  %7858 = vmatprep.mubr.msk.f32.mxu0 %vm8639_vm1, %v8638_v37  ;;  %v2629_v58 = vmul.f32 %v8438_v56, %v8422_v22 }
 0xc0c   :  { %7866 = vmatprep.subr.mxu0 %v8638_v37  ;;  %7873 = vmatprep.mubr.msk.f32.mxu1 %vm8639_vm1, %v8638_v37  ;;  %v2623_v59 = vmul.f32 %v8440_v57, %v9186_v23  ;;  %v3403_v57 = vld [vmem:[%s9962_s8] sm:$0xff] }
 0xc0d   :  { %7874 = vmatmul.mubr.msk.f32.vlgmr.msra.gmra.mrb[40].mxu1 %vm254_vm2, %v2629_v58  ;;  %v3404_v58 = vld [vmem:[%s9962_s8 + $0x8] sm:$0xff] }
 0xc0e   :  { %7859 = vmatmul.mubr.msk.f32.vlgmr.msra.gmra.mrb[26].mxu0 %vm254_vm2, %v2623_v59  ;;  %v3405_v59 = vld [vmem:[%s9962_s8 + $0x10] sm:$0xff] }
 0xc0f   :  { %v8442_v62 = vpop.eup %8441  ;;  %7867 = vmatpush3.msra.mxu0 %v3087_v61  ;;  %7868 = vmatprep.mubr.msk.f32.mxu0 %vm8639_vm1, %v8638_v37  ;;  %v8234_v61 = vpack.c.bf16 %v3404_v58, %v3403_v57 }
 0xc10   :  { %v2627_v2 = vmul.f32 %v8442_v62, %v9191_v26  ;;  %8227 = vmatprep.subr.bf16.mxu0 %v8226_v9  ;;  %v3406_v62 = vld [vmem:[%s9962_s8 + $0x18] sm:$0xff] }
 0xc11   :  { %8235 = vmatprep.subr.bf16.mxu1 %v8234_v61 }
 0xc12   :  { %7869 = vmatmul.mubr.msk.f32.vlgmr.msra.gmra.mrb[28].mxu0 %vm254_vm2, %v2627_v2  ;;  %v8238_v2 = vpack.c.bf16 %v3406_v62, %v3405_v59  ;;  %8237 = vmatpush3.bf16.msra.mxu1 %v8234_v61 }
 0xc13   :  { %8229 = vmatpush3.bf16.msra.mxu0 %v8226_v9 }
 0xc14   :  { %8231 = vmatprep.subr.bf16.mxu0 %v8230_v48  ;;  %8239 = vmatprep.subr.bf16.mxu1 %v8238_v2 }
 0xc16   :  { %8241 = vmatpush3.bf16.msra.mxu1 %v8238_v2 }
 0xc17   :  { %8233 = vmatpush3.bf16.msra.mxu0 %v8230_v48  ;;  %v7309_v48 = vld [vmem:[%s9957_s3 + $0x2] ss:$0 sm:$0xff] }
 0xc7f   :  { %v2702_v3 = vpop.f32.mrb[22].mxu0 }
 0xc80   :  { %v7840_v4 = vpop.f32.mrb[23].mxu0 }
 0xc83   :  { %v2778_v5 = vpop.f32.mrb[34].mxu1 }
 0xc84   :  { %v7845_v6 = vpop.f32.mrb[35].mxu1 }
 0xcd8   :  { %v2930_v13 = vpop.f32.mrb[36].mxu1 }
 0xcd9   :  { %3242 = vrot.lane.b32.xlu1 %v2930_v13, %s8634_s16  ;;  %v7855_v14 = vpop.f32.mrb[37].mxu1 }
 0xcdc   :  { %v3082_v15 = vpop.f32.mrb[38].mxu1 }
 0xcdd   :  { %v2854_v1 = vpop.f32.mrb[24].mxu0  ;;  %3250 = vrot.lane.b32.xlu1 %v3082_v15, %s8636_s0  ;;  %v7865_v0 = vpop.f32.mrb[39].mxu1 }
 0xcde   :  { %3240 = vrot.lane.b32.xlu0 %v2854_v1, %s8634_s16  ;;  %v7850_v16 = vpop.f32.mrb[25].mxu0 }
 0xce0   :  { %v3234_v17 = vpop.f32.mrb[40].mxu1 }
 0xce1   :  { %v3006_v18 = vpop.f32.mrb[26].mxu0  ;;  %3258 = vrot.lane.b32.xlu1 %v3234_v17, %s8645_s21  ;;  %v7875_v19 = vpop.f32.mrb[41].mxu1  ;;  %v3513_v17 = vld [vmem:[%s9964_s10] sm:$0xff] }
 0xce2   :  { %3248 = vrot.lane.b32.xlu0 %v3006_v18, %s8636_s0  ;;  %v7860_v20 = vpop.f32.mrb[27].mxu0  ;;  %v3514_v18 = vld [vmem:[%s9964_s10 + $0x8] sm:$0xff] }
 0xce3   :  { %v8242_v19 = vpack.c.bf16 %v3514_v18, %v3513_v17  ;;  %v3515_v20 = vld [vmem:[%s9964_s10 + $0x10] sm:$0xff] }
 0xce5   :  { %v3158_v21 = vpop.f32.mrb[28].mxu0  ;;  %8243 = vmatprep.subr.bf16.mxu0 %v8242_v19 }
 0xce6   :  { %3256 = vrot.lane.b32.xlu0 %v3158_v21, %s8645_s21  ;;  %v7870_v22 = vpop.f32.mrb[29].mxu0  ;;  %v3516_v21 = vld [vmem:[%s9964_s10 + $0x18] sm:$0xff] }
 0xce7   :  { %v8246_v22 = vpack.c.bf16 %v3516_v21, %v3515_v20 }
 0xd4b   :  { %v3243_v23 = vpop.permute.xlu1 %3242 }
 0xd4c   :  { %v3263_v29 = vsel %vm254_vm2, %v2778_v5, %v3243_v23  ;;  %v3517_v23 = vld [vmem:[%s9964_s10 + $0x20] sm:$0xff] }
 0xd4f   :  { %v3251_v25 = vpop.permute.xlu1 %3250 }
 0xd50   :  { %v3241_v24 = vpop.permute.xlu0 %3240  ;;  %v3265_v32 = vsel %vm1583_vm3, %v3263_v29, %v3251_v25  ;;  %v3521_v29 = vld [vmem:[%s9964_s10 + $0x40] sm:$0xff] }
 0xd51   :  { %v3262_v27 = vsel %vm254_vm2, %v2702_v3, %v3241_v24  ;;  %v3518_v24 = vld [vmem:[%s9964_s10 + $0x28] sm:$0xff] }
 0xd52   :  { %v8250_v25 = vpack.c.bf16 %v3518_v24, %v3517_v23  ;;  %v7318_v24 = vld [vmem:[%s9958_s4 + $0x40] sm:$0xff] }
 0xd53   :  { %v3259_v28 = vpop.permute.xlu1 %3258 }
 0xd54   :  { %v3249_v26 = vpop.permute.xlu0 %3248  ;;  %v3267_v36 = vsel %vm1586_vm4, %v3265_v32, %v3259_v28 }
 0xd55   :  { %v3264_v30 = vsel %vm1583_vm3, %v3262_v27, %v3249_v26  ;;  %v3519_v26 = vld [vmem:[%s9964_s10 + $0x30] sm:$0xff]  ;;  %v3520_v27 = vld [vmem:[%s9964_s10 + $0x38] sm:$0xff] }
 0xd56   :  { %v8254_v28 = vpack.c.bf16 %v3520_v27, %v3519_v26  ;;  %v7320_v26 = vld [vmem:[%s9958_s4 + $0x50] sm:$0xff] }
 0xd58   :  { %v3257_v31 = vpop.permute.xlu0 %3256 }
 0xd59   :  { %v3266_v34 = vsel %vm1586_vm4, %v3264_v30, %v3257_v31  ;;  %v3522_v30 = vld [vmem:[%s9964_s10 + $0x48] sm:$0xff]  ;;  %v3523_v31 = vld [vmem:[%s9964_s10 + $0x50] sm:$0xff] }
 0xd5a   :  { %7884 = vmatprep.mubr.msk.f32.mxu0 %vm97_vm0, %v3266_v34  ;;  %v8258_v32 = vpack.c.bf16 %v3522_v30, %v3521_v29  ;;  %v3524_v34 = vld [vmem:[%s9964_s10 + $0x58] sm:$0xff] }
 0xd5b   :  { %7885 = vmatmul.mubr.msk.f32.vlgmr.msra.gmra.mrb[30].mxu0 %vm97_vm0, %v3267_v36  ;;  %v8262_v36 = vpack.c.bf16 %v3524_v34, %v3523_v31 }
 0xd5c   :  { %8245 = vmatpush3.bf16.msra.mxu0 %v8242_v19 }
 0xd5d   :  { %8247 = vmatprep.subr.bf16.mxu0 %v8246_v22 }
 0xd60   :  { %8249 = vmatpush3.bf16.msra.mxu0 %v8246_v22 }
 0xd61   :  { %8251 = vmatprep.subr.bf16.mxu0 %v8250_v25 }
 0xd64   :  { %8253 = vmatpush3.bf16.msra.mxu0 %v8250_v25  ;;  %v7319_v25 = vld [vmem:[%s9958_s4 + $0x48] sm:$0xff] }
 0xd65   :  { %8255 = vmatprep.subr.bf16.mxu0 %v8254_v28  ;;  %v8274_v27 = vpack.c.bf16 %v7319_v25, %v7318_v24 }
 0xd67   :  { %8275 = vmatprep.subr.bf16.mxu1 %v8274_v27 }
 0xd68   :  { %8257 = vmatpush3.bf16.msra.mxu0 %v8254_v28  ;;  %v7321_v28 = vld [vmem:[%s9958_s4 + $0x58] sm:$0xff] }
 0xd69   :  { %8259 = vmatprep.subr.bf16.mxu0 %v8258_v32  ;;  %v8278_v29 = vpack.c.bf16 %v7321_v28, %v7320_v26 }
 0xd6c   :  { %8261 = vmatpush3.bf16.msra.mxu0 %v8258_v32 }
 0xd6d   :  { %8263 = vmatprep.subr.bf16.mxu0 %v8262_v36 }
 0xd70   :  { %8265 = vmatpush3.bf16.msra.mxu0 %v8262_v36 }
 0xe2e   :  { %v7886_v39 = vpop.f32.mrb[30].mxu0 }
 0xe2f   :  { %v3352_v60 = vadd.f32 %v7886_v39, %v7303_v38  ;;  %v3346_v63 = vpop.f32.mrb[31].mxu0  ;;  %v3526_v39 = vld [vmem:[%s9964_s10 + $0x68] sm:$0xff] }
 0xe30   :  { %v3347_v40 = vadd.f32 %v7303_v38, %v3346_v63  ;;  %v3525_v38 = vld [vmem:[%s9964_s10 + $0x60] sm:$0xff]  ;;  %v3527_v63 = vld [vmem:[%s9964_s10 + $0x70] sm:$0xff] }
 0xe31   :  { %v9254_v41 = vadd.f32 %v3352_v60, %v9019_v11  ;;  %v8266_v60 = vpack.c.bf16 %v3526_v39, %v3525_v38 }
 0xe32   :  { %v9257_v42 = vadd.f32 %v3347_v40, %v9022_v12  ;;  %v3528_v40 = vld [vmem:[%s9964_s10 + $0x78] sm:$0xff] }
 0xe33   :  { %v3364_v43 = vsel %vm97_vm0, %v9254_v41, 0.0  ;;  %8267 = vmatprep.subr.bf16.mxu0 %v8266_v60 }
 0xe34   :  { %3365 = vadd.xlane.f32.xlu1 %v3364_v43  ;;  %v3361_v44 = vsel %vm97_vm0, %v9257_v42, 0.0  ;;  %v8270_v43 = vpack.c.bf16 %v3528_v40, %v3527_v63  ;;  %8269 = vmatpush3.bf16.msra.mxu0 %v8266_v60  ;;  %v7316_v60 = vld [vmem:[%s9956_s2 + $0x3] ss:$0 sm:$0xff] }
 0xe35   :  { %3362 = vadd.xlane.f32.xlu0 %v3361_v44  ;;  %v7310_v44 = vld [vmem:[%s9963_s9] ss:$0 sm:$0xff] }
 0xe36   :  { %8271 = vmatprep.subr.bf16.mxu0 %v8270_v43 }
 0xe38   :  { %8273 = vmatpush3.bf16.msra.mxu0 %v8270_v43 }
 0xe39   :  { %7974 = vmatprep.subr.mxu0 %v8638_v37 }
 0xec1   :  { %v3366_v46 = vpop.xlane.xlu1 %3365 }
 0xec2   :  { %v3368_v50 = vmul.f32 0.03125, %v3366_v46  ;;  %v3363_v51 = vpop.xlane.xlu0 %3362 }
 0xec3   :  { %v3367_v52 = vmul.f32 0.03125, %v3363_v51 }
 0xec4   :  { %v3370_v53 = vsub.f32 %v9254_v41, %v3368_v50 }
 0xec5   :  { %v3369_v11 = vsub.f32 %v9257_v42, %v3367_v52 }
 0xec6   :  { %v3372_v55 = vmul.f32 %v3370_v53, %v3370_v53 }
 0xec7   :  { %v3371_v54 = vmul.f32 %v3369_v11, %v3369_v11 }
 0xec8   :  { %v3376_v56 = vsel %vm97_vm0, %v3372_v55, 0.0 }
 0xec9   :  { %v3373_v12 = vsel %vm97_vm0, %v3371_v54, 0.0 }
 0xeca   :  { %3374 = vadd.xlane.f32.xlu0 %v3373_v12 }
 0xece   :  { %3377 = vadd.xlane.f32.xlu0 %v3376_v56 }
 0xf57   :  { %v3375_v3 = vpop.xlane.xlu0 %3374 }
 0xf58   :  { %v3379_v4 = vmul.f32 0.03125, %v3375_v3 }
 0xf5a   :  { %v3381_v5 = vadd.f32 1e-05, %v3379_v4 }
 0xf5b   :  { %v3378_v6 = vpop.xlane.xlu0 %3377 }
 0xf5c   :  { %8443 = vrsqrt.f32 %v3381_v5  ;;  %v3380_v7 = vmul.f32 0.03125, %v3378_v6 }
 0xf5e   :  { %v3382_v8 = vadd.f32 1e-05, %v3380_v7 }
 0xf60   :  { %8445 = vrsqrt.f32 %v3382_v8 }
 0xf66   :  { %v8444_v9 = vpop.eup %8443 }
 0xf67   :  { %v3385_v45 = vmul.f32 %v8444_v9, %v3369_v11  ;;  %v7313_v9 = vld [vmem:[%s9965_s11] ss:$0 sm:$0xff] }
 0xf69   :  { %v3393_v13 = vmul.f32 %v7308_v10, %v3385_v45 }
 0xf6a   :  { %v8446_v14 = vpop.eup %8445 }
 0xf6b   :  { %v3386_v15 = vmul.f32 %v8446_v14, %v3370_v53  ;;  %v3401_v1 = vadd.f32 %v7309_v48, %v3393_v13 }
 0xf6d   :  { %v3394_v0 = vmul.f32 %v7308_v10, %v3386_v15  ;;  %7895 = vmatprep.mubr.msk.f32.mxu1 %vm97_vm0, %v3401_v1 }
 0xf6f   :  { %v3402_v16 = vadd.f32 %v7309_v48, %v3394_v0 }
 0xf71   :  { %7896 = vmatmul.mubr.msk.f32.vlgmr.msra.gmra.mrb[42].mxu1 %vm97_vm0, %v3402_v16 }
 0xf72   :  { %8277 = vmatpush3.bf16.msra.mxu1 %v8274_v27 }
 0xf73   :  { %8279 = vmatprep.subr.bf16.mxu1 %v8278_v29 }
 0xf76   :  { %8281 = vmatpush3.bf16.msra.mxu1 %v8278_v29 }
 0xf77   :  { %7944 = vmatprep.subr.mxu1 %v8638_v37 }
0x1044   :  { %v7897_v46 = vpop.f32.mrb[42].mxu1 }
0x1045   :  { %v3492_v50 = vadd.f32 %v7897_v46, %v7310_v44  ;;  %v3486_v51 = vpop.f32.mrb[43].mxu1 }
0x1046   :  { %v3487_v52 = vadd.f32 %v7310_v44, %v3486_v51  ;;  %v7317_v44 = vld [vmem:[%s9957_s3 + $0x3] ss:$0 sm:$0xff] }
0x1047   :  { %v3496_v53 = vmul.f32 %v3492_v50, %v3492_v50 }
0x1048   :  { %v3495_v11 = vmul.f32 %v3487_v52, %v3487_v52 }
0x1049   :  { %v3498_v54 = vmul.f32 %v3496_v53, %v3492_v50  ;;  %v7323_v53 = vld [vmem:[%s9959_s5 + $0x2] ss:$0 sm:$0xff] }
0x104a   :  { %v3497_v12 = vmul.f32 %v3495_v11, %v3487_v52 }
0x104b   :  { %v3500_v55 = vmul.f32 0.044715, %v3498_v54 }
0x104c   :  { %v3499_v56 = vmul.f32 0.044715, %v3497_v12 }
0x104d   :  { %v3502_v57 = vadd.f32 %v3500_v55, %v3492_v50 }
0x104e   :  { %v3501_v58 = vadd.f32 %v3499_v56, %v3487_v52 }
0x104f   :  { %v3504_v59 = vmul.f32 0.7978846, %v3502_v57 }
0x1050   :  { %v3503_v61 = vmul.f32 0.7978846, %v3501_v58 }
0x1051   :  { %8447 = vtanh.f32 %v3504_v59 }
0x1052   :  { %8449 = vtanh.f32 %v3503_v61 }
0x105b   :  { %v8448_v62 = vpop.eup %8447 }
0x105c   :  { %v8450_v2 = vpop.eup %8449  ;;  %v3508_v3 = vadd.f32 1.0, %v8448_v62 }
0x105d   :  { %v3507_v4 = vadd.f32 1.0, %v8450_v2 }
0x105e   :  { %v3510_v5 = vmul.f32 0.5, %v3508_v3 }
0x105f   :  { %v3509_v6 = vmul.f32 0.5, %v3507_v4 }
0x1060   :  { %v3512_v8 = vmul.f32 %v3510_v5, %v3492_v50 }
0x1061   :  { %v3511_v7 = vmul.f32 %v3509_v6, %v3487_v52 }
0x1063   :  { %7930 = vmatprep.mubr.f32.mxu0 %v3511_v7 }
0x1064   :  { %7931 = vmatmul.mubr.f32.vlgmr.msra.gmra.mrb[32].mxu0 %v3512_v8 }
0x1065   :  { %7976 = vmatprep.mubr.msk.f32.mxu0 %vm8639_vm1, %v8638_v37 }
0x1137   :  { %v7932_v10 = vpop.f32.mrb[32].mxu0 }
0x1138   :  { %v3608_v45 = vadd.f32 %v7932_v10, %v7313_v9  ;;  %v3602_v48 = vpop.f32.mrb[33].mxu0 }
0x1139   :  { %v3603_v13 = vadd.f32 %v7313_v9, %v3602_v48 }
0x113a   :  { %v9345_v14 = vadd.f32 %v3608_v45, %v9254_v41 }
0x113b   :  { %v9348_v15 = vadd.f32 %v3603_v13, %v9257_v42 }
0x113c   :  { %v3636_v1 = vsel %vm97_vm0, %v9345_v14, 0.0 }
0x113d   :  { %3637 = vadd.xlane.f32.xlu1 %v3636_v1  ;;  %v3633_v0 = vsel %vm97_vm0, %v9348_v15, 0.0 }
0x113e   :  { %3634 = vadd.xlane.f32.xlu0 %v3633_v0 }
0x11ca   :  { %v3638_v16 = vpop.xlane.xlu1 %3637 }
0x11cb   :  { %v3640_v17 = vmul.f32 0.03125, %v3638_v16  ;;  %v3635_v18 = vpop.xlane.xlu0 %3634 }
0x11cc   :  { %v3639_v19 = vmul.f32 0.03125, %v3635_v18 }
0x11cd   :  { %v3642_v20 = vsub.f32 %v9345_v14, %v3640_v17 }
0x11ce   :  { %v3641_v41 = vsub.f32 %v9348_v15, %v3639_v19 }
0x11cf   :  { %v3644_v21 = vmul.f32 %v3642_v20, %v3642_v20 }
0x11d0   :  { %v3643_v22 = vmul.f32 %v3641_v41, %v3641_v41 }
0x11d1   :  { %v3648_v42 = vsel %vm97_vm0, %v3644_v21, 0.0 }
0x11d2   :  { %3649 = vadd.xlane.f32.xlu1 %v3648_v42  ;;  %v3645_v23 = vsel %vm97_vm0, %v3643_v22, 0.0 }
0x11d3   :  { %3646 = vadd.xlane.f32.xlu0 %v3645_v23 }
0x125f   :  { %v3650_v30 = vpop.xlane.xlu1 %3649 }
0x1260   :  { %v3652_v31 = vmul.f32 0.03125, %v3650_v30  ;;  %v3647_v32 = vpop.xlane.xlu0 %3646 }
0x1261   :  { %v3651_v34 = vmul.f32 0.03125, %v3647_v32 }
0x1262   :  { %v3654_v36 = vadd.f32 1e-05, %v3652_v31 }
0x1263   :  { %v3653_v38 = vadd.f32 1e-05, %v3651_v34 }
0x1264   :  { %8451 = vrsqrt.f32 %v3654_v36 }
0x1265   :  { %8453 = vrsqrt.f32 %v3653_v38 }
0x126e   :  { %v8452_v39 = vpop.eup %8451 }
0x126f   :  { %v8454_v63 = vpop.eup %8453  ;;  %v3658_v40 = vmul.f32 %v8452_v39, %v3642_v20 }
0x1270   :  { %v3657_v43 = vmul.f32 %v8454_v63, %v3641_v41 }
0x1271   :  { %v3666_v46 = vmul.f32 %v7316_v60, %v3658_v40 }
0x1272   :  { %v3665_v50 = vmul.f32 %v7316_v60, %v3657_v43 }
0x1273   :  { %v3674_v52 = vadd.f32 %v7317_v44, %v3666_v46 }
0x1274   :  { %v3673_v51 = vadd.f32 %v7317_v44, %v3665_v50 }
0x1276   :  { %7941 = vmatprep.mubr.msk.f32.mxu1 %vm97_vm0, %v3673_v51 }
0x1277   :  { %7942 = vmatmul.mubr.msk.f32.vlgmr.msra.gmra.mrb[44].mxu1 %vm97_vm0, %v3674_v52 }
0x1278   :  { %7946 = vmatprep.mubr.msk.f32.mxu1 %vm8639_vm1, %v8638_v37 }
0x134a   :  { %v7943_v11 = vpop.f32.mrb[44].mxu1 }
0x134b   :  { %v9384_v54 = vadd.f32 %v7943_v11, %v7323_v53  ;;  %v3760_v12 = vpop.f32.mrb[45].mxu1 }
0x134c   :  { %v9386_v55 = vadd.f32 %v7323_v53, %v3760_v12 }
0x134d   :  { %3780 = vrot.lane.b32.xlu1 %v9384_v54, %s8640_s1 }
0x134e   :  { %3778 = vrot.lane.b32.xlu0 %v9386_v55, %s8640_s1 }
0x1351   :  { %3782 = vrot.lane.b32.xlu1 %v9386_v55, %s8641_s7 }
0x1352   :  { %3786 = vrot.lane.b32.xlu0 %v9386_v55, %s8642_s19 }
0x1355   :  { %3784 = vrot.lane.b32.xlu1 %v9384_v54, %s8641_s7 }
0x1356   :  { %3790 = vrot.lane.b32.xlu0 %v9386_v55, %s8643_s29 }
0x1359   :  { %3788 = vrot.lane.b32.xlu1 %v9384_v54, %s8642_s19 }
0x135d   :  { %3866 = vrot.lane.b32.xlu1 %v9384_v54, %s8643_s29 }
0x13bf   :  { %v9404_v56 = vpop.permute.xlu1 %3780 }
0x13c0   :  { %4018 = vrot.lane.b32.xlu1 %v9404_v56, %s8643_s29  ;;  %v9408_v57 = vpop.permute.xlu0 %3778 }
0x13c1   :  { %3942 = vrot.lane.b32.xlu0 %v9408_v57, %s8643_s29 }
0x13c3   :  { %v9412_v58 = vpop.permute.xlu1 %3782 }
0x13c4   :  { %v9414_v59 = vpop.permute.xlu0 %3786 }
0x13c5   :  { %4094 = vrot.lane.b32.xlu0 %v9412_v58, %s8643_s29 }
0x13c7   :  { %v9418_v61 = vpop.permute.xlu1 %3784 }
0x13c8   :  { %4170 = vrot.lane.b32.xlu1 %v9418_v61, %s8643_s29  ;;  %v9422_v62 = vpop.permute.xlu0 %3790 }
0x13c9   :  { %4246 = vrot.lane.b32.xlu0 %v9414_v59, %s8643_s29  ;;  %7945 = vmatpush3.xpose.msk.msra.mxu1 %vm254_vm2, %v9422_v62 }
0x13ca   :  { %7949 = vmatprep.subr.mxu1 %v8638_v37 }
0x13cb   :  { %v9429_v2 = vpop.permute.xlu1 %3788 }
0x13cc   :  { %4322 = vrot.lane.b32.xlu1 %v9429_v2, %s8643_s29  ;;  %7947 = vmatmul.mubr.msk.f32.vlgmr.msra.gmra.mrb[46].mxu1 %vm254_vm2, %v9386_v55 }
0x13cd   :  { %7951 = vmatprep.mubr.msk.f32.mxu1 %vm8639_vm1, %v8638_v37 }
0x13cf   :  { %v9437_v3 = vpop.permute.xlu1 %3866 }
0x13d0   :  { %7950 = vmatpush3.xpose.msk.msra.mxu1 %vm254_vm2, %v9437_v3 }
0x13d1   :  { %7954 = vmatprep.subr.mxu1 %v8638_v37 }
0x13d3   :  { %7952 = vmatmul.mubr.msk.f32.vlgmr.msra.gmra.mrb[48].mxu1 %vm254_vm2, %v9384_v54 }
0x13d4   :  { %7956 = vmatprep.mubr.msk.f32.mxu1 %vm8639_vm1, %v8638_v37 }
0x1432   :  { %v4019_v5 = vpop.permute.xlu1 %4018 }
0x1433   :  { %v3943_v4 = vpop.permute.xlu0 %3942 }
0x1434   :  { %7955 = vmatpush3.xpose.msk.msra.mxu1 %vm254_vm2, %v3943_v4 }
0x1435   :  { %7959 = vmatprep.subr.mxu1 %v8638_v37 }
0x1437   :  { %7957 = vmatmul.mubr.msk.f32.vlgmr.msra.gmra.mrb[50].mxu1 %vm254_vm2, %v9408_v57  ;;  %v4095_v6 = vpop.permute.xlu0 %4094 }
0x1438   :  { %7960 = vmatpush3.xpose.msk.msra.mxu1 %vm254_vm2, %v4019_v5  ;;  %7961 = vmatprep.mubr.msk.f32.mxu1 %vm8639_vm1, %v8638_v37 }
0x1439   :  { %7964 = vmatprep.subr.mxu1 %v8638_v37 }
0x143a   :  { %v4171_v8 = vpop.permute.xlu1 %4170 }
0x143b   :  { %7962 = vmatmul.mubr.msk.f32.vlgmr.msra.gmra.mrb[52].mxu1 %vm254_vm2, %v9404_v56  ;;  %v4247_v7 = vpop.permute.xlu0 %4246 }
0x143c   :  { %7965 = vmatpush3.xpose.msk.msra.mxu1 %vm254_vm2, %v4095_v6  ;;  %7975 = vmatpush3.xpose.msk.msra.mxu0 %vm254_vm2, %v4247_v7 }
0x143d   :  { %7966 = vmatprep.mubr.msk.f32.mxu1 %vm8639_vm1, %v8638_v37  ;;  %7969 = vmatprep.subr.mxu1 %v8638_v37 }
0x143e   :  { %7984 = vmatprep.subr.mxu0 %v8638_v37  ;;  %v4323_v9 = vpop.permute.xlu1 %4322 }
0x143f   :  { %7967 = vmatmul.mubr.msk.f32.vlgmr.msra.gmra.mrb[54].mxu1 %vm254_vm2, %v9412_v58  ;;  %7977 = vmatmul.mubr.msk.f32.vlgmr.msra.gmra.mrb[34].mxu0 %vm254_vm2, %v9414_v59 }
0x1440   :  { %7970 = vmatpush3.xpose.msk.msra.mxu1 %vm254_vm2, %v4171_v8  ;;  %7971 = vmatprep.mubr.msk.f32.mxu1 %vm8639_vm1, %v8638_v37 }
0x1441   :  { %7979 = vmatprep.subr.mxu1 %v8638_v37  ;;  %7986 = vmatprep.mubr.msk.f32.mxu0 %vm8639_vm1, %v8638_v37 }
0x1443   :  { %7972 = vmatmul.mubr.msk.f32.vlgmr.msra.gmra.mrb[56].mxu1 %vm254_vm2, %v9418_v61 }
0x1444   :  { %7980 = vmatpush3.xpose.msk.msra.mxu1 %vm254_vm2, %v4323_v9  ;;  %7981 = vmatprep.mubr.msk.f32.mxu1 %vm8639_vm1, %v8638_v37 }
0x1445   :  { %7989 = vmatprep.subr.mxu1 %v8638_v37 }
0x1447   :  { %7982 = vmatmul.mubr.msk.f32.vlgmr.msra.gmra.mrb[58].mxu1 %vm254_vm2, %v9429_v2 }
0x1448   :  { %7991 = vmatprep.mubr.msk.f32.mxu1 %vm8639_vm1, %v8638_v37 }
0x149f   :  { %v3862_v10 = vpop.f32.mrb[46].mxu1 }
0x14a0   :  { %v7948_v45 = vpop.f32.mrb[47].mxu1  ;;  %v4398_v48 = vsel %vm254_vm2, %v3862_v10, -inf }
0x14a1   :  { %4399 = vmax.xlane.f32.xlu0 %v4398_v48 }
0x14a6   :  { %v3938_v13 = vpop.f32.mrb[48].mxu1 }
0x14a7   :  { %v7953_v1 = vpop.f32.mrb[49].mxu1  ;;  %v4401_v0 = vsel %vm254_vm2, %v3938_v13, -inf }
0x14a8   :  { %4402 = vmax.xlane.f32.xlu1 %v4401_v0 }
0x150a   :  { %v4014_v16 = vpop.f32.mrb[50].mxu1 }
0x150b   :  { %v7958_v17 = vpop.f32.mrb[51].mxu1  ;;  %v4404_v18 = vsel %vm254_vm2, %v4014_v16, -inf }
0x150c   :  { %4405 = vmax.xlane.f32.xlu0 %v4404_v18 }
0x150e   :  { %v4090_v19 = vpop.f32.mrb[52].mxu1 }
0x150f   :  { %v7963_v20 = vpop.f32.mrb[53].mxu1  ;;  %v4407_v41 = vsel %vm254_vm2, %v4090_v19, -inf }
0x1510   :  { %4408 = vmax.xlane.f32.xlu0 %v4407_v41 }
0x1512   :  { %v4166_v21 = vpop.f32.mrb[54].mxu1  ;;  %v4318_v22 = vpop.f32.mrb[34].mxu0 }
0x1513   :  { %v7968_v42 = vpop.f32.mrb[55].mxu1  ;;  %v7978_v23 = vpop.f32.mrb[35].mxu0  ;;  %v4410_v24 = vsel %vm254_vm2, %v4166_v21, -inf  ;;  %v4416_v28 = vsel %vm254_vm2, %v4318_v22, -inf }
0x1514   :  { %4411 = vmax.xlane.f32.xlu0 %v4410_v24 }
0x1516   :  { %v4242_v25 = vpop.f32.mrb[56].mxu1 }
0x1517   :  { %v7973_v26 = vpop.f32.mrb[57].mxu1  ;;  %v4413_v27 = vsel %vm254_vm2, %v4242_v25, -inf }
0x1518   :  { %4414 = vmax.xlane.f32.xlu1 %v4413_v27  ;;  %4417 = vmax.xlane.f32.xlu0 %v4416_v28 }
0x151a   :  { %v4394_v29 = vpop.f32.mrb[58].mxu1 }
0x151b   :  { %v7983_v30 = vpop.f32.mrb[59].mxu1  ;;  %v4419_v31 = vsel %vm254_vm2, %v4394_v29, -inf }
0x151c   :  { %4420 = vmax.xlane.f32.xlu1 %v4419_v31 }
0x152d   :  { %4562 = vrot.lane.b32.xlu1 %v9384_v54, %s8644_s17 }
0x152e   :  { %4486 = vrot.lane.b32.xlu0 %v9386_v55, %s8644_s17  ;;  %v4400_v32 = vpop.xlane.xlu0 %4399 }
0x152f   :  { %v4422_v34 = vsub.f32 %v3862_v10, %v4400_v32 }
0x1531   :  { %4638 = vrot.lane.b32.xlu1 %v9408_v57, %s8644_s17  ;;  %v4430_v36 = vmul.f32 1.442695, %v4422_v34 }
0x1532   :  { %4790 = vrot.lane.b32.xlu0 %v9412_v58, %s8644_s17 }
0x1533   :  { %8455 = vpow2.f32 %v4430_v36 }
0x1535   :  { %4714 = vrot.lane.b32.xlu1 %v9404_v56, %s8644_s17  ;;  %v4403_v38 = vpop.xlane.xlu1 %4402 }
0x1536   :  { %v4423_v39 = vsub.f32 %v3938_v13, %v4403_v38 }
0x1538   :  { %v4432_v60 = vmul.f32 1.442695, %v4423_v39 }
0x1539   :  { %4866 = vrot.lane.b32.xlu1 %v9418_v61, %s8644_s17 }
0x153a   :  { %8457 = vpow2.f32 %v4432_v60 }
0x153d   :  { %v9502_v63 = vpop.eup %8455 }
0x153e   :  { %v4446_v40 = vsel %vm254_vm2, %v9502_v63, 0.0 }
0x1544   :  { %v9506_v43 = vpop.eup %8457 }
0x1545   :  { %v4449_v44 = vsel %vm254_vm2, %v9506_v43, 0.0 }
0x1551   :  { %4447 = vadd.xlane.f32.xlu0 %v4446_v40 }
0x155d   :  { %4450 = vadd.xlane.f32.xlu1 %v4449_v44 }
0x1599   :  { %v4406_v46 = vpop.xlane.xlu0 %4405 }
0x159a   :  { %v4424_v50 = vsub.f32 %v4014_v16, %v4406_v46 }
0x159c   :  { %v4434_v51 = vmul.f32 1.442695, %v4424_v50 }
0x159d   :  { %v4409_v52 = vpop.xlane.xlu0 %4408 }
0x159e   :  { %8459 = vpow2.f32 %v4434_v51  ;;  %v4425_v53 = vsub.f32 %v4090_v19, %v4409_v52 }
0x15a0   :  { %v4436_v11 = vmul.f32 1.442695, %v4425_v53 }
0x15a1   :  { %v4412_v54 = vpop.xlane.xlu0 %4411 }
0x15a2   :  { %8461 = vpow2.f32 %v4436_v11  ;;  %v4426_v12 = vsub.f32 %v4166_v21, %v4412_v54 }
0x15a4   :  { %v4438_v6 = vmul.f32 1.442695, %v4426_v12 }
0x15a5   :  { %v4415_v55 = vpop.xlane.xlu1 %4414  ;;  %v4418_v56 = vpop.xlane.xlu0 %4417 }
0x15a6   :  { %v4427_v57 = vsub.f32 %v4242_v25, %v4415_v55  ;;  %v4428_v58 = vsub.f32 %v4318_v22, %v4418_v56 }
0x15a8   :  { %v8460_v61 = vpop.eup %8459  ;;  %v4440_v4 = vmul.f32 1.442695, %v4427_v57  ;;  %v4442_v5 = vmul.f32 1.442695, %v4428_v58 }
0x15a9   :  { %v4421_v7 = vpop.xlane.xlu1 %4420  ;;  %v4487_v8 = vpop.permute.xlu0 %4486  ;;  %v4452_v9 = vsel %vm254_vm2, %v8460_v61, 0.0 }
0x15aa   :  { %8463 = vpow2.f32 %v4440_v4  ;;  %v4429_v10 = vsub.f32 %v4394_v29, %v4421_v7  ;;  %4453 = vadd.xlane.f32.xlu0 %v4452_v9  ;;  %7985 = vmatpush3.msra.mxu0 %v4487_v8  ;;  %v7327_v4 = vld [vmem:[%s9960_s6 + $0x48] sm:$0xff]  ;;  %v7328_v9 = vld [vmem:[%s9960_s6 + $0x50] sm:$0xff] }
0x15ab   :  { %8465 = vpow2.f32 %v4442_v5  ;;  %7994 = vmatprep.subr.mxu0 %v8638_v37 }
0x15ac   :  { %v8462_v45 = vpop.eup %8461  ;;  %v4444_v48 = vmul.f32 1.442695, %v4429_v10  ;;  %8467 = vpow2.f32 %v4438_v6  ;;  %v7329_v10 = vld [vmem:[%s9960_s6 + $0x58] sm:$0xff] }
0x15ad   :  { %v4563_v13 = vpop.permute.xlu1 %4562  ;;  %v4455_v1 = vsel %vm254_vm2, %v8462_v45, 0.0  ;;  %v4791_v22 = vpop.permute.xlu0 %4790 }
0x15ae   :  { %8469 = vpow2.f32 %v4444_v48  ;;  %7990 = vmatpush3.msra.mxu1 %v4563_v13  ;;  %4456 = vadd.xlane.f32.xlu1 %v4455_v1 }
0x15af   :  { %7999 = vmatprep.subr.mxu1 %v8638_v37 }
0x15b1   :  { %v4639_v42 = vpop.permute.xlu1 %4638 }
0x15b4   :  { %v8464_v0 = vpop.eup %8463 }
0x15b5   :  { %v9514_v16 = vpop.eup %8465  ;;  %v4461_v17 = vsel %vm254_vm2, %v8464_v0, 0.0  ;;  %v4715_v24 = vpop.permute.xlu1 %4714 }
0x15b6   :  { %4462 = vadd.xlane.f32.xlu1 %v4461_v17  ;;  %v4464_v18 = vsel %vm254_vm2, %v9514_v16, 0.0  ;;  %v8468_v19 = vpop.eup %8467 }
0x15b7   :  { %4465 = vadd.xlane.f32.xlu0 %v4464_v18  ;;  %v4458_v21 = vsel %vm254_vm2, %v8468_v19, 0.0 }
0x15b8   :  { %v8470_v20 = vpop.eup %8469 }
0x15b9   :  { %v4467_v41 = vsel %vm254_vm2, %v8470_v20, 0.0  ;;  %v4867_v25 = vpop.permute.xlu1 %4866 }
0x15ba   :  { %4468 = vadd.xlane.f32.xlu1 %v4467_v41 }
0x15bb   :  { %4459 = vadd.xlane.f32.xlu0 %v4458_v21 }
0x15cb   :  { %5018 = vrot.lane.b32.xlu1 %v9429_v2, %s8644_s17 }
0x15d1   :  { %4942 = vrot.lane.b32.xlu0 %v9414_v59, %s8644_s17 }
0x15de   :  { %v4448_v23 = vpop.xlane.xlu0 %4447 }
0x15df   :  { %8471 = vrcp.f32 %v4448_v23 }
0x15e9   :  { %v8472_v26 = vpop.eup %8471 }
0x15ea   :  { %v4471_v27 = vmul.f32 %v8472_v26, %v9502_v63  ;;  %v4451_v28 = vpop.xlane.xlu1 %4450 }
0x15eb   :  { %8473 = vrcp.f32 %v4451_v28 }
0x15ec   :  { %7987 = vmatmul.mubr.msk.f32.vlgmr.msra.gmra.mrb[36].mxu0 %vm254_vm2, %v4471_v27 }
0x15ed   :  { %7995 = vmatpush3.msra.mxu0 %v4639_v42  ;;  %7996 = vmatprep.mubr.msk.f32.mxu0 %vm8639_vm1, %v8638_v37 }
0x15ee   :  { %8004 = vmatprep.subr.mxu0 %v8638_v37 }
0x15f5   :  { %v8474_v59 = vpop.eup %8473 }
0x15f6   :  { %v4473_v2 = vmul.f32 %v8474_v59, %v9506_v43 }
0x15f8   :  { %7992 = vmatmul.mubr.msk.f32.vlgmr.msra.gmra.mrb[60].mxu1 %vm254_vm2, %v4473_v2  ;;  %v8535_v2 = vld [vmem:[#allocation5] sm:$0xff] }
0x15f9   :  { %8000 = vmatpush3.msra.mxu1 %v4715_v24  ;;  %8001 = vmatprep.mubr.msk.f32.mxu1 %vm8639_vm1, %v8638_v37 }
0x15fa   :  { %8009 = vmatprep.subr.mxu1 %v8638_v37 }
0x1637   :  { %v4454_v29 = vpop.xlane.xlu0 %4453 }
0x1638   :  { %8475 = vrcp.f32 %v4454_v29  ;;  %v7354_v29 = vld [vmem:[#allocation7 + $0x2] ss:$0 sm:$0xff] }
0x163b   :  { %v4457_v30 = vpop.xlane.xlu1 %4456 }
0x163c   :  { %8477 = vrcp.f32 %v4457_v30 }
0x1642   :  { %v8476_v31 = vpop.eup %8475 }
0x1643   :  { %v4475_v32 = vmul.f32 %v8476_v31, %v8460_v61  ;;  %v4463_v34 = vpop.xlane.xlu1 %4462  ;;  %v7326_v61 = vld [vmem:[%s9960_s6 + $0x40] sm:$0xff] }
0x1644   :  { %8479 = vrcp.f32 %v4463_v34  ;;  %v4466_v36 = vpop.xlane.xlu0 %4465  ;;  %v8282_v6 = vpack.c.bf16 %v7327_v4, %v7326_v61 }
0x1645   :  { %7997 = vmatmul.mubr.msk.f32.vlgmr.msra.gmra.mrb[38].mxu0 %vm254_vm2, %v4475_v32 }
0x1646   :  { %v8478_v38 = vpop.eup %8477  ;;  %8005 = vmatpush3.msra.mxu0 %v4791_v22  ;;  %8006 = vmatprep.mubr.msk.f32.mxu0 %vm8639_vm1, %v8638_v37 }
0x1647   :  { %v4477_v39 = vmul.f32 %v8478_v38, %v8462_v45  ;;  %v4469_v60 = vpop.xlane.xlu1 %4468  ;;  %8014 = vmatprep.subr.mxu0 %v8638_v37  ;;  %v8286_v45 = vpack.c.bf16 %v7329_v10, %v7328_v9 }
0x1648   :  { %8481 = vrcp.f32 %v4469_v60  ;;  %v4460_v63 = vpop.xlane.xlu0 %4459 }
0x1649   :  { %8483 = vrcp.f32 %v4460_v63  ;;  %8002 = vmatmul.mubr.msk.f32.vlgmr.msra.gmra.mrb[62].mxu1 %vm254_vm2, %v4477_v39  ;;  %v7361_v63 = vld [vmem:[%s9958_s4 + $0x60] sm:$0xff] }
0x164a   :  { %8010 = vmatpush3.msra.mxu1 %v4867_v25  ;;  %8011 = vmatprep.mubr.msk.f32.mxu1 %vm8639_vm1, %v8638_v37  ;;  %8485 = vrcp.f32 %v4466_v36 }
0x164b   :  { %8019 = vmatprep.subr.mxu1 %v8638_v37  ;;  %v5019_v44 = vpop.permute.xlu1 %5018 }
0x164c   :  { %v4943_v11 = vpop.permute.xlu0 %4942 }
0x164e   :  { %v8480_v40 = vpop.eup %8479 }
0x164f   :  { %v4481_v43 = vmul.f32 %v8480_v40, %v8464_v0 }
0x1651   :  { %8012 = vmatmul.mubr.msk.f32.vlgmr.msra.gmra.mrb[64].mxu1 %vm254_vm2, %v4481_v43  ;;  %v7364_v43 = vld [vmem:[%s9958_s4 + $0x78] sm:$0xff] }
0x1652   :  { %v8482_v46 = vpop.eup %8481  ;;  %8020 = vmatpush3.msra.mxu1 %v5019_v44  ;;  %8021 = vmatprep.mubr.msk.f32.mxu1 %vm8639_vm1, %v8638_v37 }
0x1653   :  { %v8484_v50 = vpop.eup %8483  ;;  %v4485_v51 = vmul.f32 %v8482_v46, %v8470_v20  ;;  %v8536_v46 = vld [vmem:[#allocation5 + $0x8] sm:$0xff] }
0x1654   :  { %v4479_v52 = vmul.f32 %v8484_v50, %v8468_v19  ;;  %v8486_v53 = vpop.eup %8485 }
0x1655   :  { %8022 = vmatmul.mubr.msk.f32.vlgmr.msra.gmra.mrb[66].mxu1 %vm254_vm2, %v4485_v51  ;;  %v4483_v54 = vmul.f32 %v8486_v53, %v9514_v16 }
0x1656   :  { %8007 = vmatmul.mubr.msk.f32.vlgmr.msra.gmra.mrb[40].mxu0 %vm254_vm2, %v4479_v52 }
0x1657   :  { %8015 = vmatpush3.msra.mxu0 %v4943_v11  ;;  %8016 = vmatprep.mubr.msk.f32.mxu0 %vm8639_vm1, %v8638_v37 }
0x1658   :  { %8283 = vmatprep.subr.bf16.mxu0 %v8282_v6 }
0x165a   :  { %8017 = vmatmul.mubr.msk.f32.vlgmr.msra.gmra.mrb[42].mxu0 %vm254_vm2, %v4483_v54 }
0x165b   :  { %8285 = vmatpush3.bf16.msra.mxu0 %v8282_v6 }
0x165c   :  { %8287 = vmatprep.subr.bf16.mxu0 %v8286_v45 }
0x165f   :  { %8289 = vmatpush3.bf16.msra.mxu0 %v8286_v45 }
0x16bf   :  { %v4558_v12 = vpop.f32.mrb[36].mxu0 }
0x16c0   :  { %v7988_v55 = vpop.f32.mrb[37].mxu0 }
0x16cb   :  { %v4634_v56 = vpop.f32.mrb[60].mxu1 }
0x16cc   :  { %v7993_v57 = vpop.f32.mrb[61].mxu1 }
0x1718   :  { %v4710_v58 = vpop.f32.mrb[38].mxu0 }
0x1719   :  { %5096 = vrot.lane.b32.xlu0 %v4710_v58, %s8634_s16  ;;  %v7998_v5 = vpop.f32.mrb[39].mxu0  ;;  %v7366_v58 = vld [vmem:[%s9959_s5 + $0x3] ss:$0 sm:$0xff] }
0x171c   :  { %v4786_v7 = vpop.f32.mrb[62].mxu1 }
0x171d   :  { %5098 = vrot.lane.b32.xlu1 %v4786_v7, %s8634_s16  ;;  %v8003_v8 = vpop.f32.mrb[63].mxu1 }
0x1724   :  { %v4938_v48 = vpop.f32.mrb[64].mxu1 }
0x1725   :  { %5106 = vrot.lane.b32.xlu1 %v4938_v48, %s8636_s0  ;;  %v8013_v13 = vpop.f32.mrb[65].mxu1 }
0x1728   :  { %v5090_v1 = vpop.f32.mrb[66].mxu1 }
0x1729   :  { %v4862_v0 = vpop.f32.mrb[40].mxu0  ;;  %5114 = vrot.lane.b32.xlu1 %v5090_v1, %s8645_s21  ;;  %v8023_v16 = vpop.f32.mrb[67].mxu1  ;;  %v7359_v1 = vld [vmem:[%s9956_s2 + $0x4] ss:$0 sm:$0xff] }
0x172a   :  { %5104 = vrot.lane.b32.xlu0 %v4862_v0, %s8636_s0  ;;  %v8008_v17 = vpop.f32.mrb[41].mxu0  ;;  %v7360_v16 = vld [vmem:[%s9957_s3 + $0x4] ss:$0 sm:$0xff] }
0x172d   :  { %v5014_v18 = vpop.f32.mrb[42].mxu0 }
0x172e   :  { %5112 = vrot.lane.b32.xlu0 %v5014_v18, %s8645_s21  ;;  %v8018_v19 = vpop.f32.mrb[43].mxu0 }
0x178b   :  { %v5097_v41 = vpop.permute.xlu0 %5096 }
0x178c   :  { %v5118_v42 = vsel %vm254_vm2, %v4558_v12, %v5097_v41 }
0x178f   :  { %v5099_v20 = vpop.permute.xlu1 %5098 }
0x1790   :  { %v5119_v24 = vsel %vm254_vm2, %v4634_v56, %v5099_v20 }
0x1797   :  { %v5107_v21 = vpop.permute.xlu1 %5106 }
0x1798   :  { %v5121_v27 = vsel %vm1583_vm3, %v5119_v24, %v5107_v21 }
0x179b   :  { %v5115_v23 = vpop.permute.xlu1 %5114 }
0x179c   :  { %v5105_v22 = vpop.permute.xlu0 %5104  ;;  %v5123_v59 = vsel %vm1586_vm4, %v5121_v27, %v5115_v23 }
0x179d   :  { %v5120_v25 = vsel %vm1583_vm3, %v5118_v42, %v5105_v22 }
0x17a0   :  { %v5113_v26 = vpop.permute.xlu0 %5112 }
0x17a1   :  { %v5122_v28 = vsel %vm1586_vm4, %v5120_v25, %v5113_v26 }
0x17a2   :  { %8032 = vmatprep.mubr.msk.f32.mxu0 %vm97_vm0, %v5122_v28 }
0x17a3   :  { %8033 = vmatmul.mubr.msk.f32.vlgmr.msra.gmra.mrb[44].mxu0 %vm97_vm0, %v5123_v59 }
0x17a4   :  { %8054 = vmatprep.mubr.msk.f32.mxu0 %vm97_vm0, %v8535_v2 }
0x1876   :  { %v8034_v30 = vpop.f32.mrb[44].mxu0 }
0x1877   :  { %v5208_v31 = vadd.f32 %v8034_v30, %v7354_v29  ;;  %v5202_v32 = vpop.f32.mrb[45].mxu0 }
0x1878   :  { %v5203_v34 = vadd.f32 %v7354_v29, %v5202_v32 }
0x1879   :  { %v9580_v36 = vadd.f32 %v5208_v31, %v9345_v14  ;;  %v7362_v14 = vld [vmem:[%s9958_s4 + $0x68] sm:$0xff] }
0x187a   :  { %v9583_v38 = vadd.f32 %v5203_v34, %v9348_v15  ;;  %v7363_v15 = vld [vmem:[%s9958_s4 + $0x70] sm:$0xff]  ;;  %v8290_v40 = vpack.c.bf16 %v7362_v14, %v7361_v63 }
0x187b   :  { %v5220_v39 = vsel %vm97_vm0, %v9580_v36, 0.0  ;;  %v8294_v44 = vpack.c.bf16 %v7364_v43, %v7363_v15 }
0x187c   :  { %5221 = vadd.xlane.f32.xlu1 %v5220_v39  ;;  %v5217_v60 = vsel %vm97_vm0, %v9583_v38, 0.0  ;;  %8299 = vmatprep.subr.bf16.mxu0 %v8290_v40 }
0x187d   :  { %5218 = vadd.xlane.f32.xlu0 %v5217_v60  ;;  %8291 = vmatprep.subr.bf16.mxu1 %v8290_v40 }
0x187e   :  { %8301 = vmatpush3.bf16.msra.mxu0 %v8290_v40  ;;  %8293 = vmatpush3.bf16.msra.mxu1 %v8290_v40 }
0x187f   :  { %8303 = vmatprep.subr.bf16.mxu0 %v8294_v44  ;;  %8295 = vmatprep.subr.bf16.mxu1 %v8294_v44 }
0x1882   :  { %8305 = vmatpush3.bf16.msra.mxu0 %v8294_v44  ;;  %8297 = vmatpush3.bf16.msra.mxu1 %v8294_v44 }
0x1883   :  { %8057 = vmatprep.subr.mxu1 %v8638_v37  ;;  %8067 = vmatprep.subr.mxu0 %v8638_v37 }
0x1885   :  { %8055 = vmatmul.mubr.msk.f32.vlgmr.msra.gmra.mrb[46].mxu0 %vm97_vm0, %v8536_v46 }
0x1886   :  { %8069 = vmatprep.mubr.msk.f32.mxu0 %vm8639_vm1, %v8638_v37 }
0x1909   :  { %v5222_v50 = vpop.xlane.xlu1 %5221 }
0x190a   :  { %v5224_v51 = vmul.f32 0.03125, %v5222_v50  ;;  %v5219_v52 = vpop.xlane.xlu0 %5218 }
0x190b   :  { %v5223_v53 = vmul.f32 0.03125, %v5219_v52 }
0x190c   :  { %v5226_v11 = vsub.f32 %v9580_v36, %v5224_v51 }
0x190d   :  { %v5225_v54 = vsub.f32 %v9583_v38, %v5223_v53 }
0x190e   :  { %v5228_v56 = vmul.f32 %v5226_v11, %v5226_v11 }
0x190f   :  { %v5227_v12 = vmul.f32 %v5225_v54, %v5225_v54 }
0x1910   :  { %v5232_v57 = vsel %vm97_vm0, %v5228_v56, 0.0 }
0x1911   :  { %v5229_v55 = vsel %vm97_vm0, %v5227_v12, 0.0 }
0x1912   :  { %5230 = vadd.xlane.f32.xlu0 %v5229_v55 }
0x1916   :  { %5233 = vadd.xlane.f32.xlu0 %v5232_v57 }
0x1958   :  { %v8056_v61 = vpop.f32.mrb[46].mxu0 }
0x1959   :  { %v9613_v4 = vadd.f32 %v8056_v61, %v7366_v58  ;;  %v5419_v5 = vpop.f32.mrb[47].mxu0 }
0x195a   :  { %v9615_v6 = vadd.f32 %v7366_v58, %v5419_v5 }
0x195b   :  { %5453 = vrot.lane.b32.xlu1 %v9613_v4, %s8640_s1 }
0x195c   :  { %5451 = vrot.lane.b32.xlu0 %v9615_v6, %s8640_s1 }
0x195f   :  { %5455 = vrot.lane.b32.xlu1 %v9615_v6, %s8641_s7 }
0x1960   :  { %5459 = vrot.lane.b32.xlu0 %v9615_v6, %s8642_s19 }
0x1963   :  { %5457 = vrot.lane.b32.xlu1 %v9613_v4, %s8641_s7 }
0x1964   :  { %5463 = vrot.lane.b32.xlu0 %v9615_v6, %s8643_s29 }
0x1967   :  { %5461 = vrot.lane.b32.xlu1 %v9613_v4, %s8642_s19 }
0x196b   :  { %5539 = vrot.lane.b32.xlu1 %v9613_v4, %s8643_s29 }
0x199f   :  { %v5231_v7 = vpop.xlane.xlu0 %5230 }
0x19a0   :  { %v5235_v8 = vmul.f32 0.03125, %v5231_v7 }
0x19a2   :  { %v5237_v9 = vadd.f32 1e-05, %v5235_v8 }
0x19a3   :  { %v5234_v10 = vpop.xlane.xlu0 %5233 }
0x19a4   :  { %8487 = vrsqrt.f32 %v5237_v9  ;;  %v5236_v45 = vmul.f32 0.03125, %v5234_v10 }
0x19a6   :  { %v5238_v48 = vadd.f32 1e-05, %v5236_v45 }
0x19a8   :  { %8489 = vrsqrt.f32 %v5238_v48 }
0x19ae   :  { %v8488_v13 = vpop.eup %8487 }
0x19af   :  { %v5241_v0 = vmul.f32 %v8488_v13, %v5225_v54 }
0x19b1   :  { %v5249_v17 = vmul.f32 %v7359_v1, %v5241_v0 }
0x19b2   :  { %v8490_v18 = vpop.eup %8489 }
0x19b3   :  { %v5242_v19 = vmul.f32 %v8490_v18, %v5226_v11  ;;  %v5257_v20 = vadd.f32 %v7360_v16, %v5249_v17 }
0x19b5   :  { %v5250_v41 = vmul.f32 %v7359_v1, %v5242_v19  ;;  %8043 = vmatprep.mubr.msk.f32.mxu1 %vm97_vm0, %v5257_v20 }
0x19b7   :  { %v5258_v21 = vadd.f32 %v7360_v16, %v5250_v41 }
0x19b9   :  { %8044 = vmatmul.mubr.msk.f32.vlgmr.msra.gmra.mrb[68].mxu1 %vm97_vm0, %v5258_v21 }
0x19ba   :  { %8059 = vmatprep.mubr.msk.f32.mxu1 %vm8639_vm1, %v8638_v37 }
0x19cd   :  { %v9643_v22 = vpop.permute.xlu1 %5453 }
0x19ce   :  { %v9645_v42 = vpop.permute.xlu0 %5451  ;;  %5691 = vrot.lane.b32.xlu1 %v9643_v22, %s8643_s29 }
0x19cf   :  { %5615 = vrot.lane.b32.xlu0 %v9645_v42, %s8643_s29 }
0x19d1   :  { %v9651_v23 = vpop.permute.xlu1 %5455 }
0x19d2   :  { %v9653_v24 = vpop.permute.xlu0 %5459 }
0x19d3   :  { %5767 = vrot.lane.b32.xlu0 %v9651_v23, %s8643_s29 }
0x19d5   :  { %v9657_v25 = vpop.permute.xlu1 %5457 }
0x19d6   :  { %5843 = vrot.lane.b32.xlu1 %v9657_v25, %s8643_s29  ;;  %v5464_v26 = vpop.permute.xlu0 %5463 }
0x19d7   :  { %5919 = vrot.lane.b32.xlu0 %v9653_v24, %s8643_s29  ;;  %8058 = vmatpush3.xpose.msk.msra.mxu1 %vm254_vm2, %v5464_v26 }
0x19d8   :  { %8062 = vmatprep.subr.mxu1 %v8638_v37 }
0x19d9   :  { %v9665_v27 = vpop.permute.xlu1 %5461 }
0x19da   :  { %5995 = vrot.lane.b32.xlu1 %v9665_v27, %s8643_s29 }
0x19dd   :  { %v5540_v31 = vpop.permute.xlu1 %5539 }
0x1a40   :  { %v5692_v32 = vpop.permute.xlu1 %5691 }
0x1a41   :  { %v5616_v28 = vpop.permute.xlu0 %5615 }
0x1a42   :  { %8068 = vmatpush3.xpose.msk.msra.mxu0 %vm254_vm2, %v5616_v28 }
0x1a43   :  { %8077 = vmatprep.subr.mxu0 %v8638_v37 }
0x1a45   :  { %v5768_v39 = vpop.permute.xlu0 %5767 }
0x1a48   :  { %v5844_v34 = vpop.permute.xlu1 %5843 }
0x1a49   :  { %v5920_v63 = vpop.permute.xlu0 %5919 }
0x1a4c   :  { %v5996_v60 = vpop.permute.xlu1 %5995 }
0x1a8c   :  { %v8045_v59 = vpop.f32.mrb[68].mxu1 }
0x1a8d   :  { %v5350_v2 = vadd.f32 %v8045_v59, %v7366_v58  ;;  %v5344_v29 = vpop.f32.mrb[69].mxu1 }
0x1a8e   :  { %v5345_v30 = vadd.f32 %v7366_v58, %v5344_v29 }
0x1a8f   :  { %5439 = vrot.lane.b32.xlu1 %v5350_v2, %s8640_s1 }
0x1a90   :  { %5437 = vrot.lane.b32.xlu0 %v5345_v30, %s8640_s1  ;;  %8060 = vmatmul.mubr.msk.f32.vlgmr.msra.gmra.mrb[70].mxu1 %vm254_vm2, %v5345_v30 }
0x1a91   :  { %8063 = vmatpush3.xpose.msk.msra.mxu1 %vm254_vm2, %v5540_v31  ;;  %8064 = vmatprep.mubr.msk.f32.mxu1 %vm8639_vm1, %v8638_v37 }
0x1a92   :  { %8072 = vmatprep.subr.mxu1 %v8638_v37 }
0x1a93   :  { %5443 = vrot.lane.b32.xlu1 %v5350_v2, %s8641_s7 }
0x1a94   :  { %5441 = vrot.lane.b32.xlu0 %v5345_v30, %s8641_s7  ;;  %8065 = vmatmul.mubr.msk.f32.vlgmr.msra.gmra.mrb[72].mxu1 %vm254_vm2, %v5350_v2 }
0x1a95   :  { %8073 = vmatpush3.xpose.msk.msra.mxu1 %vm254_vm2, %v5692_v32  ;;  %8074 = vmatprep.mubr.msk.f32.mxu1 %vm8639_vm1, %v8638_v37 }
0x1a96   :  { %8082 = vmatprep.subr.mxu1 %v8638_v37 }
0x1a97   :  { %5447 = vrot.lane.b32.xlu1 %v5350_v2, %s8642_s19 }
0x1a98   :  { %5445 = vrot.lane.b32.xlu0 %v5345_v30, %s8642_s19 }
0x1b01   :  { %v5440_v14 = vpop.permute.xlu1 %5439 }
0x1b02   :  { %8075 = vmatmul.mubr.msk.f32.vlgmr.msra.gmra.mrb[74].mxu1 %vm254_vm2, %v5440_v14  ;;  %v5438_v15 = vpop.permute.xlu0 %5437 }
0x1b03   :  { %8083 = vmatpush3.xpose.msk.msra.mxu1 %vm254_vm2, %v5844_v34  ;;  %8070 = vmatmul.mubr.msk.f32.vlgmr.msra.gmra.mrb[48].mxu0 %vm254_vm2, %v5438_v15 }
0x1b04   :  { %8078 = vmatpush3.xpose.msk.msra.mxu0 %vm254_vm2, %v5768_v39  ;;  %8084 = vmatprep.mubr.msk.f32.mxu1 %vm8639_vm1, %v8638_v37 }
0x1b05   :  { %v5444_v40 = vpop.permute.xlu1 %5443  ;;  %8092 = vmatprep.subr.mxu1 %v8638_v37  ;;  %8079 = vmatprep.mubr.msk.f32.mxu0 %vm8639_vm1, %v8638_v37 }
0x1b06   :  { %8085 = vmatmul.mubr.msk.f32.vlgmr.msra.gmra.mrb[76].mxu1 %vm254_vm2, %v5444_v40  ;;  %8087 = vmatprep.subr.mxu0 %v8638_v37  ;;  %v5442_v43 = vpop.permute.xlu0 %5441 }
0x1b07   :  { %8093 = vmatpush3.xpose.msk.msra.mxu1 %vm254_vm2, %v5996_v60  ;;  %8080 = vmatmul.mubr.msk.f32.vlgmr.msra.gmra.mrb[50].mxu0 %vm254_vm2, %v5442_v43 }
0x1b08   :  { %8088 = vmatpush3.xpose.msk.msra.mxu0 %vm254_vm2, %v5920_v63  ;;  %8094 = vmatprep.mubr.msk.f32.mxu1 %vm8639_vm1, %v8638_v37 }
0x1b09   :  { %v5448_v44 = vpop.permute.xlu1 %5447  ;;  %8089 = vmatprep.mubr.msk.f32.mxu0 %vm8639_vm1, %v8638_v37  ;;  %8102 = vmatprep.subr.mxu1 %v8638_v37 }
0x1b0a   :  { %8095 = vmatmul.mubr.msk.f32.vlgmr.msra.gmra.mrb[78].mxu1 %vm254_vm2, %v5448_v44  ;;  %v5446_v46 = vpop.permute.xlu0 %5445  ;;  %8097 = vmatprep.subr.mxu0 %v8638_v37 }
0x1b0b   :  { %8090 = vmatmul.mubr.msk.f32.vlgmr.msra.gmra.mrb[52].mxu0 %vm254_vm2, %v5446_v46  ;;  %8104 = vmatprep.mubr.msk.f32.mxu1 %vm8639_vm1, %v8638_v37 }
0x1b0c   :  { %8099 = vmatprep.mubr.msk.f32.mxu0 %vm8639_vm1, %v8638_v37 }
0x1b63   :  { %v5535_v50 = vpop.f32.mrb[70].mxu1 }
0x1b64   :  { %v8061_v51 = vpop.f32.mrb[71].mxu1  ;;  %v6071_v52 = vsel %vm254_vm2, %v5535_v50, -inf }
0x1b65   :  { %6072 = vmax.xlane.f32.xlu0 %v6071_v52 }
0x1b67   :  { %v5611_v53 = vpop.f32.mrb[72].mxu1 }
0x1b68   :  { %v8066_v11 = vpop.f32.mrb[73].mxu1  ;;  %v6074_v54 = vsel %vm254_vm2, %v5611_v53, -inf }
0x1b69   :  { %6075 = vmax.xlane.f32.xlu1 %v6074_v54 }
0x1bd5   :  { %v5763_v12 = vpop.f32.mrb[74].mxu1 }
0x1bd6   :  { %v5687_v55 = vpop.f32.mrb[48].mxu0  ;;  %v8076_v56 = vpop.f32.mrb[75].mxu1  ;;  %v6080_v57 = vsel %vm254_vm2, %v5763_v12, -inf }
0x1bd7   :  { %6081 = vmax.xlane.f32.xlu0 %v6080_v57  ;;  %v8071_v58 = vpop.f32.mrb[49].mxu0  ;;  %v6077_v9 = vsel %vm254_vm2, %v5687_v55, -inf }
0x1bd9   :  { %v5915_v61 = vpop.f32.mrb[76].mxu1 }
0x1bda   :  { %v5839_v5 = vpop.f32.mrb[50].mxu0  ;;  %v8086_v7 = vpop.f32.mrb[77].mxu1  ;;  %v6086_v8 = vsel %vm254_vm2, %v5915_v61, -inf }
0x1bdb   :  { %6087 = vmax.xlane.f32.xlu1 %v6086_v8  ;;  %6078 = vmax.xlane.f32.xlu0 %v6077_v9  ;;  %v8081_v10 = vpop.f32.mrb[51].mxu0  ;;  %v6083_v0 = vsel %vm254_vm2, %v5839_v5, -inf }
0x1bdd   :  { %v6067_v45 = vpop.f32.mrb[78].mxu1 }
0x1bde   :  { %v5991_v48 = vpop.f32.mrb[52].mxu0  ;;  %v8096_v13 = vpop.f32.mrb[79].mxu1  ;;  %v6092_v1 = vsel %vm254_vm2, %v6067_v45, -inf }
0x1bdf   :  { %6093 = vmax.xlane.f32.xlu1 %v6092_v1  ;;  %6084 = vmax.xlane.f32.xlu0 %v6083_v0  ;;  %v8091_v16 = vpop.f32.mrb[53].mxu0  ;;  %v6089_v17 = vsel %vm254_vm2, %v5991_v48, -inf }
0x1be3   :  { %6090 = vmax.xlane.f32.xlu0 %v6089_v17 }
0x1bf0   :  { %6235 = vrot.lane.b32.xlu1 %v9613_v4, %s8644_s17 }
0x1bf2   :  { %v6073_v18 = vpop.xlane.xlu0 %6072 }
0x1bf3   :  { %v6095_v19 = vsub.f32 %v5535_v50, %v6073_v18 }
0x1bf4   :  { %6311 = vrot.lane.b32.xlu1 %v9645_v42, %s8644_s17 }
0x1bf5   :  { %v6103_v41 = vmul.f32 1.442695, %v6095_v19 }
0x1bf6   :  { %v6076_v20 = vpop.xlane.xlu1 %6075 }
0x1bf7   :  { %v6096_v21 = vsub.f32 %v5611_v53, %v6076_v20  ;;  %8491 = vpow2.f32 %v6103_v41 }
0x1bf8   :  { %6387 = vrot.lane.b32.xlu1 %v9643_v22, %s8644_s17 }
0x1bf9   :  { %6159 = vrot.lane.b32.xlu0 %v9615_v6, %s8644_s17  ;;  %v6105_v26 = vmul.f32 1.442695, %v6096_v21 }
0x1bfb   :  { %8493 = vpow2.f32 %v6105_v26 }
0x1bfc   :  { %6539 = vrot.lane.b32.xlu1 %v9657_v25, %s8644_s17 }
0x1bfd   :  { %6463 = vrot.lane.b32.xlu0 %v9651_v23, %s8644_s17 }
0x1c01   :  { %v9733_v42 = vpop.eup %8491 }
0x1c02   :  { %v6119_v22 = vsel %vm254_vm2, %v9733_v42, 0.0 }
0x1c05   :  { %v9737_v28 = vpop.eup %8493 }
0x1c06   :  { %v6122_v25 = vsel %vm254_vm2, %v9737_v28, 0.0 }
0x1c1c   :  { %6120 = vadd.xlane.f32.xlu0 %v6119_v22 }
0x1c20   :  { %6123 = vadd.xlane.f32.xlu1 %v6122_v25 }
0x1c64   :  { %v6082_v23 = vpop.xlane.xlu0 %6081 }
0x1c65   :  { %v6098_v59 = vsub.f32 %v5763_v12, %v6082_v23 }
0x1c67   :  { %v6109_v2 = vmul.f32 1.442695, %v6098_v59 }
0x1c68   :  { %v6088_v29 = vpop.xlane.xlu1 %6087  ;;  %v6079_v30 = vpop.xlane.xlu0 %6078 }
0x1c69   :  { %8495 = vpow2.f32 %v6109_v2  ;;  %v6100_v31 = vsub.f32 %v5915_v61, %v6088_v29  ;;  %v6097_v32 = vsub.f32 %v5687_v55, %v6079_v30 }
0x1c6b   :  { %v6113_v34 = vmul.f32 1.442695, %v6100_v31  ;;  %v6107_v39 = vmul.f32 1.442695, %v6097_v32 }
0x1c6c   :  { %v6094_v60 = vpop.xlane.xlu1 %6093  ;;  %v6085_v63 = vpop.xlane.xlu0 %6084 }
0x1c6d   :  { %8497 = vpow2.f32 %v6113_v34  ;;  %v6102_v14 = vsub.f32 %v6067_v45, %v6094_v60  ;;  %v6099_v15 = vsub.f32 %v5839_v5, %v6085_v63 }
0x1c6e   :  { %8499 = vpow2.f32 %v6107_v39 }
0x1c6f   :  { %v6117_v40 = vmul.f32 1.442695, %v6102_v14  ;;  %v6111_v43 = vmul.f32 1.442695, %v6099_v15 }
0x1c70   :  { %v6236_v44 = vpop.permute.xlu1 %6235  ;;  %v6091_v46 = vpop.xlane.xlu0 %6090 }
0x1c71   :  { %8501 = vpow2.f32 %v6117_v40  ;;  %v6101_v50 = vsub.f32 %v5991_v48, %v6091_v46  ;;  %8103 = vmatpush3.msra.mxu1 %v6236_v44  ;;  %v7371_v40 = vld [vmem:[%s9960_s6 + $0x60] sm:$0xff]  ;;  %v7374_v46 = vld [vmem:[%s9960_s6 + $0x78] sm:$0xff] }
0x1c72   :  { %8503 = vpow2.f32 %v6111_v43  ;;  %8112 = vmatprep.subr.mxu1 %v8638_v37  ;;  %v7372_v43 = vld [vmem:[%s9960_s6 + $0x68] sm:$0xff] }
0x1c73   :  { %v8496_v51 = vpop.eup %8495  ;;  %v6115_v52 = vmul.f32 1.442695, %v6101_v50  ;;  %v8306_v44 = vpack.c.bf16 %v7372_v43, %v7371_v40 }
0x1c74   :  { %v6160_v53 = vpop.permute.xlu0 %6159  ;;  %v6128_v11 = vsel %vm254_vm2, %v8496_v51, 0.0  ;;  %v6312_v9 = vpop.permute.xlu1 %6311 }
0x1c75   :  { %8505 = vpow2.f32 %v6115_v52  ;;  %6129 = vadd.xlane.f32.xlu1 %v6128_v11  ;;  %8098 = vmatpush3.msra.mxu0 %v6160_v53 }
0x1c76   :  { %8107 = vmatprep.subr.mxu0 %v8638_v37 }
0x1c77   :  { %v8498_v54 = vpop.eup %8497 }
0x1c78   :  { %v8500_v12 = vpop.eup %8499  ;;  %v6134_v55 = vsel %vm254_vm2, %v8498_v54, 0.0  ;;  %v6388_v10 = vpop.permute.xlu1 %6387 }
0x1c79   :  { %6135 = vadd.xlane.f32.xlu1 %v6134_v55  ;;  %v6125_v56 = vsel %vm254_vm2, %v8500_v12, 0.0  ;;  %v6464_v45 = vpop.permute.xlu0 %6463 }
0x1c7a   :  { %6126 = vadd.xlane.f32.xlu0 %v6125_v56 }
0x1c7b   :  { %v8502_v57 = vpop.eup %8501 }
0x1c7c   :  { %v8504_v58 = vpop.eup %8503  ;;  %v6140_v61 = vsel %vm254_vm2, %v8502_v57, 0.0  ;;  %v6540_v48 = vpop.permute.xlu1 %6539 }
0x1c7d   :  { %6141 = vadd.xlane.f32.xlu1 %v6140_v61  ;;  %v6131_v5 = vsel %vm254_vm2, %v8504_v58, 0.0 }
0x1c7e   :  { %6132 = vadd.xlane.f32.xlu0 %v6131_v5 }
0x1c7f   :  { %v9748_v7 = vpop.eup %8505 }
0x1c80   :  { %v6137_v8 = vsel %vm254_vm2, %v9748_v7, 0.0 }
0x1c82   :  { %6138 = vadd.xlane.f32.xlu0 %v6137_v8 }
0x1c8e   :  { %6691 = vrot.lane.b32.xlu1 %v9665_v27, %s8644_s17 }
0x1c98   :  { %6615 = vrot.lane.b32.xlu0 %v9653_v24, %s8644_s17 }
0x1ca9   :  { %v6121_v13 = vpop.xlane.xlu0 %6120 }
0x1caa   :  { %8507 = vrcp.f32 %v6121_v13 }
0x1cad   :  { %v6124_v1 = vpop.xlane.xlu1 %6123 }
0x1cae   :  { %8509 = vrcp.f32 %v6124_v1 }
0x1cb4   :  { %v8508_v0 = vpop.eup %8507 }
0x1cb5   :  { %v6144_v16 = vmul.f32 %v8508_v0, %v9733_v42 }
0x1cb7   :  { %8100 = vmatmul.mubr.msk.f32.vlgmr.msra.gmra.mrb[54].mxu0 %vm254_vm2, %v6144_v16 }
0x1cb8   :  { %v8510_v17 = vpop.eup %8509  ;;  %8108 = vmatpush3.msra.mxu0 %v6312_v9  ;;  %8109 = vmatprep.mubr.msk.f32.mxu0 %vm8639_vm1, %v8638_v37 }
0x1cb9   :  { %v6146_v24 = vmul.f32 %v8510_v17, %v9737_v28  ;;  %8117 = vmatprep.subr.mxu0 %v8638_v37 }
0x1cbb   :  { %8105 = vmatmul.mubr.msk.f32.vlgmr.msra.gmra.mrb[80].mxu1 %vm254_vm2, %v6146_v24 }
0x1cbc   :  { %8113 = vmatpush3.msra.mxu1 %v6388_v10  ;;  %8114 = vmatprep.mubr.msk.f32.mxu1 %vm8639_vm1, %v8638_v37 }
0x1cbd   :  { %8122 = vmatprep.subr.mxu1 %v8638_v37 }
0x1d02   :  { %v6130_v27 = vpop.xlane.xlu1 %6129 }
0x1d03   :  { %8511 = vrcp.f32 %v6130_v27  ;;  %v7399_v27 = vld [vmem:[#allocation7 + $0x3] ss:$0 sm:$0xff] }
0x1d06   :  { %v6136_v18 = vpop.xlane.xlu1 %6135 }
0x1d07   :  { %8513 = vrcp.f32 %v6136_v18  ;;  %v6127_v19 = vpop.xlane.xlu0 %6126 }
0x1d08   :  { %8515 = vrcp.f32 %v6127_v19 }
0x1d0a   :  { %v6142_v20 = vpop.xlane.xlu1 %6141 }
0x1d0b   :  { %8517 = vrcp.f32 %v6142_v20  ;;  %v6133_v41 = vpop.xlane.xlu0 %6132 }
0x1d0c   :  { %8519 = vrcp.f32 %v6133_v41 }
0x1d0d   :  { %v8512_v21 = vpop.eup %8511 }
0x1d0e   :  { %v6150_v26 = vmul.f32 %v8512_v21, %v8496_v51  ;;  %v6692_v59 = vpop.permute.xlu1 %6691 }
0x1d0f   :  { %v6139_v42 = vpop.xlane.xlu0 %6138 }
0x1d10   :  { %8521 = vrcp.f32 %v6139_v42  ;;  %8115 = vmatmul.mubr.msk.f32.vlgmr.msra.gmra.mrb[82].mxu1 %vm254_vm2, %v6150_v26 }
0x1d11   :  { %v8514_v22 = vpop.eup %8513  ;;  %8123 = vmatpush3.msra.mxu1 %v6540_v48  ;;  %8124 = vmatprep.mubr.msk.f32.mxu1 %vm8639_vm1, %v8638_v37 }
0x1d12   :  { %v8516_v28 = vpop.eup %8515  ;;  %v6154_v25 = vmul.f32 %v8514_v22, %v8498_v54  ;;  %8132 = vmatprep.subr.mxu1 %v8638_v37 }
0x1d13   :  { %v6148_v23 = vmul.f32 %v8516_v28, %v8500_v12  ;;  %v6616_v32 = vpop.permute.xlu0 %6615 }
0x1d14   :  { %8125 = vmatmul.mubr.msk.f32.vlgmr.msra.gmra.mrb[84].mxu1 %vm254_vm2, %v6154_v25 }
0x1d15   :  { %v8518_v2 = vpop.eup %8517  ;;  %8110 = vmatmul.mubr.msk.f32.vlgmr.msra.gmra.mrb[56].mxu0 %vm254_vm2, %v6148_v23  ;;  %8133 = vmatpush3.msra.mxu1 %v6692_v59 }
0x1d16   :  { %v8520_v29 = vpop.eup %8519  ;;  %v6158_v30 = vmul.f32 %v8518_v2, %v8502_v57  ;;  %8118 = vmatpush3.msra.mxu0 %v6464_v45  ;;  %8119 = vmatprep.mubr.msk.f32.mxu0 %vm8639_vm1, %v8638_v37 }
0x1d17   :  { %v6152_v31 = vmul.f32 %v8520_v29, %v8504_v58  ;;  %8127 = vmatprep.subr.mxu0 %v8638_v37  ;;  %8134 = vmatprep.mubr.msk.f32.mxu1 %vm8639_vm1, %v8638_v37 }
0x1d18   :  { %8135 = vmatmul.mubr.msk.f32.vlgmr.msra.gmra.mrb[86].mxu1 %vm254_vm2, %v6158_v30 }
0x1d19   :  { %8120 = vmatmul.mubr.msk.f32.vlgmr.msra.gmra.mrb[58].mxu0 %vm254_vm2, %v6152_v31 }
0x1d1a   :  { %v8522_v34 = vpop.eup %8521  ;;  %8128 = vmatpush3.msra.mxu0 %v6616_v32  ;;  %8129 = vmatprep.mubr.msk.f32.mxu0 %vm8639_vm1, %v8638_v37  ;;  %v7373_v37 = vld [vmem:[%s9960_s6 + $0x70] sm:$0xff]  ;;  %v7406_v32 = vld [vmem:[%s9962_s8 + $0x20] sm:$0xff] }
0x1d1b   :  { %v6156_v39 = vmul.f32 %v8522_v34, %v9748_v7  ;;  %8307 = vmatprep.subr.bf16.mxu0 %v8306_v44  ;;  %v8310_v50 = vpack.c.bf16 %v7374_v46, %v7373_v37  ;;  %v7407_v34 = vld [vmem:[%s9962_s8 + $0x28] sm:$0xff] }
0x1d1d   :  { %8130 = vmatmul.mubr.msk.f32.vlgmr.msra.gmra.mrb[60].mxu0 %vm254_vm2, %v6156_v39  ;;  %v8314_v39 = vpack.c.bf16 %v7407_v34, %v7406_v32 }
0x1d1e   :  { %8309 = vmatpush3.bf16.msra.mxu0 %v8306_v44 }
0x1d1f   :  { %8311 = vmatprep.subr.bf16.mxu0 %v8310_v50  ;;  %8315 = vmatprep.subr.bf16.mxu1 %v8314_v39 }
0x1d20   :  { %8317 = vmatpush3.bf16.msra.mxu1 %v8314_v39 }
0x1d22   :  { %8313 = vmatpush3.bf16.msra.mxu0 %v8310_v50 }
0x1d8a   :  { %v6231_v60 = vpop.f32.mrb[54].mxu0 }
0x1d8b   :  { %v8101_v63 = vpop.f32.mrb[55].mxu0 }
0x1d8c   :  { %v7409_v63 = vld [vmem:[%s9962_s8 + $0x38] sm:$0xff] }
0x1d8e   :  { %v6307_v14 = vpop.f32.mrb[80].mxu1 }
0x1d8f   :  { %v8106_v15 = vpop.f32.mrb[81].mxu1 }
0x1de3   :  { %v6459_v51 = vpop.f32.mrb[82].mxu1 }
0x1de4   :  { %6771 = vrot.lane.b32.xlu1 %v6459_v51, %s8634_s16  ;;  %v8116_v52 = vpop.f32.mrb[83].mxu1  ;;  %v7404_v51 = vld [vmem:[%s9956_s2 + $0x5] ss:$0 sm:$0xff] }
0x1de7   :  { %v6611_v53 = vpop.f32.mrb[84].mxu1 }
0x1de8   :  { %v6383_v11 = vpop.f32.mrb[56].mxu0  ;;  %6779 = vrot.lane.b32.xlu1 %v6611_v53, %s8636_s0  ;;  %v8126_v54 = vpop.f32.mrb[85].mxu1  ;;  %v7405_v53 = vld [vmem:[%s9957_s3 + $0x5] ss:$0 sm:$0xff] }
0x1de9   :  { %6769 = vrot.lane.b32.xlu0 %v6383_v11, %s8634_s16  ;;  %v8111_v12 = vpop.f32.mrb[57].mxu0 }
0x1deb   :  { %v6763_v55 = vpop.f32.mrb[86].mxu1 }
0x1dec   :  { %v6535_v56 = vpop.f32.mrb[58].mxu0  ;;  %6787 = vrot.lane.b32.xlu1 %v6763_v55, %s8645_s21  ;;  %v8136_v57 = vpop.f32.mrb[87].mxu1 }
0x1ded   :  { %6777 = vrot.lane.b32.xlu0 %v6535_v56, %s8636_s0  ;;  %v8121_v58 = vpop.f32.mrb[59].mxu0 }
0x1dee   :  { %v7414_v58 = vld [vmem:[%s9964_s10 + $0x80] sm:$0xff] }
0x1df0   :  { %v6687_v61 = vpop.f32.mrb[60].mxu0 }
0x1df1   :  { %6785 = vrot.lane.b32.xlu0 %v6687_v61, %s8645_s21  ;;  %v8131_v5 = vpop.f32.mrb[61].mxu0  ;;  %v7415_v61 = vld [vmem:[%s9964_s10 + $0x88] sm:$0xff] }
0x1df2   :  { %v8322_v5 = vpack.c.bf16 %v7415_v61, %v7414_v58 }
0x1df4   :  { %8323 = vmatprep.subr.bf16.mxu0 %v8322_v5 }
0x1e56   :  { %v6772_v7 = vpop.permute.xlu1 %6771 }
0x1e57   :  { %v6792_v13 = vsel %vm254_vm2, %v6307_v14, %v6772_v7  ;;  %v7416_v7 = vld [vmem:[%s9964_s10 + $0x90] sm:$0xff] }
0x1e5a   :  { %v6780_v9 = vpop.permute.xlu1 %6779 }
0x1e5b   :  { %v6770_v8 = vpop.permute.xlu0 %6769  ;;  %v6794_v16 = vsel %vm1583_vm3, %v6792_v13, %v6780_v9  ;;  %v7420_v13 = vld [vmem:[%s9964_s10 + $0xb0] sm:$0xff] }
0x1e5c   :  { %v6791_v45 = vsel %vm254_vm2, %v6231_v60, %v6770_v8  ;;  %v7408_v60 = vld [vmem:[%s9962_s8 + $0x30] sm:$0xff]  ;;  %v7417_v8 = vld [vmem:[%s9964_s10 + $0x98] sm:$0xff]  ;;  %s8647_s8 = smov [#allocation8]  }
0x1e5d   :  { %v8318_v14 = vpack.c.bf16 %v7409_v63, %v7408_v60  ;;  %v8326_v9 = vpack.c.bf16 %v7417_v8, %v7416_v7  ;;  %s7212_s1 = sshll.u32 %s8647_s8, 4  ;;  %s7213_s1 = int_to_ptr.vmem [resolvable:$true] %s7212_s1 }
0x1e5e   :  { %v6788_v48 = vpop.permute.xlu1 %6787  ;;  %p8608_p11 = scmp.lt.s32.totalorder %s7213_s1, %s7213_s1 }
0x1e5f   :  { %v6778_v10 = vpop.permute.xlu0 %6777  ;;  %v6796_v24 = vsel %vm1586_vm4, %v6794_v16, %v6788_v48  ;;  %8319 = vmatprep.subr.bf16.mxu1 %v8318_v14  ;;  %v7422_v16 = vld [vmem:[%s9964_s10 + $0xc0] sm:$0xff] }
0x1e60   :  { %v6793_v1 = vsel %vm1583_vm3, %v6791_v45, %v6778_v10  ;;  %8321 = vmatpush3.bf16.msra.mxu1 %v8318_v14  ;;  %v7418_v10 = vld [vmem:[%s9964_s10 + $0xa0] sm:$0xff]  ;;  %v7419_v45 = vld [vmem:[%s9964_s10 + $0xa8] sm:$0xff] }
0x1e61   :  { %v8330_v48 = vpack.c.bf16 %v7419_v45, %v7418_v10 }
0x1e63   :  { %v6786_v0 = vpop.permute.xlu0 %6785 }
0x1e64   :  { %v6795_v17 = vsel %vm1586_vm4, %v6793_v1, %v6786_v0  ;;  %v7421_v1 = vld [vmem:[%s9964_s10 + $0xb8] sm:$0xff] }
0x1e65   :  { %8145 = vmatprep.mubr.msk.f32.mxu0 %vm97_vm0, %v6795_v17  ;;  %v8334_v0 = vpack.c.bf16 %v7421_v1, %v7420_v13  ;;  %v7423_v17 = vld [vmem:[%s9964_s10 + $0xc8] sm:$0xff] }
0x1e66   :  { %8146 = vmatmul.mubr.msk.f32.vlgmr.msra.gmra.mrb[62].mxu0 %vm97_vm0, %v6796_v24  ;;  %v7424_v24 = vld [vmem:[%s9964_s10 + $0xd0] sm:$0xff] }
0x1e67   :  { %8325 = vmatpush3.bf16.msra.mxu0 %v8322_v5 }
0x1e68   :  { %8327 = vmatprep.subr.bf16.mxu0 %v8326_v9 }
0x1e6b   :  { %8329 = vmatpush3.bf16.msra.mxu0 %v8326_v9 }
0x1e6c   :  { %8331 = vmatprep.subr.bf16.mxu0 %v8330_v48 }
0x1e6f   :  { %8333 = vmatpush3.bf16.msra.mxu0 %v8330_v48 }
0x1e70   :  { %8335 = vmatprep.subr.bf16.mxu0 %v8334_v0 }
0x1e73   :  { %8337 = vmatpush3.bf16.msra.mxu0 %v8334_v0 }
0x1f39   :  { %v8147_v18 = vpop.f32.mrb[62].mxu0 }
0x1f3a   :  { %v6881_v19 = vadd.f32 %v8147_v18, %v7399_v27  ;;  %v6875_v20 = vpop.f32.mrb[63].mxu0  ;;  %v7425_v18 = vld [vmem:[%s9964_s10 + $0xd8] sm:$0xff] }
0x1f3b   :  { %v6876_v41 = vadd.f32 %v7399_v27, %v6875_v20  ;;  %v8338_v27 = vpack.c.bf16 %v7423_v17, %v7422_v16  ;;  %v7426_v20 = vld [vmem:[%s9964_s10 + $0xe0] sm:$0xff] }
0x1f3c   :  { %v9810_v21 = vadd.f32 %v6881_v19, %v9580_v36  ;;  %v8342_v19 = vpack.c.bf16 %v7425_v18, %v7424_v24 }
0x1f3d   :  { %v9813_v26 = vadd.f32 %v6876_v41, %v9583_v38  ;;  %8339 = vmatprep.subr.bf16.mxu0 %v8338_v27  ;;  %v7427_v41 = vld [vmem:[%s9964_s10 + $0xe8] sm:$0xff] }
0x1f3e   :  { %v6893_v42 = vsel %vm97_vm0, %v9810_v21, 0.0  ;;  %8341 = vmatpush3.bf16.msra.mxu0 %v8338_v27 }
0x1f3f   :  { %6894 = vadd.xlane.f32.xlu1 %v6893_v42  ;;  %v6890_v22 = vsel %vm97_vm0, %v9813_v26, 0.0  ;;  %8343 = vmatprep.subr.bf16.mxu0 %v8342_v19  ;;  %v8346_v42 = vpack.c.bf16 %v7427_v41, %v7426_v20 }
0x1f40   :  { %6891 = vadd.xlane.f32.xlu0 %v6890_v22  ;;  %v7428_v22 = vld [vmem:[%s9964_s10 + $0xf0] sm:$0xff] }
0x1f42   :  { %8345 = vmatpush3.bf16.msra.mxu0 %v8342_v19 }
0x1f43   :  { %8347 = vmatprep.subr.bf16.mxu0 %v8346_v42 }
0x1f46   :  { %8349 = vmatpush3.bf16.msra.mxu0 %v8346_v42 }
0x1fcc   :  { %v6895_v28 = vpop.xlane.xlu1 %6894 }
0x1fcd   :  { %v6897_v25 = vmul.f32 0.03125, %v6895_v28  ;;  %v6892_v23 = vpop.xlane.xlu0 %6891  ;;  %v7429_v28 = vld [vmem:[%s9964_s10 + $0xf8] sm:$0xff] }
0x1fce   :  { %v6896_v59 = vmul.f32 0.03125, %v6892_v23  ;;  %v7411_v23 = vld [vmem:[%s9963_s9 + $0x1] ss:$0 sm:$0xff] }
0x1fcf   :  { %v6899_v2 = vsub.f32 %v9810_v21, %v6897_v25  ;;  %v8350_v25 = vpack.c.bf16 %v7429_v28, %v7428_v22 }
0x1fd0   :  { %v6898_v36 = vsub.f32 %v9813_v26, %v6896_v59 }
0x1fd1   :  { %v6901_v30 = vmul.f32 %v6899_v2, %v6899_v2  ;;  %8351 = vmatprep.subr.bf16.mxu0 %v8350_v25 }
0x1fd2   :  { %v6900_v29 = vmul.f32 %v6898_v36, %v6898_v36  ;;  %8353 = vmatpush3.bf16.msra.mxu0 %v8350_v25 }
0x1fd3   :  { %v6905_v31 = vsel %vm97_vm0, %v6901_v30, 0.0 }
0x1fd4   :  { %v6902_v38 = vsel %vm97_vm0, %v6900_v29, 0.0 }
0x1fd5   :  { %6903 = vadd.xlane.f32.xlu0 %v6902_v38 }
0x1fd9   :  { %6906 = vadd.xlane.f32.xlu0 %v6905_v31 }
0x2062   :  { %v6904_v15 = vpop.xlane.xlu0 %6903 }
0x2063   :  { %v6908_v40 = vmul.f32 0.03125, %v6904_v15 }
0x2065   :  { %v6910_v43 = vadd.f32 1e-05, %v6908_v40 }
0x2066   :  { %v6907_v44 = vpop.xlane.xlu0 %6906 }
0x2067   :  { %8523 = vrsqrt.f32 %v6910_v43  ;;  %v6909_v37 = vmul.f32 0.03125, %v6907_v44 }
0x2069   :  { %v6911_v46 = vadd.f32 1e-05, %v6909_v37 }
0x206b   :  { %8525 = vrsqrt.f32 %v6911_v46 }
0x2071   :  { %v8524_v50 = vpop.eup %8523 }
0x2072   :  { %v6914_v52 = vmul.f32 %v8524_v50, %v6898_v36 }
0x2074   :  { %v6922_v11 = vmul.f32 %v7404_v51, %v6914_v52 }
0x2075   :  { %v8526_v54 = vpop.eup %8525 }
0x2076   :  { %v6915_v12 = vmul.f32 %v8526_v54, %v6899_v2  ;;  %v6930_v55 = vadd.f32 %v7405_v53, %v6922_v11 }
0x2078   :  { %v6923_v56 = vmul.f32 %v7404_v51, %v6915_v12  ;;  %8156 = vmatprep.mubr.msk.f32.mxu1 %vm97_vm0, %v6930_v55 }
0x207a   :  { %v6931_v57 = vadd.f32 %v7405_v53, %v6923_v56  ;;  %v7431_v53 = vld [vmem:[%s9965_s11 + $0x1] ss:$0 sm:$0xff]  ;;  %s8646_s11 = smov 32  }
0x207c   :  { %8157 = vmatmul.mubr.msk.f32.vlgmr.msra.gmra.mrb[88].mxu1 %vm97_vm0, %v6931_v57 }
0x214f   :  { %v8158_v59 = vpop.f32.mrb[88].mxu1 }
0x2150   :  { %v7023_v2 = vadd.f32 %v8158_v59, %v7411_v23  ;;  %v7017_v36 = vpop.f32.mrb[89].mxu1  ;;  %v7435_v59 = vld [vmem:[%s9967_s13] ss:$0 sm:$0xff] }
0x2151   :  { %v7018_v29 = vadd.f32 %v7411_v23, %v7017_v36 }
0x2152   :  { %v7027_v38 = vmul.f32 %v7023_v2, %v7023_v2 }
0x2153   :  { %v7026_v30 = vmul.f32 %v7018_v29, %v7018_v29 }
0x2154   :  { %v7029_v31 = vmul.f32 %v7027_v38, %v7023_v2 }
0x2155   :  { %v7028_v32 = vmul.f32 %v7026_v30, %v7018_v29 }
0x2156   :  { %v7031_v34 = vmul.f32 0.044715, %v7029_v31 }
0x2157   :  { %v7030_v39 = vmul.f32 0.044715, %v7028_v32 }
0x2158   :  { %v7033_v60 = vadd.f32 %v7031_v34, %v7023_v2 }
0x2159   :  { %v7032_v63 = vadd.f32 %v7030_v39, %v7018_v29 }
0x215a   :  { %v7035_v14 = vmul.f32 0.7978846, %v7033_v60 }
0x215b   :  { %v7034_v15 = vmul.f32 0.7978846, %v7032_v63 }
0x215c   :  { %8527 = vtanh.f32 %v7035_v14 }
0x215d   :  { %8529 = vtanh.f32 %v7034_v15 }
0x2166   :  { %v8528_v40 = vpop.eup %8527 }
0x2167   :  { %v8530_v43 = vpop.eup %8529  ;;  %v7039_v44 = vadd.f32 1.0, %v8528_v40 }
0x2168   :  { %v7038_v37 = vadd.f32 1.0, %v8530_v43 }
0x2169   :  { %v7041_v46 = vmul.f32 0.5, %v7039_v44 }
0x216a   :  { %v7040_v50 = vmul.f32 0.5, %v7038_v37 }
0x216b   :  { %v7043_v52 = vmul.f32 %v7041_v46, %v7023_v2 }
0x216c   :  { %v7042_v51 = vmul.f32 %v7040_v50, %v7018_v29 }
0x216e   :  { %8191 = vmatprep.mubr.f32.mxu0 %v7042_v51 }
0x216f   :  { %8192 = vmatmul.mubr.f32.vlgmr.msra.gmra.mrb[64].mxu0 %v7043_v52 }
0x2242   :  { %v8193_v11 = vpop.f32.mrb[64].mxu0 }
0x2243   :  { %v7141_v54 = vadd.f32 %v8193_v11, %v7431_v53  ;;  %v7135_v12 = vpop.f32.mrb[65].mxu0 }
0x2244   :  { %v7136_v55 = vadd.f32 %v7431_v53, %v7135_v12 }
0x2245   :  { %v7145_v56 = vadd.f32 %v7141_v54, %v9810_v21 }
0x2246   :  { %v7144_v57 = vadd.f32 %v7136_v55, %v9813_v26 }
0x2247   :  { %v7166_v58 = vsel %vm97_vm0, %v7145_v56, 0.0 }
0x2248   :  { %7167 = vadd.xlane.f32.xlu1 %v7166_v58  ;;  %v7163_v61 = vsel %vm97_vm0, %v7144_v57, 0.0 }
0x2249   :  { %7164 = vadd.xlane.f32.xlu0 %v7163_v61 }
0x22d5   :  { %v7168_v5 = vpop.xlane.xlu1 %7167 }
0x22d6   :  { %v7170_v7 = vmul.f32 0.03125, %v7168_v5  ;;  %v7165_v8 = vpop.xlane.xlu0 %7164 }
0x22d7   :  { %v7169_v9 = vmul.f32 0.03125, %v7165_v8 }
0x22d8   :  { %v7172_v10 = vsub.f32 %v7145_v56, %v7170_v7 }
0x22d9   :  { %v7171_v45 = vsub.f32 %v7144_v57, %v7169_v9 }
0x22da   :  { %v7174_v48 = vmul.f32 %v7172_v10, %v7172_v10 }
0x22db   :  { %v7173_v13 = vmul.f32 %v7171_v45, %v7171_v45 }
0x22dc   :  { %v7178_v1 = vsel %vm97_vm0, %v7174_v48, 0.0 }
0x22dd   :  { %7179 = vadd.xlane.f32.xlu1 %v7178_v1  ;;  %v7175_v21 = vsel %vm97_vm0, %v7173_v13, 0.0 }
0x22de   :  { %7176 = vadd.xlane.f32.xlu0 %v7175_v21 }
0x22ee   :  { %3617 = vrot.lane.b32.xlu1 %v9053_v33, %s8646_s11 }
0x22f2   :  { %7148 = vrot.lane.b32.xlu1 %v9615_v6, %s8646_s11 }
0x22f4   :  { %3615 = vrot.lane.b32.xlu0 %v9055_v35, %s8646_s11 }
0x22f6   :  { %7150 = vrot.lane.b32.xlu1 %v9613_v4, %s8646_s11 }
0x236a   :  { %v7180_v26 = vpop.xlane.xlu1 %7179 }
0x236b   :  { %v7182_v0 = vmul.f32 0.03125, %v7180_v26  ;;  %v7177_v16 = vpop.xlane.xlu0 %7176 }
0x236c   :  { %v7181_v17 = vmul.f32 0.03125, %v7177_v16 }
0x236d   :  { %v7184_v24 = vadd.f32 1e-05, %v7182_v0 }
0x236e   :  { %v7183_v27 = vadd.f32 1e-05, %v7181_v17  ;;  %v3618_v18 = vpop.permute.xlu1 %3617 }
0x236f   :  { %8531 = vrsqrt.f32 %v7184_v24  ;;  %v3623_v19 = vsel %vm3621_vm5, %v8873_v49, %v3618_v18  ;;  %v3616_v33 = vpop.permute.xlu0 %3615 }
0x2370   :  { %8533 = vrsqrt.f32 %v7183_v27  ;;  %v3626_v6 = vsel %vm3624_vm6, %v3623_v19, %v3618_v18  ;;  %v3622_v35 = vsel %vm3621_vm5, %v8858_v47, %v3616_v33 }
0x2371   :  { %3628 = vst [vmem:[%s9969_s15 + $0x8] sm:$0xff] %v3626_v6  ;;  %v3625_v4 = vsel %vm3624_vm6, %v3622_v35, %v3616_v33 }
0x2372   :  { %3627 = vst [vmem:[%s9969_s15] sm:$0xff] %v3625_v4  ;;  %v7149_v20 = vpop.permute.xlu1 %7148 }
0x2373   :  { %v7154_v49 = vsel %vm3621_vm5, %v9422_v62, %v7149_v20  ;;  %v7434_v62 = vld [vmem:[%s9966_s12] ss:$0 sm:$0xff] }
0x2374   :  { %v7156_v41 = vsel %vm3624_vm6, %v7154_v49, %v7149_v20 }
0x2375   :  { %7432 = vst [vmem:[%s9969_s15 + $0x10] sm:$0xff] %v7156_v41 }
0x2376   :  { %v7151_v47 = vpop.permute.xlu1 %7150 }
0x2377   :  { %v7155_v42 = vsel %vm3621_vm5, %v9437_v3, %v7151_v47 }
0x2378   :  { %v7157_v22 = vsel %vm3624_vm6, %v7155_v42, %v7151_v47 }
0x2379   :  { %v8532_v28 = vpop.eup %8531  ;;  %7433 = vst [vmem:[%s9969_s15 + $0x18] sm:$0xff] %v7157_v22  ;;  %s8603_s15 = scalar_lea.vmem %s7213_s1, 256 }
0x237a   :  { %v8534_v25 = vpop.eup %8533  ;;  %v7188_v23 = vmul.f32 %v8532_v28, %v7172_v10  ;;  %p8604_p10 = scmp.ne.s32.totalorder %s7213_s1, %s8603_s15  ;;  %p8609_p12 = scmp.lt.s32.totalorder %s8603_s15, %s8603_s15 }
0x237b   :  { %v7187_v2 = vmul.f32 %v8534_v25, %v7171_v45 }
0x237c   :  { %v7196_v36 = vmul.f32 %v7434_v62, %v7188_v23  ;;  %p8610_p13 = por %p8609_p12, %p8608_p11 }
0x237d   :  { %v7195_v3 = vmul.f32 %v7434_v62, %v7187_v2 }
0x237e   :  { %v7204_v29 = vadd.f32 %v7435_v59, %v7196_v36  ;;  %p8611_p0 = pnand %p8610_p13, %p8604_p10 }
0x237f   :  { %v7203_v38 = vadd.f32 %v7435_v59, %v7195_v3 }
0x2380   :  { %7206 = vst.msk [vmem:[#allocation8 + $0x8] sm:$0xff] %vm97_vm0, %v7204_v29 }
0x2381   :  { %7205 = vst.msk [vmem:[#allocation8] sm:$0xff] %vm97_vm0, %v7203_v38 }
0x2382   :  { %8614 = shalt.err (!%p8611_p0)
}
0x2383   :  { %s8615_s2 = scalar_lea.hbm %s9968_s14, 256 }
0x2384   :  { %p8616_p1 = scmp.ne.s32.totalorder %s9968_s14, %s8615_s2  ;;  %p8619_p2 = scmp.lt.u32.totalorder %s8615_s2, %s9968_s14 }
0x2386   :  { %p8621_p3 = pnand %p8619_p2, %p8616_p1 }
0x2388   :  { %8624 = shalt.err (!%p8621_p3)
}
0x2389   :  { %s9971_s17 = smov 128  }
0x238a   :  { %7218 = dma.vmem_to_hbm [thread:$0]  %s7213_s1, 256, %s9968_s14, [#allocation4], %s9971_s17, %s9971_s17, %s8634_s16  }
0x238b   :  { %8629 = dma.done.wait [#allocation4], 256  }
0x238c   :  { %8630 = vsyncadd [#allocation4], 4294967040 }
0x238d   :  { %7226 = vsyncpa [#allocation3], 1 }
0x238e   :  { %7227 = vsyncpa [#allocation6], 1 }
0x238f   :  { %7228 = vsyncpa [#allocation4], 1 }

</bundles_post_ra>
